<compile_context>
chip_gen: v6e
topology: v6e:2x2x1
jax: 0.10.0
libtpu: 0.0.40
codegen_flags: <defaults>
</compile_context>

<pallas_src>
import math

import numpy as np

import jax
import jax.numpy as jnp
from jax.experimental import pallas as pl
from jax.experimental.pallas import tpu as pltpu


# ----------------------------------------------------------------------------
# Fused Pallas kernel (one batch tile per grid step)
# ----------------------------------------------------------------------------
def _disc_kernel(x_ref, m1_ref, b1_ref, p1e_ref, p1o_ref,
                 m2_ref, b2_ref, p2e_ref, p2o_ref,
                 wf1_ref, bf1_ref, wf2_ref, bf2_ref,
                 o_ref, p1_ref):
    tb = x_ref.shape[0]
    x = x_ref[...]                                           # (tb, 28, 28)

    # ---- conv1 (1 -> 10, k=5, valid): 5 shifted MXU matmuls.
    # Output lane index = out_col * 10 + out_channel  (240 lanes, lane-dense).
    acc1 = jnp.dot(x[:, 0:24, :].reshape(tb * 24, 28), m1_ref[0],
                   preferred_element_type=jnp.float32)
    for di in range(1, 5):
        acc1 = acc1 + jnp.dot(x[:, di:di + 24, :].reshape(tb * 24, 28),
                              m1_ref[di], preferred_element_type=jnp.float32)
    y1 = acc1 + b1_ref[...]                                  # (tb*24, 240)

    # ---- maxpool 2x2 + relu.
    # W direction: even/odd column-block selection via constant 0/1 matmuls.
    ev = jnp.dot(y1, p1e_ref[...], preferred_element_type=jnp.float32)
    od = jnp.dot(y1, p1o_ref[...], preferred_element_type=jnp.float32)
    yw = jnp.maximum(ev, od).reshape(tb, 24, 120)
    # H direction: row-pair maxima, written into a VMEM scratch activation.
    for i in range(12):
        row = jnp.maximum(yw[:, 2 * i, :], yw[:, 2 * i + 1, :])
        p1_ref[:, i, :] = jnp.maximum(row, 0.0)              # (tb, 12, 120)

    # ---- conv2 (10 -> 20, k=5, valid): 5 shifted MXU matmuls.
    # Output lane index = out_col * 20 + out_channel (160 lanes).
    p1 = p1_ref[...]                                         # (tb, 12, 120)
    acc2 = jnp.dot(p1[:, 0:8, :].reshape(tb * 8, 120), m2_ref[0],
                   preferred_element_type=jnp.float32)
    for di in range(1, 5):
        acc2 = acc2 + jnp.dot(p1[:, di:di + 8, :].reshape(tb * 8, 120),
                              m2_ref[di], preferred_element_type=jnp.float32)
    y2 = acc2 + b2_ref[...]                                  # (tb*8, 160)
    # TODO(synk): nn.Dropout2d(p=0.5) is identity in eval mode; train-mode channel
    # dropout would use pltpu.prng_seed / pltpu.prng_random_bits here.

    # ---- maxpool 2x2 + relu.
    ev2 = jnp.dot(y2, p2e_ref[...], preferred_element_type=jnp.float32)
    od2 = jnp.dot(y2, p2o_ref[...], preferred_element_type=jnp.float32)
    yw2 = jnp.maximum(ev2, od2).reshape(tb, 8, 80)

    # ---- view(-1, 320) + fc1 + relu.
    # The flatten is folded into 4 per-row matmuls against the trace-time-permuted
    # fc1 weight (so PyTorch's NCHW flatten order is matched with zero runtime cost).
    h1 = bf1_ref[...]                                        # (1, 50), broadcasts
    for h in range(4):
        row = jnp.maximum(jnp.maximum(yw2[:, 2 * h, :], yw2[:, 2 * h + 1, :]), 0.0)
        h1 = h1 + jnp.dot(row, wf1_ref[h], preferred_element_type=jnp.float32)
    h1 = jnp.maximum(h1, 0.0)                                # (tb, 50)

    # ---- fc2 (50 -> 1) on the VPU (multiply + lane reduction) + sigmoid.
    z = jnp.sum(h1 * wf2_ref[...], axis=-1, keepdims=True) + bf2_ref[...]  # (tb, 1)
    o_ref[...] = jax.nn.sigmoid(z)


# ----------------------------------------------------------------------------
# Trace-time weight / constant preparation (runs outside the kernel, tiny)
# ----------------------------------------------------------------------------
def _pool_select(in_cols, n_ch):
    """0/1 matrices selecting even / odd spatial columns of a (col*n_ch) lane axis."""
    out_cols = in_cols // 2
    e = np.zeros((in_cols * n_ch, out_cols * n_ch), np.float32)
    o = np.zeros_like(e)
    for k in range(out_cols):
        for c in range(n_ch):
            e[(2 * k) * n_ch + c, k * n_ch + c] = 1.0
            o[(2 * k + 1) * n_ch + c, k * n_ch + c] = 1.0
    return jnp.asarray(e), jnp.asarray(o)


def _prep_weights(p):
    # conv1: m1[di, w, j*10 + c] = conv1_w[c, 0, di, w - j] (0 <= w-j <= 4, else 0)
    w1 = p["conv1_w"].reshape(10, 5, 5)                      # (c_out, kh, kw)
    s1 = np.zeros((5, 28, 24), np.float32)
    for dj in range(5):
        for j in range(24):
            s1[dj, j + dj, j] = 1.0
    m1 = jnp.einsum("xwj,cix->iwjc", jnp.asarray(s1), w1).reshape(5, 28, 240)
    b1t = jnp.tile(p["conv1_b"], 24).reshape(1, 240)

    # conv2: m2[di, j*10 + c, z*20 + d] = conv2_w[d, c, di, j - z]
    s2 = np.zeros((5, 12, 8), np.float32)
    for dj in range(5):
        for j2 in range(8):
            s2[dj, j2 + dj, j2] = 1.0
    m2 = jnp.einsum("xjz,dcix->ijczd", jnp.asarray(s2), p["conv2_w"]).reshape(5, 120, 160)
    b2t = jnp.tile(p["conv2_b"], 8).reshape(1, 160)

    # fc1 weight permuted so the kernel's (h, w, c)-ordered activation matches the
    # PyTorch NCHW view(-1, 320) order; split per output row h -> (4, 80, 50).
    wf1 = p["fc1_w"].reshape(50, 20, 4, 4).transpose(2, 3, 1, 0).reshape(4, 80, 50)
    bf1 = p["fc1_b"].reshape(1, 50)
    wf2 = p["fc2_w"].reshape(1, 50)
    bf2 = p["fc2_b"].reshape(1, 1)
    return m1, b1t, m2, b2t, wf1, bf1, wf2, bf2


# ----------------------------------------------------------------------------
# Forward pass (single fused pallas_call)
# ----------------------------------------------------------------------------
@jax.jit
def discriminator_forward(x_nchw, params):
    B = x_nchw.shape[0]
    m1, b1t, m2, b2t, wf1, bf1, wf2, bf2 = _prep_weights(params)
    p1e, p1o = _pool_select(24, 10)    # (240, 120)
    p2e, p2o = _pool_select(8, 20)     # (160, 80)

    x = x_nchw.reshape(B, 28, 28)      # C_in == 1, free reshape

    # Batch tiling: whole batch in one step when small, else 8-row tiles
    # (keeps the output block (TB, 1) sublane-aligned and the working set tiny,
    #  well under the v7x 64 MiB / 32 MiB-scoped VMEM budget).
    tb = B if B <= 8 else 8
    bp = ((B + tb - 1) // tb) * tb
    if bp != B:
        x = jnp.pad(x, ((0, bp - B), (0, 0), (0, 0)))
    grid = (bp // tb,)

    out = pl.pallas_call(
        _disc_kernel,
        out_shape=jax.ShapeDtypeStruct((bp, 1), jnp.float32),
        grid=grid,
        in_specs=[
            pl.BlockSpec((tb, 28, 28), lambda i: (i, 0, 0)),      # x (batch-tiled)
            pl.BlockSpec((5, 28, 240), lambda i: (0, 0, 0)),      # conv1 matrices
            pl.BlockSpec((1, 240), lambda i: (0, 0)),             # conv1 bias (tiled)
            pl.BlockSpec((240, 120), lambda i: (0, 0)),           # pool1 even select
            pl.BlockSpec((240, 120), lambda i: (0, 0)),           # pool1 odd select
            pl.BlockSpec((5, 120, 160), lambda i: (0, 0, 0)),     # conv2 matrices
            pl.BlockSpec((1, 160), lambda i: (0, 0)),             # conv2 bias (tiled)
            pl.BlockSpec((160, 80), lambda i: (0, 0)),            # pool2 even select
            pl.BlockSpec((160, 80), lambda i: (0, 0)),            # pool2 odd select
            pl.BlockSpec((4, 80, 50), lambda i: (0, 0, 0)),       # fc1 weight (permuted)
            pl.BlockSpec((1, 50), lambda i: (0, 0)),              # fc1 bias
            pl.BlockSpec((1, 50), lambda i: (0, 0)),              # fc2 weight (row)
            pl.BlockSpec((1, 1), lambda i: (0, 0)),               # fc2 bias
        ],
        out_specs=pl.BlockSpec((tb, 1), lambda i: (i, 0)),
        scratch_shapes=[pltpu.VMEM((tb, 12, 120), jnp.float32)],  # pooled conv1 act.
        compiler_params=pltpu.CompilerParams(
            dimension_semantics=("parallel",)),                   # megacore on v7x
    )(x, m1, b1t, p1e, p1o, m2, b2t, p2e, p2o, wf1, bf1, wf2, bf2)

    return out[:B]


# ----------------------------------------------------------------------------
# Parameters (deterministic, PyTorch-default-style uniform init)
# ----------------------------------------------------------------------------
def init_params(key):
    def uniform(k, shape, fan_in):
        bound = 1.0 / math.sqrt(fan_in)
        return jax.random.uniform(k, shape, jnp.float32, -bound, bound)

    ks = jax.random.split(key, 8)
    return {
        "conv1_w": uniform(ks[0], (10, 1, 5, 5), 1 * 5 * 5),   # OIHW
        "conv1_b": uniform(ks[1], (10,), 1 * 5 * 5),
        "conv2_w": uniform(ks[2], (20, 10, 5, 5), 10 * 5 * 5),
        "conv2_b": uniform(ks[3], (20,), 10 * 5 * 5),
        "fc1_w": uniform(ks[4], (50, 320), 320),                # (out, in)
        "fc1_b": uniform(ks[5], (50,), 320),
        "fc2_w": uniform(ks[6], (1, 50), 50),
        "fc2_b": uniform(ks[7], (1,), 50),
    }


# ----------------------------------------------------------------------------
# Pure-JAX reference (for correctness check)
# ----------------------------------------------------------------------------
def reference_forward(x_nchw, p):
    dn = ("NCHW", "OIHW", "NCHW")
    y = jax.lax.conv_general_dilated(
        x_nchw, p["conv1_w"], (1, 1), "VALID", dimension_numbers=dn
    ) + p["conv1_b"][None, :, None, None]
    y = jax.lax.reduce_window(
        y, -jnp.inf, jax.lax.max, (1, 1, 2, 2), (1, 1, 2, 2), "VALID")
    y = jnp.maximum(y, 0.0)
    y = jax.lax.conv_general_dilated(
        y, p["conv2_w"], (1, 1), "VALID", dimension_numbers=dn
    ) + p["conv2_b"][None, :, None, None]
    y = jax.lax.reduce_window(
        y, -jnp.inf, jax.lax.max, (1, 1, 2, 2), (1, 1, 2, 2), "VALID")
    y = jnp.maximum(y, 0.0)
    y = y.reshape(y.shape[0], 320)
    y = jnp.maximum(y @ p["fc1_w"].T + p["fc1_b"], 0.0)
    y = jax.nn.sigmoid(y @ p["fc2_w"].T + p["fc2_b"])
    return y


# ----------------------------------------------------------------------------
if __name__ == "__main__":
    key = jax.random.PRNGKey(0)
    k_x, k_p = jax.random.split(key)

    B = 2
    x = jax.random.normal(k_x, (B, 1, 28, 28), dtype=jnp.float32)  # NCHW
    params = init_params(k_p)

    out = jax.block_until_ready(discriminator_forward(x, params))
    assert out.shape == (B, 1), out.shape
    assert bool(jnp.all((out >= 0.0) & (out <= 1.0)))

    ref = jax.block_until_ready(reference_forward(x, params))
    assert jnp.allclose(out, ref, atol=1e-4, rtol=1e-4), (out, ref)

    print("KERNEL_OK")
</pallas_src>

<mosaic_0001>
module attributes {stable_mosaic.version = 11 : i64} {
  func.func @_disc_kernel(%arg0: i32, %arg1: memref<2x28x28xf32, #tpu.memory_space<vmem>>, %arg2: memref<5x28x240xf32, #tpu.memory_space<vmem>>, %arg3: memref<1x240xf32, #tpu.memory_space<vmem>>, %arg4: memref<240x120xf32, #tpu.memory_space<vmem>>, %arg5: memref<240x120xf32, #tpu.memory_space<vmem>>, %arg6: memref<5x120x160xf32, #tpu.memory_space<vmem>>, %arg7: memref<1x160xf32, #tpu.memory_space<vmem>>, %arg8: memref<160x80xf32, #tpu.memory_space<vmem>>, %arg9: memref<160x80xf32, #tpu.memory_space<vmem>>, %arg10: memref<4x80x50xf32, #tpu.memory_space<vmem>>, %arg11: memref<1x50xf32, #tpu.memory_space<vmem>>, %arg12: memref<1x50xf32, #tpu.memory_space<vmem>>, %arg13: memref<1x1xf32, #tpu.memory_space<vmem>>, %arg14: memref<2x1xf32, #tpu.memory_space<vmem>>, %arg15: memref<2x12x120xf32, #tpu.memory_space<vmem>>) attributes {dimension_semantics = [#tpu.dimension_semantics<parallel>], iteration_bounds = array<i64: 1>, scalar_prefetch = 0 : i64, scratch_operands = 1 : i64, tpu.core_type = #tpu.core_type<tc>, window_params = [{transform_indices = @transform_0, window_bounds = array<i64: 2, 28, 28>}, {pipeline_mode = #tpu.pipeline_mode<synchronous>, transform_indices = @transform_1, window_bounds = array<i64: 5, 28, 240>}, {pipeline_mode = #tpu.pipeline_mode<synchronous>, transform_indices = @transform_2, window_bounds = array<i64: 1, 240>}, {pipeline_mode = #tpu.pipeline_mode<synchronous>, transform_indices = @transform_3, window_bounds = array<i64: 240, 120>}, {pipeline_mode = #tpu.pipeline_mode<synchronous>, transform_indices = @transform_4, window_bounds = array<i64: 240, 120>}, {pipeline_mode = #tpu.pipeline_mode<synchronous>, transform_indices = @transform_5, window_bounds = array<i64: 5, 120, 160>}, {pipeline_mode = #tpu.pipeline_mode<synchronous>, transform_indices = @transform_6, window_bounds = array<i64: 1, 160>}, {pipeline_mode = #tpu.pipeline_mode<synchronous>, transform_indices = @transform_7, window_bounds = array<i64: 160, 80>}, {pipeline_mode = #tpu.pipeline_mode<synchronous>, transform_indices = @transform_8, window_bounds = array<i64: 160, 80>}, {pipeline_mode = #tpu.pipeline_mode<synchronous>, transform_indices = @transform_9, window_bounds = array<i64: 4, 80, 50>}, {pipeline_mode = #tpu.pipeline_mode<synchronous>, transform_indices = @transform_10, window_bounds = array<i64: 1, 50>}, {pipeline_mode = #tpu.pipeline_mode<synchronous>, transform_indices = @transform_11, window_bounds = array<i64: 1, 50>}, {pipeline_mode = #tpu.pipeline_mode<synchronous>, transform_indices = @transform_12, window_bounds = array<i64: 1, 1>}, {transform_indices = @transform_13, window_bounds = array<i64: 2, 1>}]} {
    %c0 = arith.constant 0 : index
    %c0_0 = arith.constant 0 : index
    %c0_1 = arith.constant 0 : index
    %0 = vector.load %arg1[%c0, %c0_0, %c0_1] : memref<2x28x28xf32, #tpu.memory_space<vmem>>, vector<2x28x28xf32>
    %1 = vector.extract_strided_slice %0 {offsets = [0, 0, 0], sizes = [2, 24, 28], strides = [1, 1, 1]} : vector<2x28x28xf32> to vector<2x24x28xf32>
    %2 = vector.shape_cast %1 : vector<2x24x28xf32> to vector<48x28xf32>
    %c0_2 = arith.constant 0 : index
    %c0_3 = arith.constant 0 : index
    %c0_4 = arith.constant 0 : index
    %3 = vector.load %arg2[%c0_2, %c0_3, %c0_4] : memref<5x28x240xf32, #tpu.memory_space<vmem>>, vector<1x28x240xf32>
    %4 = vector.shape_cast %3 : vector<1x28x240xf32> to vector<28x240xf32>
    %cst = arith.constant dense<0.000000e+00> : vector<48x240xf32>
    %5 = tpu.matmul %2, %4, %cst {dimension_numbers = #tpu.dot_dimension_numbers<[1], [0], [0], [1], [0, 0, 1, 1], [], []>} : vector<48x28xf32>, vector<28x240xf32>, vector<48x240xf32> -> vector<48x240xf32>
    %6 = vector.extract_strided_slice %0 {offsets = [0, 1, 0], sizes = [2, 24, 28], strides = [1, 1, 1]} : vector<2x28x28xf32> to vector<2x24x28xf32>
    %7 = vector.shape_cast %6 : vector<2x24x28xf32> to vector<48x28xf32>
    %c1 = arith.constant 1 : index
    %c0_5 = arith.constant 0 : index
    %c0_6 = arith.constant 0 : index
    %8 = vector.load %arg2[%c1, %c0_5, %c0_6] : memref<5x28x240xf32, #tpu.memory_space<vmem>>, vector<1x28x240xf32>
    %9 = vector.shape_cast %8 : vector<1x28x240xf32> to vector<28x240xf32>
    %cst_7 = arith.constant dense<0.000000e+00> : vector<48x240xf32>
    %10 = tpu.matmul %7, %9, %cst_7 {dimension_numbers = #tpu.dot_dimension_numbers<[1], [0], [0], [1], [0, 0, 1, 1], [], []>} : vector<48x28xf32>, vector<28x240xf32>, vector<48x240xf32> -> vector<48x240xf32>
    %11 = arith.addf %5, %10 : vector<48x240xf32>
    %12 = vector.extract_strided_slice %0 {offsets = [0, 2, 0], sizes = [2, 24, 28], strides = [1, 1, 1]} : vector<2x28x28xf32> to vector<2x24x28xf32>
    %13 = vector.shape_cast %12 : vector<2x24x28xf32> to vector<48x28xf32>
    %c2 = arith.constant 2 : index
    %c0_8 = arith.constant 0 : index
    %c0_9 = arith.constant 0 : index
    %14 = vector.load %arg2[%c2, %c0_8, %c0_9] : memref<5x28x240xf32, #tpu.memory_space<vmem>>, vector<1x28x240xf32>
    %15 = vector.shape_cast %14 : vector<1x28x240xf32> to vector<28x240xf32>
    %cst_10 = arith.constant dense<0.000000e+00> : vector<48x240xf32>
    %16 = tpu.matmul %13, %15, %cst_10 {dimension_numbers = #tpu.dot_dimension_numbers<[1], [0], [0], [1], [0, 0, 1, 1], [], []>} : vector<48x28xf32>, vector<28x240xf32>, vector<48x240xf32> -> vector<48x240xf32>
    %17 = arith.addf %11, %16 : vector<48x240xf32>
    %18 = vector.extract_strided_slice %0 {offsets = [0, 3, 0], sizes = [2, 24, 28], strides = [1, 1, 1]} : vector<2x28x28xf32> to vector<2x24x28xf32>
    %19 = vector.shape_cast %18 : vector<2x24x28xf32> to vector<48x28xf32>
    %c3 = arith.constant 3 : index
    %c0_11 = arith.constant 0 : index
    %c0_12 = arith.constant 0 : index
    %20 = vector.load %arg2[%c3, %c0_11, %c0_12] : memref<5x28x240xf32, #tpu.memory_space<vmem>>, vector<1x28x240xf32>
    %21 = vector.shape_cast %20 : vector<1x28x240xf32> to vector<28x240xf32>
    %cst_13 = arith.constant dense<0.000000e+00> : vector<48x240xf32>
    %22 = tpu.matmul %19, %21, %cst_13 {dimension_numbers = #tpu.dot_dimension_numbers<[1], [0], [0], [1], [0, 0, 1, 1], [], []>} : vector<48x28xf32>, vector<28x240xf32>, vector<48x240xf32> -> vector<48x240xf32>
    %23 = arith.addf %17, %22 : vector<48x240xf32>
    %24 = vector.extract_strided_slice %0 {offsets = [0, 4, 0], sizes = [2, 24, 28], strides = [1, 1, 1]} : vector<2x28x28xf32> to vector<2x24x28xf32>
    %25 = vector.shape_cast %24 : vector<2x24x28xf32> to vector<48x28xf32>
    %c4 = arith.constant 4 : index
    %c0_14 = arith.constant 0 : index
    %c0_15 = arith.constant 0 : index
    %26 = vector.load %arg2[%c4, %c0_14, %c0_15] : memref<5x28x240xf32, #tpu.memory_space<vmem>>, vector<1x28x240xf32>
    %27 = vector.shape_cast %26 : vector<1x28x240xf32> to vector<28x240xf32>
    %cst_16 = arith.constant dense<0.000000e+00> : vector<48x240xf32>
    %28 = tpu.matmul %25, %27, %cst_16 {dimension_numbers = #tpu.dot_dimension_numbers<[1], [0], [0], [1], [0, 0, 1, 1], [], []>} : vector<48x28xf32>, vector<28x240xf32>, vector<48x240xf32> -> vector<48x240xf32>
    %29 = arith.addf %23, %28 : vector<48x240xf32>
    %c0_17 = arith.constant 0 : index
    %c0_18 = arith.constant 0 : index
    %30 = vector.load %arg3[%c0_17, %c0_18] : memref<1x240xf32, #tpu.memory_space<vmem>>, vector<1x240xf32>
    %31 = vector.broadcast %30 : vector<1x240xf32> to vector<48x240xf32>
    %32 = arith.addf %29, %31 : vector<48x240xf32>
    %c0_19 = arith.constant 0 : index
    %c0_20 = arith.constant 0 : index
    %33 = vector.load %arg4[%c0_19, %c0_20] : memref<240x120xf32, #tpu.memory_space<vmem>>, vector<240x120xf32>
    %cst_21 = arith.constant dense<0.000000e+00> : vector<48x120xf32>
    %34 = tpu.matmul %32, %33, %cst_21 {dimension_numbers = #tpu.dot_dimension_numbers<[1], [0], [0], [1], [0, 0, 1, 1], [], []>} : vector<48x240xf32>, vector<240x120xf32>, vector<48x120xf32> -> vector<48x120xf32>
    %c0_22 = arith.constant 0 : index
    %c0_23 = arith.constant 0 : index
    %35 = vector.load %arg5[%c0_22, %c0_23] : memref<240x120xf32, #tpu.memory_space<vmem>>, vector<240x120xf32>
    %cst_24 = arith.constant dense<0.000000e+00> : vector<48x120xf32>
    %36 = tpu.matmul %32, %35, %cst_24 {dimension_numbers = #tpu.dot_dimension_numbers<[1], [0], [0], [1], [0, 0, 1, 1], [], []>} : vector<48x240xf32>, vector<240x120xf32>, vector<48x120xf32> -> vector<48x120xf32>
    %37 = arith.maximumf %34, %36 : vector<48x120xf32>
    %38 = vector.shape_cast %37 : vector<48x120xf32> to vector<2x24x120xf32>
    %39 = vector.extract_strided_slice %38 {offsets = [0, 0, 0], sizes = [2, 1, 120], strides = [1, 1, 1]} : vector<2x24x120xf32> to vector<2x1x120xf32>
    %40 = vector.shape_cast %39 : vector<2x1x120xf32> to vector<2x120xf32>
    %41 = vector.extract_strided_slice %38 {offsets = [0, 1, 0], sizes = [2, 1, 120], strides = [1, 1, 1]} : vector<2x24x120xf32> to vector<2x1x120xf32>
    %42 = vector.shape_cast %41 : vector<2x1x120xf32> to vector<2x120xf32>
    %43 = arith.maximumf %40, %42 : vector<2x120xf32>
    %cst_25 = arith.constant 0.000000e+00 : f32
    %44 = vector.broadcast %cst_25 : f32 to vector<2x120xf32>
    %45 = arith.maximumf %43, %44 : vector<2x120xf32>
    %c0_26 = arith.constant 0 : index
    %c0_27 = arith.constant 0 : index
    %c0_28 = arith.constant 0 : index
    %46 = vector.load %arg15[%c0_26, %c0_27, %c0_28] : memref<2x12x120xf32, #tpu.memory_space<vmem>>, vector<2x1x120xf32>
    %47 = vector.shape_cast %46 : vector<2x1x120xf32> to vector<2x120xf32>
    %48 = vector.shape_cast %45 : vector<2x120xf32> to vector<2x1x120xf32>
    tpu.vector_store %arg15[%c0_26, %c0_27, %c0_28], %48 {strides = array<i32>} : memref<2x12x120xf32, #tpu.memory_space<vmem>>, vector<2x1x120xf32>,
    %49 = vector.extract_strided_slice %38 {offsets = [0, 2, 0], sizes = [2, 1, 120], strides = [1, 1, 1]} : vector<2x24x120xf32> to vector<2x1x120xf32>
    %50 = vector.shape_cast %49 : vector<2x1x120xf32> to vector<2x120xf32>
    %51 = vector.extract_strided_slice %38 {offsets = [0, 3, 0], sizes = [2, 1, 120], strides = [1, 1, 1]} : vector<2x24x120xf32> to vector<2x1x120xf32>
    %52 = vector.shape_cast %51 : vector<2x1x120xf32> to vector<2x120xf32>
    %53 = arith.maximumf %50, %52 : vector<2x120xf32>
    %cst_29 = arith.constant 0.000000e+00 : f32
    %54 = vector.broadcast %cst_29 : f32 to vector<2x120xf32>
    %55 = arith.maximumf %53, %54 : vector<2x120xf32>
    %c0_30 = arith.constant 0 : index
    %c1_31 = arith.constant 1 : index
    %c0_32 = arith.constant 0 : index
    %56 = vector.load %arg15[%c0_30, %c1_31, %c0_32] : memref<2x12x120xf32, #tpu.memory_space<vmem>>, vector<2x1x120xf32>
    %57 = vector.shape_cast %56 : vector<2x1x120xf32> to vector<2x120xf32>
    %58 = vector.shape_cast %55 : vector<2x120xf32> to vector<2x1x120xf32>
    tpu.vector_store %arg15[%c0_30, %c1_31, %c0_32], %58 {strides = array<i32>} : memref<2x12x120xf32, #tpu.memory_space<vmem>>, vector<2x1x120xf32>,
    %59 = vector.extract_strided_slice %38 {offsets = [0, 4, 0], sizes = [2, 1, 120], strides = [1, 1, 1]} : vector<2x24x120xf32> to vector<2x1x120xf32>
    %60 = vector.shape_cast %59 : vector<2x1x120xf32> to vector<2x120xf32>
    %61 = vector.extract_strided_slice %38 {offsets = [0, 5, 0], sizes = [2, 1, 120], strides = [1, 1, 1]} : vector<2x24x120xf32> to vector<2x1x120xf32>
    %62 = vector.shape_cast %61 : vector<2x1x120xf32> to vector<2x120xf32>
    %63 = arith.maximumf %60, %62 : vector<2x120xf32>
    %cst_33 = arith.constant 0.000000e+00 : f32
    %64 = vector.broadcast %cst_33 : f32 to vector<2x120xf32>
    %65 = arith.maximumf %63, %64 : vector<2x120xf32>
    %c0_34 = arith.constant 0 : index
    %c2_35 = arith.constant 2 : index
    %c0_36 = arith.constant 0 : index
    %66 = vector.load %arg15[%c0_34, %c2_35, %c0_36] : memref<2x12x120xf32, #tpu.memory_space<vmem>>, vector<2x1x120xf32>
    %67 = vector.shape_cast %66 : vector<2x1x120xf32> to vector<2x120xf32>
    %68 = vector.shape_cast %65 : vector<2x120xf32> to vector<2x1x120xf32>
    tpu.vector_store %arg15[%c0_34, %c2_35, %c0_36], %68 {strides = array<i32>} : memref<2x12x120xf32, #tpu.memory_space<vmem>>, vector<2x1x120xf32>,
    %69 = vector.extract_strided_slice %38 {offsets = [0, 6, 0], sizes = [2, 1, 120], strides = [1, 1, 1]} : vector<2x24x120xf32> to vector<2x1x120xf32>
    %70 = vector.shape_cast %69 : vector<2x1x120xf32> to vector<2x120xf32>
    %71 = vector.extract_strided_slice %38 {offsets = [0, 7, 0], sizes = [2, 1, 120], strides = [1, 1, 1]} : vector<2x24x120xf32> to vector<2x1x120xf32>
    %72 = vector.shape_cast %71 : vector<2x1x120xf32> to vector<2x120xf32>
    %73 = arith.maximumf %70, %72 : vector<2x120xf32>
    %cst_37 = arith.constant 0.000000e+00 : f32
    %74 = vector.broadcast %cst_37 : f32 to vector<2x120xf32>
    %75 = arith.maximumf %73, %74 : vector<2x120xf32>
    %c0_38 = arith.constant 0 : index
    %c3_39 = arith.constant 3 : index
    %c0_40 = arith.constant 0 : index
    %76 = vector.load %arg15[%c0_38, %c3_39, %c0_40] : memref<2x12x120xf32, #tpu.memory_space<vmem>>, vector<2x1x120xf32>
    %77 = vector.shape_cast %76 : vector<2x1x120xf32> to vector<2x120xf32>
    %78 = vector.shape_cast %75 : vector<2x120xf32> to vector<2x1x120xf32>
    tpu.vector_store %arg15[%c0_38, %c3_39, %c0_40], %78 {strides = array<i32>} : memref<2x12x120xf32, #tpu.memory_space<vmem>>, vector<2x1x120xf32>,
    %79 = vector.extract_strided_slice %38 {offsets = [0, 8, 0], sizes = [2, 1, 120], strides = [1, 1, 1]} : vector<2x24x120xf32> to vector<2x1x120xf32>
    %80 = vector.shape_cast %79 : vector<2x1x120xf32> to vector<2x120xf32>
    %81 = vector.extract_strided_slice %38 {offsets = [0, 9, 0], sizes = [2, 1, 120], strides = [1, 1, 1]} : vector<2x24x120xf32> to vector<2x1x120xf32>
    %82 = vector.shape_cast %81 : vector<2x1x120xf32> to vector<2x120xf32>
    %83 = arith.maximumf %80, %82 : vector<2x120xf32>
    %cst_41 = arith.constant 0.000000e+00 : f32
    %84 = vector.broadcast %cst_41 : f32 to vector<2x120xf32>
    %85 = arith.maximumf %83, %84 : vector<2x120xf32>
    %c0_42 = arith.constant 0 : index
    %c4_43 = arith.constant 4 : index
    %c0_44 = arith.constant 0 : index
    %86 = vector.load %arg15[%c0_42, %c4_43, %c0_44] : memref<2x12x120xf32, #tpu.memory_space<vmem>>, vector<2x1x120xf32>
    %87 = vector.shape_cast %86 : vector<2x1x120xf32> to vector<2x120xf32>
    %88 = vector.shape_cast %85 : vector<2x120xf32> to vector<2x1x120xf32>
    tpu.vector_store %arg15[%c0_42, %c4_43, %c0_44], %88 {strides = array<i32>} : memref<2x12x120xf32, #tpu.memory_space<vmem>>, vector<2x1x120xf32>,
    %89 = vector.extract_strided_slice %38 {offsets = [0, 10, 0], sizes = [2, 1, 120], strides = [1, 1, 1]} : vector<2x24x120xf32> to vector<2x1x120xf32>
    %90 = vector.shape_cast %89 : vector<2x1x120xf32> to vector<2x120xf32>
    %91 = vector.extract_strided_slice %38 {offsets = [0, 11, 0], sizes = [2, 1, 120], strides = [1, 1, 1]} : vector<2x24x120xf32> to vector<2x1x120xf32>
    %92 = vector.shape_cast %91 : vector<2x1x120xf32> to vector<2x120xf32>
    %93 = arith.maximumf %90, %92 : vector<2x120xf32>
    %cst_45 = arith.constant 0.000000e+00 : f32
    %94 = vector.broadcast %cst_45 : f32 to vector<2x120xf32>
    %95 = arith.maximumf %93, %94 : vector<2x120xf32>
    %c0_46 = arith.constant 0 : index
    %c5 = arith.constant 5 : index
    %c0_47 = arith.constant 0 : index
    %96 = vector.load %arg15[%c0_46, %c5, %c0_47] : memref<2x12x120xf32, #tpu.memory_space<vmem>>, vector<2x1x120xf32>
    %97 = vector.shape_cast %96 : vector<2x1x120xf32> to vector<2x120xf32>
    %98 = vector.shape_cast %95 : vector<2x120xf32> to vector<2x1x120xf32>
    tpu.vector_store %arg15[%c0_46, %c5, %c0_47], %98 {strides = array<i32>} : memref<2x12x120xf32, #tpu.memory_space<vmem>>, vector<2x1x120xf32>,
    %99 = vector.extract_strided_slice %38 {offsets = [0, 12, 0], sizes = [2, 1, 120], strides = [1, 1, 1]} : vector<2x24x120xf32> to vector<2x1x120xf32>
    %100 = vector.shape_cast %99 : vector<2x1x120xf32> to vector<2x120xf32>
    %101 = vector.extract_strided_slice %38 {offsets = [0, 13, 0], sizes = [2, 1, 120], strides = [1, 1, 1]} : vector<2x24x120xf32> to vector<2x1x120xf32>
    %102 = vector.shape_cast %101 : vector<2x1x120xf32> to vector<2x120xf32>
    %103 = arith.maximumf %100, %102 : vector<2x120xf32>
    %cst_48 = arith.constant 0.000000e+00 : f32
    %104 = vector.broadcast %cst_48 : f32 to vector<2x120xf32>
    %105 = arith.maximumf %103, %104 : vector<2x120xf32>
    %c0_49 = arith.constant 0 : index
    %c6 = arith.constant 6 : index
    %c0_50 = arith.constant 0 : index
    %106 = vector.load %arg15[%c0_49, %c6, %c0_50] : memref<2x12x120xf32, #tpu.memory_space<vmem>>, vector<2x1x120xf32>
    %107 = vector.shape_cast %106 : vector<2x1x120xf32> to vector<2x120xf32>
    %108 = vector.shape_cast %105 : vector<2x120xf32> to vector<2x1x120xf32>
    tpu.vector_store %arg15[%c0_49, %c6, %c0_50], %108 {strides = array<i32>} : memref<2x12x120xf32, #tpu.memory_space<vmem>>, vector<2x1x120xf32>,
    %109 = vector.extract_strided_slice %38 {offsets = [0, 14, 0], sizes = [2, 1, 120], strides = [1, 1, 1]} : vector<2x24x120xf32> to vector<2x1x120xf32>
    %110 = vector.shape_cast %109 : vector<2x1x120xf32> to vector<2x120xf32>
    %111 = vector.extract_strided_slice %38 {offsets = [0, 15, 0], sizes = [2, 1, 120], strides = [1, 1, 1]} : vector<2x24x120xf32> to vector<2x1x120xf32>
    %112 = vector.shape_cast %111 : vector<2x1x120xf32> to vector<2x120xf32>
    %113 = arith.maximumf %110, %112 : vector<2x120xf32>
    %cst_51 = arith.constant 0.000000e+00 : f32
    %114 = vector.broadcast %cst_51 : f32 to vector<2x120xf32>
    %115 = arith.maximumf %113, %114 : vector<2x120xf32>
    %c0_52 = arith.constant 0 : index
    %c7 = arith.constant 7 : index
    %c0_53 = arith.constant 0 : index
    %116 = vector.load %arg15[%c0_52, %c7, %c0_53] : memref<2x12x120xf32, #tpu.memory_space<vmem>>, vector<2x1x120xf32>
    %117 = vector.shape_cast %116 : vector<2x1x120xf32> to vector<2x120xf32>
    %118 = vector.shape_cast %115 : vector<2x120xf32> to vector<2x1x120xf32>
    tpu.vector_store %arg15[%c0_52, %c7, %c0_53], %118 {strides = array<i32>} : memref<2x12x120xf32, #tpu.memory_space<vmem>>, vector<2x1x120xf32>,
    %119 = vector.extract_strided_slice %38 {offsets = [0, 16, 0], sizes = [2, 1, 120], strides = [1, 1, 1]} : vector<2x24x120xf32> to vector<2x1x120xf32>
    %120 = vector.shape_cast %119 : vector<2x1x120xf32> to vector<2x120xf32>
    %121 = vector.extract_strided_slice %38 {offsets = [0, 17, 0], sizes = [2, 1, 120], strides = [1, 1, 1]} : vector<2x24x120xf32> to vector<2x1x120xf32>
    %122 = vector.shape_cast %121 : vector<2x1x120xf32> to vector<2x120xf32>
    %123 = arith.maximumf %120, %122 : vector<2x120xf32>
    %cst_54 = arith.constant 0.000000e+00 : f32
    %124 = vector.broadcast %cst_54 : f32 to vector<2x120xf32>
    %125 = arith.maximumf %123, %124 : vector<2x120xf32>
    %c0_55 = arith.constant 0 : index
    %c8 = arith.constant 8 : index
    %c0_56 = arith.constant 0 : index
    %126 = vector.load %arg15[%c0_55, %c8, %c0_56] : memref<2x12x120xf32, #tpu.memory_space<vmem>>, vector<2x1x120xf32>
    %127 = vector.shape_cast %126 : vector<2x1x120xf32> to vector<2x120xf32>
    %128 = vector.shape_cast %125 : vector<2x120xf32> to vector<2x1x120xf32>
    tpu.vector_store %arg15[%c0_55, %c8, %c0_56], %128 {strides = array<i32>} : memref<2x12x120xf32, #tpu.memory_space<vmem>>, vector<2x1x120xf32>,
    %129 = vector.extract_strided_slice %38 {offsets = [0, 18, 0], sizes = [2, 1, 120], strides = [1, 1, 1]} : vector<2x24x120xf32> to vector<2x1x120xf32>
    %130 = vector.shape_cast %129 : vector<2x1x120xf32> to vector<2x120xf32>
    %131 = vector.extract_strided_slice %38 {offsets = [0, 19, 0], sizes = [2, 1, 120], strides = [1, 1, 1]} : vector<2x24x120xf32> to vector<2x1x120xf32>
    %132 = vector.shape_cast %131 : vector<2x1x120xf32> to vector<2x120xf32>
    %133 = arith.maximumf %130, %132 : vector<2x120xf32>
    %cst_57 = arith.constant 0.000000e+00 : f32
    %134 = vector.broadcast %cst_57 : f32 to vector<2x120xf32>
    %135 = arith.maximumf %133, %134 : vector<2x120xf32>
    %c0_58 = arith.constant 0 : index
    %c9 = arith.constant 9 : index
    %c0_59 = arith.constant 0 : index
    %136 = vector.load %arg15[%c0_58, %c9, %c0_59] : memref<2x12x120xf32, #tpu.memory_space<vmem>>, vector<2x1x120xf32>
    %137 = vector.shape_cast %136 : vector<2x1x120xf32> to vector<2x120xf32>
    %138 = vector.shape_cast %135 : vector<2x120xf32> to vector<2x1x120xf32>
    tpu.vector_store %arg15[%c0_58, %c9, %c0_59], %138 {strides = array<i32>} : memref<2x12x120xf32, #tpu.memory_space<vmem>>, vector<2x1x120xf32>,
    %139 = vector.extract_strided_slice %38 {offsets = [0, 20, 0], sizes = [2, 1, 120], strides = [1, 1, 1]} : vector<2x24x120xf32> to vector<2x1x120xf32>
    %140 = vector.shape_cast %139 : vector<2x1x120xf32> to vector<2x120xf32>
    %141 = vector.extract_strided_slice %38 {offsets = [0, 21, 0], sizes = [2, 1, 120], strides = [1, 1, 1]} : vector<2x24x120xf32> to vector<2x1x120xf32>
    %142 = vector.shape_cast %141 : vector<2x1x120xf32> to vector<2x120xf32>
    %143 = arith.maximumf %140, %142 : vector<2x120xf32>
    %cst_60 = arith.constant 0.000000e+00 : f32
    %144 = vector.broadcast %cst_60 : f32 to vector<2x120xf32>
    %145 = arith.maximumf %143, %144 : vector<2x120xf32>
    %c0_61 = arith.constant 0 : index
    %c10 = arith.constant 10 : index
    %c0_62 = arith.constant 0 : index
    %146 = vector.load %arg15[%c0_61, %c10, %c0_62] : memref<2x12x120xf32, #tpu.memory_space<vmem>>, vector<2x1x120xf32>
    %147 = vector.shape_cast %146 : vector<2x1x120xf32> to vector<2x120xf32>
    %148 = vector.shape_cast %145 : vector<2x120xf32> to vector<2x1x120xf32>
    tpu.vector_store %arg15[%c0_61, %c10, %c0_62], %148 {strides = array<i32>} : memref<2x12x120xf32, #tpu.memory_space<vmem>>, vector<2x1x120xf32>,
    %149 = vector.extract_strided_slice %38 {offsets = [0, 22, 0], sizes = [2, 1, 120], strides = [1, 1, 1]} : vector<2x24x120xf32> to vector<2x1x120xf32>
    %150 = vector.shape_cast %149 : vector<2x1x120xf32> to vector<2x120xf32>
    %151 = vector.extract_strided_slice %38 {offsets = [0, 23, 0], sizes = [2, 1, 120], strides = [1, 1, 1]} : vector<2x24x120xf32> to vector<2x1x120xf32>
    %152 = vector.shape_cast %151 : vector<2x1x120xf32> to vector<2x120xf32>
    %153 = arith.maximumf %150, %152 : vector<2x120xf32>
    %cst_63 = arith.constant 0.000000e+00 : f32
    %154 = vector.broadcast %cst_63 : f32 to vector<2x120xf32>
    %155 = arith.maximumf %153, %154 : vector<2x120xf32>
    %c0_64 = arith.constant 0 : index
    %c11 = arith.constant 11 : index
    %c0_65 = arith.constant 0 : index
    %156 = vector.load %arg15[%c0_64, %c11, %c0_65] : memref<2x12x120xf32, #tpu.memory_space<vmem>>, vector<2x1x120xf32>
    %157 = vector.shape_cast %156 : vector<2x1x120xf32> to vector<2x120xf32>
    %158 = vector.shape_cast %155 : vector<2x120xf32> to vector<2x1x120xf32>
    tpu.vector_store %arg15[%c0_64, %c11, %c0_65], %158 {strides = array<i32>} : memref<2x12x120xf32, #tpu.memory_space<vmem>>, vector<2x1x120xf32>,
    %c0_66 = arith.constant 0 : index
    %c0_67 = arith.constant 0 : index
    %c0_68 = arith.constant 0 : index
    %159 = vector.load %arg15[%c0_66, %c0_67, %c0_68] : memref<2x12x120xf32, #tpu.memory_space<vmem>>, vector<2x12x120xf32>
    %160 = vector.extract_strided_slice %159 {offsets = [0, 0, 0], sizes = [2, 8, 120], strides = [1, 1, 1]} : vector<2x12x120xf32> to vector<2x8x120xf32>
    %161 = vector.shape_cast %160 : vector<2x8x120xf32> to vector<16x120xf32>
    %c0_69 = arith.constant 0 : index
    %c0_70 = arith.constant 0 : index
    %c0_71 = arith.constant 0 : index
    %162 = vector.load %arg6[%c0_69, %c0_70, %c0_71] : memref<5x120x160xf32, #tpu.memory_space<vmem>>, vector<1x120x160xf32>
    %163 = vector.shape_cast %162 : vector<1x120x160xf32> to vector<120x160xf32>
    %cst_72 = arith.constant dense<0.000000e+00> : vector<16x160xf32>
    %164 = tpu.matmul %161, %163, %cst_72 {dimension_numbers = #tpu.dot_dimension_numbers<[1], [0], [0], [1], [0, 0, 1, 1], [], []>} : vector<16x120xf32>, vector<120x160xf32>, vector<16x160xf32> -> vector<16x160xf32>
    %165 = vector.extract_strided_slice %159 {offsets = [0, 1, 0], sizes = [2, 8, 120], strides = [1, 1, 1]} : vector<2x12x120xf32> to vector<2x8x120xf32>
    %166 = vector.shape_cast %165 : vector<2x8x120xf32> to vector<16x120xf32>
    %c1_73 = arith.constant 1 : index
    %c0_74 = arith.constant 0 : index
    %c0_75 = arith.constant 0 : index
    %167 = vector.load %arg6[%c1_73, %c0_74, %c0_75] : memref<5x120x160xf32, #tpu.memory_space<vmem>>, vector<1x120x160xf32>
    %168 = vector.shape_cast %167 : vector<1x120x160xf32> to vector<120x160xf32>
    %cst_76 = arith.constant dense<0.000000e+00> : vector<16x160xf32>
    %169 = tpu.matmul %166, %168, %cst_76 {dimension_numbers = #tpu.dot_dimension_numbers<[1], [0], [0], [1], [0, 0, 1, 1], [], []>} : vector<16x120xf32>, vector<120x160xf32>, vector<16x160xf32> -> vector<16x160xf32>
    %170 = arith.addf %164, %169 : vector<16x160xf32>
    %171 = vector.extract_strided_slice %159 {offsets = [0, 2, 0], sizes = [2, 8, 120], strides = [1, 1, 1]} : vector<2x12x120xf32> to vector<2x8x120xf32>
    %172 = vector.shape_cast %171 : vector<2x8x120xf32> to vector<16x120xf32>
    %c2_77 = arith.constant 2 : index
    %c0_78 = arith.constant 0 : index
    %c0_79 = arith.constant 0 : index
    %173 = vector.load %arg6[%c2_77, %c0_78, %c0_79] : memref<5x120x160xf32, #tpu.memory_space<vmem>>, vector<1x120x160xf32>
    %174 = vector.shape_cast %173 : vector<1x120x160xf32> to vector<120x160xf32>
    %cst_80 = arith.constant dense<0.000000e+00> : vector<16x160xf32>
    %175 = tpu.matmul %172, %174, %cst_80 {dimension_numbers = #tpu.dot_dimension_numbers<[1], [0], [0], [1], [0, 0, 1, 1], [], []>} : vector<16x120xf32>, vector<120x160xf32>, vector<16x160xf32> -> vector<16x160xf32>
    %176 = arith.addf %170, %175 : vector<16x160xf32>
    %177 = vector.extract_strided_slice %159 {offsets = [0, 3, 0], sizes = [2, 8, 120], strides = [1, 1, 1]} : vector<2x12x120xf32> to vector<2x8x120xf32>
    %178 = vector.shape_cast %177 : vector<2x8x120xf32> to vector<16x120xf32>
    %c3_81 = arith.constant 3 : index
    %c0_82 = arith.constant 0 : index
    %c0_83 = arith.constant 0 : index
    %179 = vector.load %arg6[%c3_81, %c0_82, %c0_83] : memref<5x120x160xf32, #tpu.memory_space<vmem>>, vector<1x120x160xf32>
    %180 = vector.shape_cast %179 : vector<1x120x160xf32> to vector<120x160xf32>
    %cst_84 = arith.constant dense<0.000000e+00> : vector<16x160xf32>
    %181 = tpu.matmul %178, %180, %cst_84 {dimension_numbers = #tpu.dot_dimension_numbers<[1], [0], [0], [1], [0, 0, 1, 1], [], []>} : vector<16x120xf32>, vector<120x160xf32>, vector<16x160xf32> -> vector<16x160xf32>
    %182 = arith.addf %176, %181 : vector<16x160xf32>
    %183 = vector.extract_strided_slice %159 {offsets = [0, 4, 0], sizes = [2, 8, 120], strides = [1, 1, 1]} : vector<2x12x120xf32> to vector<2x8x120xf32>
    %184 = vector.shape_cast %183 : vector<2x8x120xf32> to vector<16x120xf32>
    %c4_85 = arith.constant 4 : index
    %c0_86 = arith.constant 0 : index
    %c0_87 = arith.constant 0 : index
    %185 = vector.load %arg6[%c4_85, %c0_86, %c0_87] : memref<5x120x160xf32, #tpu.memory_space<vmem>>, vector<1x120x160xf32>
    %186 = vector.shape_cast %185 : vector<1x120x160xf32> to vector<120x160xf32>
    %cst_88 = arith.constant dense<0.000000e+00> : vector<16x160xf32>
    %187 = tpu.matmul %184, %186, %cst_88 {dimension_numbers = #tpu.dot_dimension_numbers<[1], [0], [0], [1], [0, 0, 1, 1], [], []>} : vector<16x120xf32>, vector<120x160xf32>, vector<16x160xf32> -> vector<16x160xf32>
    %188 = arith.addf %182, %187 : vector<16x160xf32>
    %c0_89 = arith.constant 0 : index
    %c0_90 = arith.constant 0 : index
    %189 = vector.load %arg7[%c0_89, %c0_90] : memref<1x160xf32, #tpu.memory_space<vmem>>, vector<1x160xf32>
    %190 = vector.broadcast %189 : vector<1x160xf32> to vector<16x160xf32>
    %191 = arith.addf %188, %190 : vector<16x160xf32>
    %c0_91 = arith.constant 0 : index
    %c0_92 = arith.constant 0 : index
    %192 = vector.load %arg8[%c0_91, %c0_92] : memref<160x80xf32, #tpu.memory_space<vmem>>, vector<160x80xf32>
    %cst_93 = arith.constant dense<0.000000e+00> : vector<16x80xf32>
    %193 = tpu.matmul %191, %192, %cst_93 {dimension_numbers = #tpu.dot_dimension_numbers<[1], [0], [0], [1], [0, 0, 1, 1], [], []>} : vector<16x160xf32>, vector<160x80xf32>, vector<16x80xf32> -> vector<16x80xf32>
    %c0_94 = arith.constant 0 : index
    %c0_95 = arith.constant 0 : index
    %194 = vector.load %arg9[%c0_94, %c0_95] : memref<160x80xf32, #tpu.memory_space<vmem>>, vector<160x80xf32>
    %cst_96 = arith.constant dense<0.000000e+00> : vector<16x80xf32>
    %195 = tpu.matmul %191, %194, %cst_96 {dimension_numbers = #tpu.dot_dimension_numbers<[1], [0], [0], [1], [0, 0, 1, 1], [], []>} : vector<16x160xf32>, vector<160x80xf32>, vector<16x80xf32> -> vector<16x80xf32>
    %196 = arith.maximumf %193, %195 : vector<16x80xf32>
    %197 = vector.shape_cast %196 : vector<16x80xf32> to vector<2x8x80xf32>
    %c0_97 = arith.constant 0 : index
    %c0_98 = arith.constant 0 : index
    %198 = vector.load %arg11[%c0_97, %c0_98] : memref<1x50xf32, #tpu.memory_space<vmem>>, vector<1x50xf32>
    %199 = vector.extract_strided_slice %197 {offsets = [0, 0, 0], sizes = [2, 1, 80], strides = [1, 1, 1]} : vector<2x8x80xf32> to vector<2x1x80xf32>
    %200 = vector.shape_cast %199 : vector<2x1x80xf32> to vector<2x80xf32>
    %201 = vector.extract_strided_slice %197 {offsets = [0, 1, 0], sizes = [2, 1, 80], strides = [1, 1, 1]} : vector<2x8x80xf32> to vector<2x1x80xf32>
    %202 = vector.shape_cast %201 : vector<2x1x80xf32> to vector<2x80xf32>
    %203 = arith.maximumf %200, %202 : vector<2x80xf32>
    %cst_99 = arith.constant 0.000000e+00 : f32
    %204 = vector.broadcast %cst_99 : f32 to vector<2x80xf32>
    %205 = arith.maximumf %203, %204 : vector<2x80xf32>
    %c0_100 = arith.constant 0 : index
    %c0_101 = arith.constant 0 : index
    %c0_102 = arith.constant 0 : index
    %206 = vector.load %arg10[%c0_100, %c0_101, %c0_102] : memref<4x80x50xf32, #tpu.memory_space<vmem>>, vector<1x80x50xf32>
    %207 = vector.shape_cast %206 : vector<1x80x50xf32> to vector<80x50xf32>
    %cst_103 = arith.constant dense<0.000000e+00> : vector<2x50xf32>
    %208 = tpu.matmul %205, %207, %cst_103 {dimension_numbers = #tpu.dot_dimension_numbers<[1], [0], [0], [1], [0, 0, 1, 1], [], []>} : vector<2x80xf32>, vector<80x50xf32>, vector<2x50xf32> -> vector<2x50xf32>
    %209 = vector.broadcast %198 : vector<1x50xf32> to vector<2x50xf32>
    %210 = arith.addf %209, %208 : vector<2x50xf32>
    %211 = vector.extract_strided_slice %197 {offsets = [0, 2, 0], sizes = [2, 1, 80], strides = [1, 1, 1]} : vector<2x8x80xf32> to vector<2x1x80xf32>
    %212 = vector.shape_cast %211 : vector<2x1x80xf32> to vector<2x80xf32>
    %213 = vector.extract_strided_slice %197 {offsets = [0, 3, 0], sizes = [2, 1, 80], strides = [1, 1, 1]} : vector<2x8x80xf32> to vector<2x1x80xf32>
    %214 = vector.shape_cast %213 : vector<2x1x80xf32> to vector<2x80xf32>
    %215 = arith.maximumf %212, %214 : vector<2x80xf32>
    %cst_104 = arith.constant 0.000000e+00 : f32
    %216 = vector.broadcast %cst_104 : f32 to vector<2x80xf32>
    %217 = arith.maximumf %215, %216 : vector<2x80xf32>
    %c1_105 = arith.constant 1 : index
    %c0_106 = arith.constant 0 : index
    %c0_107 = arith.constant 0 : index
    %218 = vector.load %arg10[%c1_105, %c0_106, %c0_107] : memref<4x80x50xf32, #tpu.memory_space<vmem>>, vector<1x80x50xf32>
    %219 = vector.shape_cast %218 : vector<1x80x50xf32> to vector<80x50xf32>
    %cst_108 = arith.constant dense<0.000000e+00> : vector<2x50xf32>
    %220 = tpu.matmul %217, %219, %cst_108 {dimension_numbers = #tpu.dot_dimension_numbers<[1], [0], [0], [1], [0, 0, 1, 1], [], []>} : vector<2x80xf32>, vector<80x50xf32>, vector<2x50xf32> -> vector<2x50xf32>
    %221 = arith.addf %210, %220 : vector<2x50xf32>
    %222 = vector.extract_strided_slice %197 {offsets = [0, 4, 0], sizes = [2, 1, 80], strides = [1, 1, 1]} : vector<2x8x80xf32> to vector<2x1x80xf32>
    %223 = vector.shape_cast %222 : vector<2x1x80xf32> to vector<2x80xf32>
    %224 = vector.extract_strided_slice %197 {offsets = [0, 5, 0], sizes = [2, 1, 80], strides = [1, 1, 1]} : vector<2x8x80xf32> to vector<2x1x80xf32>
    %225 = vector.shape_cast %224 : vector<2x1x80xf32> to vector<2x80xf32>
    %226 = arith.maximumf %223, %225 : vector<2x80xf32>
    %cst_109 = arith.constant 0.000000e+00 : f32
    %227 = vector.broadcast %cst_109 : f32 to vector<2x80xf32>
    %228 = arith.maximumf %226, %227 : vector<2x80xf32>
    %c2_110 = arith.constant 2 : index
    %c0_111 = arith.constant 0 : index
    %c0_112 = arith.constant 0 : index
    %229 = vector.load %arg10[%c2_110, %c0_111, %c0_112] : memref<4x80x50xf32, #tpu.memory_space<vmem>>, vector<1x80x50xf32>
    %230 = vector.shape_cast %229 : vector<1x80x50xf32> to vector<80x50xf32>
    %cst_113 = arith.constant dense<0.000000e+00> : vector<2x50xf32>
    %231 = tpu.matmul %228, %230, %cst_113 {dimension_numbers = #tpu.dot_dimension_numbers<[1], [0], [0], [1], [0, 0, 1, 1], [], []>} : vector<2x80xf32>, vector<80x50xf32>, vector<2x50xf32> -> vector<2x50xf32>
    %232 = arith.addf %221, %231 : vector<2x50xf32>
    %233 = vector.extract_strided_slice %197 {offsets = [0, 6, 0], sizes = [2, 1, 80], strides = [1, 1, 1]} : vector<2x8x80xf32> to vector<2x1x80xf32>
    %234 = vector.shape_cast %233 : vector<2x1x80xf32> to vector<2x80xf32>
    %235 = vector.extract_strided_slice %197 {offsets = [0, 7, 0], sizes = [2, 1, 80], strides = [1, 1, 1]} : vector<2x8x80xf32> to vector<2x1x80xf32>
    %236 = vector.shape_cast %235 : vector<2x1x80xf32> to vector<2x80xf32>
    %237 = arith.maximumf %234, %236 : vector<2x80xf32>
    %cst_114 = arith.constant 0.000000e+00 : f32
    %238 = vector.broadcast %cst_114 : f32 to vector<2x80xf32>
    %239 = arith.maximumf %237, %238 : vector<2x80xf32>
    %c3_115 = arith.constant 3 : index
    %c0_116 = arith.constant 0 : index
    %c0_117 = arith.constant 0 : index
    %240 = vector.load %arg10[%c3_115, %c0_116, %c0_117] : memref<4x80x50xf32, #tpu.memory_space<vmem>>, vector<1x80x50xf32>
    %241 = vector.shape_cast %240 : vector<1x80x50xf32> to vector<80x50xf32>
    %cst_118 = arith.constant dense<0.000000e+00> : vector<2x50xf32>
    %242 = tpu.matmul %239, %241, %cst_118 {dimension_numbers = #tpu.dot_dimension_numbers<[1], [0], [0], [1], [0, 0, 1, 1], [], []>} : vector<2x80xf32>, vector<80x50xf32>, vector<2x50xf32> -> vector<2x50xf32>
    %243 = arith.addf %232, %242 : vector<2x50xf32>
    %cst_119 = arith.constant 0.000000e+00 : f32
    %244 = vector.broadcast %cst_119 : f32 to vector<2x50xf32>
    %245 = arith.maximumf %243, %244 : vector<2x50xf32>
    %c0_120 = arith.constant 0 : index
    %c0_121 = arith.constant 0 : index
    %246 = vector.load %arg12[%c0_120, %c0_121] : memref<1x50xf32, #tpu.memory_space<vmem>>, vector<1x50xf32>
    %247 = vector.broadcast %246 : vector<1x50xf32> to vector<2x50xf32>
    %248 = arith.mulf %245, %247 : vector<2x50xf32>
    %cst_122 = arith.constant dense<0.000000e+00> : vector<2xf32>
    %249 = vector.multi_reduction <add>, %248, %cst_122 [1] : vector<2x50xf32> to vector<2xf32>
    %250 = vector.shape_cast %249 : vector<2xf32> to vector<2x1xf32>
    %c0_123 = arith.constant 0 : index
    %c0_124 = arith.constant 0 : index
    %251 = vector.load %arg13[%c0_123, %c0_124] : memref<1x1xf32, #tpu.memory_space<vmem>>, vector<1x1xf32>
    %252 = vector.broadcast %251 : vector<1x1xf32> to vector<2x1xf32>
    %253 = arith.addf %250, %252 : vector<2x1xf32>
    %254 = arith.negf %253 : vector<2x1xf32>
    %255 = math.exp %254 : vector<2x1xf32>
    %cst_125 = arith.constant 1.000000e+00 : f32
    %256 = vector.broadcast %cst_125 : f32 to vector<2x1xf32>
    %257 = arith.addf %256, %255 : vector<2x1xf32>
    %258 = arith.divf %256, %257 : vector<2x1xf32>
    %c0_126 = arith.constant 0 : index
    %c0_127 = arith.constant 0 : index
    %259 = vector.load %arg14[%c0_126, %c0_127] : memref<2x1xf32, #tpu.memory_space<vmem>>, vector<2x1xf32>
    tpu.vector_store %arg14[%c0_126, %c0_127], %258 {strides = array<i32>} : memref<2x1xf32, #tpu.memory_space<vmem>>, vector<2x1xf32>,
    return
  }
  func.func @transform_0(%arg0: i32) -> (i32, i32, i32) {
    %c0_i32 = arith.constant 0 : i32
    %c0_i32_0 = arith.constant 0 : i32
    %c0_i32_1 = arith.constant 0 : i32
    return %arg0, %c0_i32, %c0_i32_0 : i32, i32, i32
  }
  func.func @transform_1(%arg0: i32) -> (i32, i32, i32) {
    %c0_i32 = arith.constant 0 : i32
    %c0_i32_0 = arith.constant 0 : i32
    %c0_i32_1 = arith.constant 0 : i32
    %c0_i32_2 = arith.constant 0 : i32
    return %c0_i32, %c0_i32_0, %c0_i32_1 : i32, i32, i32
  }
  func.func @transform_2(%arg0: i32) -> (i32, i32) {
    %c0_i32 = arith.constant 0 : i32
    %c0_i32_0 = arith.constant 0 : i32
    %c0_i32_1 = arith.constant 0 : i32
    return %c0_i32, %c0_i32_0 : i32, i32
  }
  func.func @transform_3(%arg0: i32) -> (i32, i32) {
    %c0_i32 = arith.constant 0 : i32
    %c0_i32_0 = arith.constant 0 : i32
    %c0_i32_1 = arith.constant 0 : i32
    return %c0_i32, %c0_i32_0 : i32, i32
  }
  func.func @transform_4(%arg0: i32) -> (i32, i32) {
    %c0_i32 = arith.constant 0 : i32
    %c0_i32_0 = arith.constant 0 : i32
    %c0_i32_1 = arith.constant 0 : i32
    return %c0_i32, %c0_i32_0 : i32, i32
  }
  func.func @transform_5(%arg0: i32) -> (i32, i32, i32) {
    %c0_i32 = arith.constant 0 : i32
    %c0_i32_0 = arith.constant 0 : i32
    %c0_i32_1 = arith.constant 0 : i32
    %c0_i32_2 = arith.constant 0 : i32
    return %c0_i32, %c0_i32_0, %c0_i32_1 : i32, i32, i32
  }
  func.func @transform_6(%arg0: i32) -> (i32, i32) {
    %c0_i32 = arith.constant 0 : i32
    %c0_i32_0 = arith.constant 0 : i32
    %c0_i32_1 = arith.constant 0 : i32
    return %c0_i32, %c0_i32_0 : i32, i32
  }
  func.func @transform_7(%arg0: i32) -> (i32, i32) {
    %c0_i32 = arith.constant 0 : i32
    %c0_i32_0 = arith.constant 0 : i32
    %c0_i32_1 = arith.constant 0 : i32
    return %c0_i32, %c0_i32_0 : i32, i32
  }
  func.func @transform_8(%arg0: i32) -> (i32, i32) {
    %c0_i32 = arith.constant 0 : i32
    %c0_i32_0 = arith.constant 0 : i32
    %c0_i32_1 = arith.constant 0 : i32
    return %c0_i32, %c0_i32_0 : i32, i32
  }
  func.func @transform_9(%arg0: i32) -> (i32, i32, i32) {
    %c0_i32 = arith.constant 0 : i32
    %c0_i32_0 = arith.constant 0 : i32
    %c0_i32_1 = arith.constant 0 : i32
    %c0_i32_2 = arith.constant 0 : i32
    return %c0_i32, %c0_i32_0, %c0_i32_1 : i32, i32, i32
  }
  func.func @transform_10(%arg0: i32) -> (i32, i32) {
    %c0_i32 = arith.constant 0 : i32
    %c0_i32_0 = arith.constant 0 : i32
    %c0_i32_1 = arith.constant 0 : i32
    return %c0_i32, %c0_i32_0 : i32, i32
  }
  func.func @transform_11(%arg0: i32) -> (i32, i32) {
    %c0_i32 = arith.constant 0 : i32
    %c0_i32_0 = arith.constant 0 : i32
    %c0_i32_1 = arith.constant 0 : i32
    return %c0_i32, %c0_i32_0 : i32, i32
  }
  func.func @transform_12(%arg0: i32) -> (i32, i32) {
    %c0_i32 = arith.constant 0 : i32
    %c0_i32_0 = arith.constant 0 : i32
    %c0_i32_1 = arith.constant 0 : i32
    return %c0_i32, %c0_i32_0 : i32, i32
  }
  func.func @transform_13(%arg0: i32) -> (i32, i32) {
    %c0_i32 = arith.constant 0 : i32
    %c0_i32_0 = arith.constant 0 : i32
    return %arg0, %c0_i32 : i32, i32
  }
}

</mosaic_0001>

<bundles_post_ra>
// kernel: tile.13
= control target key start
LH: loop header
LB: loop body
LE: loop exit
PB: predicated region body
PF: predicated region fallthrough
CT: control target
= control target key end

     0   :  { %s34_s0 = inlined_call_operand.vmem [shape: f32[10], index: 0, kind: input, shape index: {}]   ;;  %s35_s1 = inlined_call_operand.vmem [shape: f32[24,10], index: 1, kind: output, shape index: {}]  }
   0x1   :  { %v4_v0 = vld [vmem:[%s34_s0] ss:$0 sm:$0xff] }
   0x2   :  { %5 = vst [vmem:[%s35_s1] sm:$0xff] %v4_v0  ;;  %10 = vst [vmem:[%s35_s1 + $0x8] sm:$0xff] %v4_v0 }
   0x3   :  { %11 = vst [vmem:[%s35_s1 + $0x10] sm:$0xff] %v4_v0 }

// kernel: tile.14
= control target key start
LH: loop header
LB: loop body
LE: loop exit
PB: predicated region body
PF: predicated region fallthrough
CT: control target
= control target key end

     0   :  { %vm9_vm0 = vcmask 64512   ;;  %s223_s12 = smov 120   ;;  %s224_s13 = smov 102   ;;  %vm3_vm1 = vcmask 80896   ;;  %vm13_vm2 = vcmask 15360   ;;  %vm16_vm3 = vcmask 1048512   ;;  %s337_s0 = inlined_call_operand.vmem [shape: f32[24,10], index: 0, kind: input, shape index: {}]   ;;  %s338_s1 = inlined_call_operand.vmem [shape: f32[1,240], index: 1, kind: output, shape index: {}]  }
   0x1   :  { %v175_v0 = vld [vmem:[%s337_s0 + $0xc] sm:$0x1]   ;;  %v178_v3 = vld [vmem:[%s337_s0 + $0x17] sm:$0x1]   ;;  %v177_v4 = vld [vmem:[%s337_s0 + $0xb] sm:$0x1]  }
   0x2   :  { %v176_v1 = vld [vmem:[%s337_s0 + $0xc] sm:$0x1]   ;;  %26 = vrot.lane.b32.xlu1 %v178_v3, %s224_s13  ;;  %v179_v5 = vld [vmem:[%s337_s0 + $0xa] sm:$0x1]   ;;  %s225_s18 = smov 110   ;;  %s226_s19 = smov 100  }
   0x3   :  { %v10_v2 = vsel %vm9_vm0, %v176_v1, %v175_v0  ;;  %v180_v6 = vld [vmem:[%s337_s0 + $0x16] sm:$0x1]   ;;  %v181_v7 = vld [vmem:[%s337_s0 + $0x9] sm:$0x1]   ;;  %s227_s24 = smov 92   ;;  %s228_s25 = smov 90  }
   0x4   :  { %11 = vrot.lane.b32.xlu0 %v10_v2, %s223_s12  ;;  %v182_v8 = vld [vmem:[%s337_s0 + $0x15] sm:$0x1]   ;;  %v183_v9 = vld [vmem:[%s337_s0 + $0x8] sm:$0x1]   ;;  %v2_v10 = vld [vmem:[%s337_s0] sm:$0x1]  }
   0x5   :  { %4 = vst.msk [vmem:[#allocation0] sm:$0x1] %vm3_vm1, %v2_v10   ;;  %s229_s3 = smov 82   ;;  %s230_s4 = smov 80   ;;  %v184_v11 = vld [vmem:[%s337_s0 + $0x14] sm:$0x1]  }
   0x6   :  { %33 = vrot.lane.b32.xlu1 %v179_v5, %s226_s19  ;;  %v185_v12 = vld [vmem:[%s337_s0 + $0x7] sm:$0x1]   ;;  %s231_s9 = smov 72   ;;  %s232_s10 = smov 70   ;;  %v186_v13 = vld [vmem:[%s337_s0 + $0x13] sm:$0x1]  }
   0x7   :  { %v187_v14 = vld [vmem:[%s337_s0 + $0x6] sm:$0x1]   ;;  %s233_s15 = smov 62   ;;  %s234_s16 = smov 60   ;;  %v188_v15 = vld [vmem:[%s337_s0 + $0x12] sm:$0x1]  }
   0x8   :  { %20 = vrot.lane.b32.xlu0 %v177_v4, %s225_s18  ;;  %v189_v16 = vld [vmem:[%s337_s0 + $0x5] sm:$0x1]   ;;  %s235_s21 = smov 52   ;;  %s236_s22 = smov 50   ;;  %v190_v17 = vld [vmem:[%s337_s0 + $0x11] sm:$0x1]  }
   0x9   :  { %v191_v18 = vld [vmem:[%s337_s0 + $0x4] sm:$0x1]   ;;  %s237_s27 = smov 42   ;;  %s238_s28 = smov 40   ;;  %v192_v19 = vld [vmem:[%s337_s0 + $0x10] sm:$0x1]  }
   0xa   :  { %46 = vrot.lane.b32.xlu1 %v181_v7, %s228_s25  ;;  %v193_v20 = vld [vmem:[%s337_s0 + $0x3] sm:$0x1]   ;;  %s240_s5 = smov 30   ;;  %v194_v21 = vld [vmem:[%s337_s0 + $0xf] sm:$0x1]   ;;  %s242_s11 = smov 20  }
   0xb   :  { %v195_v22 = vld [vmem:[%s337_s0 + $0x2] sm:$0x1]   ;;  %v196_v23 = vld [vmem:[%s337_s0 + $0xe] sm:$0x1]   ;;  %v197_v24 = vld [vmem:[%s337_s0 + $0x1] sm:$0x1]  }
   0xc   :  { %39 = vrot.lane.b32.xlu0 %v180_v6, %s227_s24  ;;  %s244_s17 = smov 10   ;;  %v198_v25 = vld [vmem:[%s337_s0 + $0xd] sm:$0x1]   ;;  %s245_s0 = smov 2   ;;  %vm28_vm4 = vcmask 917296   ;;  %vm22_vm5 = vcmask 982896  }
   0xd   :  { %vm35_vm6 = vcmask 900896   ;;  %vm41_vm7 = vcmask 835296   ;;  %vm48_vm8 = vcmask 818896   ;;  %vm54_vm9 = vcmask 753296  }
   0xe   :  { %59 = vrot.lane.b32.xlu1 %v183_v9, %s230_s4  ;;  %s239_s4 = smov 32   ;;  %vm61_vm10 = vcmask 736896   ;;  %vm67_vm11 = vcmask 671296   ;;  %vm74_vm12 = vcmask 654896   ;;  %vm80_vm13 = vcmask 589296  }
   0xf   :  { %vm87_vm14 = vcmask 572896   ;;  %vm93_vm15 = vcmask 507296   ;;  %vm100_vm0 = vcmask 490896   ;;  %vm106_vm1 = vcmask 425296  }
  0x10   :  { %52 = vrot.lane.b32.xlu0 %v182_v8, %s229_s3 }
  0x12   :  { %72 = vrot.lane.b32.xlu1 %v185_v12, %s232_s10  ;;  %s241_s10 = smov 22  }
  0x14   :  { %65 = vrot.lane.b32.xlu0 %v184_v11, %s231_s9 }
  0x16   :  { %85 = vrot.lane.b32.xlu1 %v187_v14, %s234_s16  ;;  %s243_s16 = smov 12  }
  0x18   :  { %78 = vrot.lane.b32.xlu0 %v186_v13, %s233_s15 }
  0x1a   :  { %98 = vrot.lane.b32.xlu1 %v189_v16, %s236_s22 }
  0x1c   :  { %91 = vrot.lane.b32.xlu0 %v188_v15, %s235_s21 }
  0x1e   :  { %111 = vrot.lane.b32.xlu1 %v191_v18, %s238_s28 }
  0x20   :  { %104 = vrot.lane.b32.xlu0 %v190_v17, %s237_s27 }
  0x22   :  { %124 = vrot.lane.b32.xlu1 %v193_v20, %s240_s5 }
  0x24   :  { %117 = vrot.lane.b32.xlu0 %v192_v19, %s239_s4 }
  0x26   :  { %137 = vrot.lane.b32.xlu1 %v195_v22, %s242_s11 }
  0x28   :  { %130 = vrot.lane.b32.xlu0 %v194_v21, %s241_s10 }
  0x2a   :  { %150 = vrot.lane.b32.xlu1 %v197_v24, %s244_s17 }
  0x2c   :  { %143 = vrot.lane.b32.xlu0 %v196_v23, %s243_s16 }
  0x30   :  { %156 = vrot.lane.b32.xlu0 %v198_v25, %s245_s0 }
  0x74   :  { %v27_v27 = vpop.permute.xlu1 %26  }
  0x76   :  { %v12_v26 = vpop.permute.xlu0 %11  }
  0x77   :  { %15 = vst.msk [vmem:[#allocation0 + $0x8] sm:$0x1] %vm13_vm2, %v12_v26   ;;  %vm113_vm2 = vcmask 408896  }
  0x78   :  { %17 = vst.msk [vmem:[#allocation0] sm:$0x1] %vm16_vm3, %v12_v26   ;;  %v34_v29 = vpop.permute.xlu1 %33   ;;  %vm119_vm3 = vcmask 343296  }
  0x79   :  { %30 = vst.msk [vmem:[#allocation0 + $0x8] sm:$0x1] %vm28_vm4, %v27_v27   ;;  %vm126_vm4 = vcmask 326896  }
  0x7a   :  { %v21_v28 = vpop.permute.xlu0 %20  }
  0x7b   :  { %23 = vst.msk [vmem:[#allocation0] sm:$0x1] %vm22_vm5, %v21_v28   ;;  %vm132_vm5 = vcmask 261296  }
  0x7c   :  { %36 = vst.msk [vmem:[#allocation0] sm:$0x1] %vm35_vm6, %v34_v29   ;;  %v47_v31 = vpop.permute.xlu1 %46   ;;  %vm139_vm6 = vcmask 244896  }
  0x7d   :  { %49 = vst.msk [vmem:[#allocation0] sm:$0x1] %vm48_vm8, %v47_v31   ;;  %vm152_vm8 = vcmask 162896  }
  0x7e   :  { %v40_v30 = vpop.permute.xlu0 %39  }
  0x7f   :  { %43 = vst.msk [vmem:[#allocation0 + $0x8] sm:$0x1] %vm41_vm7, %v40_v30   ;;  %vm145_vm7 = vcmask 179296  }
  0x80   :  { %v60_v33 = vpop.permute.xlu1 %59  }
  0x81   :  { %62 = vst.msk [vmem:[#allocation0] sm:$0x1] %vm61_vm10, %v60_v33  }
  0x82   :  { %v53_v32 = vpop.permute.xlu0 %52  }
  0x83   :  { %56 = vst.msk [vmem:[#allocation0 + $0x8] sm:$0x1] %vm54_vm9, %v53_v32   ;;  %vm158_vm9 = vcmask 97296  }
  0x84   :  { %v73_v35 = vpop.permute.xlu1 %72  }
  0x85   :  { %75 = vst.msk [vmem:[#allocation0] sm:$0x1] %vm74_vm12, %v73_v35  }
  0x86   :  { %v66_v34 = vpop.permute.xlu0 %65  }
  0x87   :  { %69 = vst.msk [vmem:[#allocation0 + $0x8] sm:$0x1] %vm67_vm11, %v66_v34  }
  0x88   :  { %v86_v37 = vpop.permute.xlu1 %85  }
  0x89   :  { %88 = vst.msk [vmem:[#allocation0] sm:$0x1] %vm87_vm14, %v86_v37  }
  0x8a   :  { %v79_v36 = vpop.permute.xlu0 %78  }
  0x8b   :  { %82 = vst.msk [vmem:[#allocation0 + $0x8] sm:$0x1] %vm80_vm13, %v79_v36  }
  0x8c   :  { %v99_v39 = vpop.permute.xlu1 %98  }
  0x8d   :  { %101 = vst.msk [vmem:[#allocation0] sm:$0x1] %vm100_vm0, %v99_v39  }
  0x8e   :  { %v92_v38 = vpop.permute.xlu0 %91  }
  0x8f   :  { %95 = vst.msk [vmem:[#allocation0 + $0x8] sm:$0x1] %vm93_vm15, %v92_v38  }
  0x90   :  { %v112_v41 = vpop.permute.xlu1 %111  }
  0x91   :  { %114 = vst.msk [vmem:[#allocation0] sm:$0x1] %vm113_vm2, %v112_v41  }
  0x92   :  { %v105_v40 = vpop.permute.xlu0 %104  }
  0x93   :  { %108 = vst.msk [vmem:[#allocation0 + $0x8] sm:$0x1] %vm106_vm1, %v105_v40  }
  0x94   :  { %v125_v43 = vpop.permute.xlu1 %124  }
  0x95   :  { %127 = vst.msk [vmem:[#allocation0] sm:$0x1] %vm126_vm4, %v125_v43  }
  0x96   :  { %v118_v42 = vpop.permute.xlu0 %117  }
  0x97   :  { %121 = vst.msk [vmem:[#allocation0 + $0x8] sm:$0x1] %vm119_vm3, %v118_v42  }
  0x98   :  { %v138_v45 = vpop.permute.xlu1 %137  }
  0x99   :  { %140 = vst.msk [vmem:[#allocation0] sm:$0x1] %vm139_vm6, %v138_v45  }
  0x9a   :  { %v131_v44 = vpop.permute.xlu0 %130  }
  0x9b   :  { %134 = vst.msk [vmem:[#allocation0 + $0x8] sm:$0x1] %vm132_vm5, %v131_v44  }
  0x9c   :  { %v151_v47 = vpop.permute.xlu1 %150  }
  0x9d   :  { %153 = vst.msk [vmem:[#allocation0] sm:$0x1] %vm152_vm8, %v151_v47  }
  0x9e   :  { %v144_v46 = vpop.permute.xlu0 %143  }
  0x9f   :  { %147 = vst.msk [vmem:[#allocation0 + $0x8] sm:$0x1] %vm145_vm7, %v144_v46  }
  0xa2   :  { %v157_v48 = vpop.permute.xlu0 %156  }
  0xa3   :  { %160 = vst.msk [vmem:[#allocation0 + $0x8] sm:$0x1] %vm158_vm9, %v157_v48  }
  0xa4   :  { %v165_v49 = vld [vmem:[#allocation0] sm:$0x1] }
  0xa5   :  { %168 = vst [vmem:[%s338_s1] sm:$0x1] %v165_v49 }
  0xaa   :  { %v170_v50 = vld [vmem:[#allocation0 + $0x8] sm:$0x1] }
  0xab   :  { %199 = vst [vmem:[%s338_s1 + $0x1] sm:$0x1] %v170_v50 }

// kernel: tile.18
= control target key start
LH: loop header
LB: loop body
LE: loop exit
PB: predicated region body
PF: predicated region fallthrough
CT: control target
= control target key end

     0   :  { %s22_s0 = inlined_call_operand.vmem [shape: f32[20], index: 0, kind: input, shape index: {}]   ;;  %s23_s1 = inlined_call_operand.vmem [shape: f32[8,20], index: 1, kind: output, shape index: {}]  }
   0x1   :  { %v4_v0 = vld [vmem:[%s22_s0] ss:$0 sm:$0xff] }
   0x2   :  { %5 = vst [vmem:[%s23_s1] sm:$0xff] %v4_v0 }

// kernel: tile.19
= control target key start
LH: loop header
LB: loop body
LE: loop exit
PB: predicated region body
PF: predicated region fallthrough
CT: control target
= control target key end

     0   :  { %vm9_vm0 = vcmask 64512   ;;  %s85_s12 = smov 120   ;;  %s86_s13 = smov 80   ;;  %vm3_vm1 = vcmask 162816   ;;  %vm13_vm2 = vcmask 97280   ;;  %vm16_vm3 = vcmask 1048512   ;;  %s135_s0 = inlined_call_operand.vmem [shape: f32[8,20], index: 0, kind: input, shape index: {}]   ;;  %s136_s1 = inlined_call_operand.vmem [shape: f32[1,160], index: 1, kind: output, shape index: {}]  }
   0x1   :  { %v69_v0 = vld [vmem:[%s135_s0 + $0x6] sm:$0x1]   ;;  %v72_v3 = vld [vmem:[%s135_s0 + $0x4] sm:$0x1]   ;;  %v71_v4 = vld [vmem:[%s135_s0 + $0x5] sm:$0x1]  }
   0x2   :  { %v70_v1 = vld [vmem:[%s135_s0 + $0x6] sm:$0x1]   ;;  %26 = vrot.lane.b32.xlu1 %v72_v3, %s86_s13  ;;  %v73_v5 = vld [vmem:[%s135_s0 + $0x3] sm:$0x1]   ;;  %v2_v6 = vld [vmem:[%s135_s0] sm:$0x1]  }
   0x3   :  { %v10_v2 = vsel %vm9_vm0, %v70_v1, %v69_v0  ;;  %4 = vst.msk [vmem:[#allocation0] sm:$0x1] %vm3_vm1, %v2_v6   ;;  %s87_s20 = smov 100   ;;  %s88_s21 = smov 60   ;;  %v74_v7 = vld [vmem:[%s135_s0 + $0x2] sm:$0x1]  }
   0x4   :  { %11 = vrot.lane.b32.xlu0 %v10_v2, %s85_s12  ;;  %v75_v8 = vld [vmem:[%s135_s0 + $0x1] sm:$0x1]   ;;  %s89_s26 = smov 40   ;;  %s90_s27 = smov 20   ;;  %v76_v9 = vld [vmem:[%s135_s0 + $0x7] sm:$0x1]  }
   0x5   :  { %s91_s0 = smov 12   ;;  %vm22_vm4 = vcmask 982816   ;;  %vm28_vm5 = vcmask 818816   ;;  %vm34_vm6 = vcmask 654816   ;;  %vm40_vm7 = vcmask 490816  }
   0x6   :  { %32 = vrot.lane.b32.xlu1 %v73_v5, %s88_s21  ;;  %vm46_vm8 = vcmask 326816   ;;  %vm52_vm9 = vcmask 261216  }
   0x8   :  { %20 = vrot.lane.b32.xlu0 %v71_v4, %s87_s20 }
   0xa   :  { %44 = vrot.lane.b32.xlu1 %v75_v8, %s90_s27 }
   0xc   :  { %38 = vrot.lane.b32.xlu0 %v74_v7, %s89_s26 }
  0x10   :  { %50 = vrot.lane.b32.xlu0 %v76_v9, %s91_s0 }
  0x74   :  { %v27_v11 = vpop.permute.xlu1 %26  }
  0x76   :  { %v12_v10 = vpop.permute.xlu0 %11  }
  0x77   :  { %15 = vst.msk [vmem:[#allocation0 + $0x8] sm:$0x1] %vm13_vm2, %v12_v10  }
  0x78   :  { %17 = vst.msk [vmem:[#allocation0] sm:$0x1] %vm16_vm3, %v12_v10   ;;  %v33_v13 = vpop.permute.xlu1 %32  }
  0x7a   :  { %v21_v12 = vpop.permute.xlu0 %20  }
  0x7b   :  { %23 = vst.msk [vmem:[#allocation0] sm:$0x1] %vm22_vm4, %v21_v12  }
  0x7c   :  { %29 = vst.msk [vmem:[#allocation0] sm:$0x1] %vm28_vm5, %v27_v11   ;;  %v45_v15 = vpop.permute.xlu1 %44  }
  0x7d   :  { %35 = vst.msk [vmem:[#allocation0] sm:$0x1] %vm34_vm6, %v33_v13  }
  0x7e   :  { %v39_v14 = vpop.permute.xlu0 %38  }
  0x7f   :  { %41 = vst.msk [vmem:[#allocation0] sm:$0x1] %vm40_vm7, %v39_v14  }
  0x80   :  { %47 = vst.msk [vmem:[#allocation0] sm:$0x1] %vm46_vm8, %v45_v15  }
  0x82   :  { %v51_v16 = vpop.permute.xlu0 %50  }
  0x83   :  { %54 = vst.msk [vmem:[#allocation0 + $0x8] sm:$0x1] %vm52_vm9, %v51_v16  }
  0x87   :  { %v59_v17 = vld [vmem:[#allocation0] sm:$0x1] }
  0x88   :  { %62 = vst [vmem:[%s136_s1] sm:$0x1] %v59_v17 }
  0x8a   :  { %v64_v18 = vld [vmem:[#allocation0 + $0x8] sm:$0x1] }
  0x8b   :  { %77 = vst [vmem:[%s136_s1 + $0x1] sm:$0x1] %v64_v18 }

// kernel: discriminator_forward.1
= control target key start
LH: loop header
LB: loop body
LE: loop exit
PB: predicated region body
PF: predicated region fallthrough
CT: control target
= control target key end

     0   :  { %vm107_vm0 = vcmask 1043456   ;;  %v2772_v3 = vmov 0.0   ;;  %vm70_vm1 = vcmask 1046528   ;;  %vm94_vm2 = vcmask 228352   ;;  %s4359_s1 = inlined_call_operand.vmem [shape: f32[5,28,240], index: 1, kind: input, shape index: {}]   ;;  %s4360_s0 = inlined_call_operand.vmem [shape: f32[2,28,28], index: 0, kind: input, shape index: {}]   ;;  %s4361_s3 = inlined_call_operand.vmem [shape: f32[240,120], index: 3, kind: input, shape index: {}]   ;;  %s4362_s4 = inlined_call_operand.vmem [shape: f32[240,120], index: 4, kind: input, shape index: {}]   ;;  %s4363_s5 = inlined_call_operand.vmem [shape: f32[5,120,160], index: 5, kind: input, shape index: {}]   ;;  %s4364_s2 = inlined_call_operand.vmem [shape: f32[1,240], index: 2, kind: input, shape index: {}]   ;;  %s4365_s7 = inlined_call_operand.vmem [shape: f32[160,80], index: 7, kind: input, shape index: {}]   ;;  %s4366_s8 = inlined_call_operand.vmem [shape: f32[160,80], index: 8, kind: input, shape index: {}]   ;;  %s4367_s6 = inlined_call_operand.vmem [shape: f32[1,160], index: 6, kind: input, shape index: {}]   ;;  %s4368_s9 = inlined_call_operand.vmem [shape: f32[4,80,50], index: 9, kind: input, shape index: {}]   ;;  %s4369_s12 = inlined_call_operand.<no memory space> [shape: f32[1,1], index: 12, kind: input, shape index: {}]   ;;  %s4370_s10 = inlined_call_operand.vmem [shape: f32[1,50], index: 10, kind: input, shape index: {}]   ;;  %s4371_s11 = inlined_call_operand.vmem [shape: f32[1,50], index: 11, kind: input, shape index: {}]   ;;  %s4372_s13 = inlined_call_operand.vmem [shape: f32[2,1], index: 13, kind: output, shape index: {}]  }
   0x1   :  { %v2381_v0 = vld [vmem:[%s4359_s1 + $0x78] sm:$0xf]  ;;  %v2380_v2 = vld [vmem:[%s4359_s1 + $0x70] sm:$0xf]  ;;  %178 = vmatprep.mubr.f32.mxu0 %v2772_v3  ;;  %297 = vmatprep.mubr.f32.mxu1 %v2772_v3  ;;  %v2379_v5 = vld [vmem:[%s4359_s1 + $0x68] sm:$0xff]  ;;  %vm334_vm3 = vcmask 1045504  }
   0x2   :  { %v61_v1 = vld [vmem:[%s4359_s1 + $0x38] sm:$0xf]  ;;  %2382 = vmatprep.subr.msk.mxu0 %vm107_vm0, %v2381_v0  ;;  %v60_v4 = vld [vmem:[%s4359_s1 + $0x30] sm:$0xf]  ;;  %v59_v6 = vld [vmem:[%s4359_s1 + $0x28] sm:$0xff]  ;;  %vm489_vm4 = vcmask 1044480  }
   0x3   :  { %2390 = vmatprep.subr.msk.mxu1 %vm107_vm0, %v61_v1  ;;  %2383 = vmatpush1.msk.msra.mxu0 %vm107_vm0, %v2380_v2  ;;  %v2378_v7 = vld [vmem:[%s4359_s1 + $0x60] sm:$0xff]  ;;  %v2377_v9 = vld [vmem:[%s4359_s1 + $0x58] sm:$0xff]  ;;  %v2376_v11 = vld [vmem:[%s4359_s1 + $0x50] sm:$0xff]  ;;  %vm852_vm5 = vcmask 916480   ;;  %vm1107_vm6 = vcmask 974848   ;;  %vm1110_vm7 = vcmask 976898  }
   0x4   :  { %2391 = vmatpush1.msk.msra.mxu1 %vm107_vm0, %v60_v4  ;;  %v58_v8 = vld [vmem:[%s4359_s1 + $0x20] sm:$0xff]  ;;  %140 = vmatprep.subr.mxu0 %v2379_v5  ;;  %v57_v10 = vld [vmem:[%s4359_s1 + $0x18] sm:$0xff]  ;;  %v56_v12 = vld [vmem:[%s4359_s1 + $0x10] sm:$0xff]  ;;  %vm1113_vm8 = vcmask 978948   ;;  %vm1116_vm9 = vcmask 980998   ;;  %vm1230_vm10 = vcmask 982016  }
   0x5   :  { %259 = vmatprep.subr.mxu1 %v59_v6  ;;  %141 = vmatpush1.msra.mxu0 %v2378_v7  ;;  %v2375_v13 = vld [vmem:[%s4359_s1 + $0x48] sm:$0xff]  ;;  %v2374_v15 = vld [vmem:[%s4359_s1 + $0x40] sm:$0xff]  ;;  %v2405_v21 = vld [vmem:[%s4359_s1 + $0xb8] sm:$0xf]  ;;  %vm1795_vm11 = vcmask 261120   ;;  %vm2773_vm12 = vmmov 0  }
   0x6   :  { %260 = vmatpush1.msra.mxu1 %v58_v8  ;;  %v55_v14 = vld [vmem:[%s4359_s1 + $0x8] sm:$0xff]  ;;  %142 = vmatprep.subr.mxu0 %v2377_v9  ;;  %v54_v16 = vld [vmem:[%s4359_s1] sm:$0xff]  ;;  %v2916_v22 = vld [vmem:[%s4360_s0 + $0x10] sm:$0xff]  ;;  %vm1998_vm13 = vcmask 1041409   ;;  %vm2000_vm14 = vcmask 654336   ;;  %vm2350_vm15 = vcmask 402432  }
   0x7   :  { %261 = vmatprep.subr.mxu1 %v57_v10  ;;  %v2901_v17 = vld [vmem:[%s4360_s0] sm:$0xff]  ;;  %v2906_v18 = vld [vmem:[%s4360_s0 + $0x8] sm:$0xff]  ;;  %143 = vmatpush1.msra.mxu0 %v2376_v11  ;;  %v2404_v24 = vld [vmem:[%s4359_s1 + $0xb0] sm:$0xf]  ;;  %v74_v25 = vrot.slane %v2916_v22, 1  ;;  %v338_v62 = vrot.slane %v2916_v22, 2 }
   0x8   :  { %262 = vmatpush1.msra.mxu1 %v56_v12  ;;  %v71_v19 = vrot.slane %v2901_v17, 1  ;;  %v72_v20 = vrot.slane %v2906_v18, 1  ;;  %144 = vmatprep.subr.mxu0 %v2375_v13  ;;  %v2926_v26 = vld [vmem:[%s4360_s0 + $0x18] sm:$0xf]  ;;  %v2403_v27 = vld [vmem:[%s4359_s1 + $0xa8] sm:$0xff]  ;;  %v2946_v31 = vld [vmem:[%s4360_s0 + $0x20] sm:$0xff] }
   0x9   :  { %263 = vmatprep.subr.mxu1 %v55_v14  ;;  %145 = vmatpush1.msra.mxu0 %v2374_v15  ;;  %v76_v29 = vrot.slane %v2926_v26, 1  ;;  %v2421_v30 = vld [vmem:[%s4359_s1 + $0xf8] sm:$0xf]  ;;  %v2951_v32 = vld [vmem:[%s4360_s0 + $0x28] sm:$0xff]  ;;  %v2402_v33 = vld [vmem:[%s4359_s1 + $0xa0] sm:$0xff]  ;;  %v78_v38 = vrot.slane %v2946_v31, 1 }
   0xa   :  { %264 = vmatpush1.msra.mxu1 %v54_v16  ;;  %v73_v23 = vsel %vm70_vm1, %v71_v19, %v72_v20  ;;  %2406 = vmatprep.subr.msk.mxu0 %vm107_vm0, %v2405_v21  ;;  %v75_v28 = vsel %vm70_vm1, %v72_v20, %v74_v25  ;;  %v2420_v34 = vld [vmem:[%s4359_s1 + $0xf0] sm:$0xf]  ;;  %v2401_v35 = vld [vmem:[%s4359_s1 + $0x98] sm:$0xff]  ;;  %v2419_v36 = vld [vmem:[%s4359_s1 + $0xe8] sm:$0xff]  ;;  %v79_v39 = vrot.slane %v2951_v32, 1  ;;  %v335_v55 = vrot.slane %v2901_v17, 2 }
   0xb   :  { %2384 = vmatmul.mubr.msk.f32.vlgmr.msra.gmra.mxu0 %vm94_vm2, %v73_v23  ;;  %2392 = vmatmul.mubr.msk.f32.vlgmr.msra.gmra.mxu1 %vm94_vm2, %v2901_v17  ;;  %v77_v37 = vsel %vm70_vm1, %v74_v25, %v76_v29  ;;  %v2977_v40 = vld [vmem:[%s4360_s0 + $0x30] sm:$0xff]  ;;  %v2418_v42 = vld [vmem:[%s4359_s1 + $0xe0] sm:$0xff]  ;;  %v2399_v43 = vld [vmem:[%s4359_s1 + $0x88] sm:$0xff]  ;;  %v336_v57 = vrot.slane %v2906_v18, 2  ;;  %v490_v58 = vrot.slane %v2901_v17, 3  ;;  %v491_v59 = vrot.slane %v2906_v18, 3 }
   0xc   :  { %184 = vmatprep.mubr.f32.mxu0 %v2772_v3  ;;  %2407 = vmatpush1.msk.msra.mxu0 %vm107_vm0, %v2404_v24  ;;  %v2400_v41 = vld [vmem:[%s4359_s1 + $0x90] sm:$0xff]  ;;  %v2417_v44 = vld [vmem:[%s4359_s1 + $0xd8] sm:$0xff]  ;;  %v80_v45 = vsel %vm70_vm1, %v78_v38, %v79_v39  ;;  %v81_v46 = vrot.slane %v2977_v40, 1  ;;  %v2398_v48 = vld [vmem:[%s4359_s1 + $0x80] sm:$0xff]  ;;  %v493_v63 = vrot.slane %v2916_v22, 3  ;;  %v340_v4 = vrot.slane %v2926_v26, 2 }
   0xd   :  { %303 = vmatprep.mubr.f32.mxu1 %v2772_v3  ;;  %402 = vmatprep.subr.mxu0 %v2403_v27  ;;  %v3002_v47 = vld [vmem:[%s4360_s0 + $0x38] sm:$0xf]  ;;  %v2416_v49 = vld [vmem:[%s4359_s1 + $0xd0] sm:$0xff]  ;;  %v2415_v50 = vld [vmem:[%s4359_s1 + $0xc8] sm:$0xff]  ;;  %v337_v60 = vsel %vm334_vm3, %v335_v55, %v336_v57  ;;  %v492_v61 = vsel %vm489_vm4, %v490_v58, %v491_v59  ;;  %v339_v6 = vsel %vm334_vm3, %v336_v57, %v338_v62  ;;  %v495_v8 = vrot.slane %v2926_v26, 3 }
   0xe   :  { %2422 = vmatprep.subr.msk.mxu1 %vm107_vm0, %v2421_v30  ;;  %403 = vmatpush1.msra.mxu0 %v2402_v33  ;;  %v2437_v51 = vld [vmem:[%s4359_s1 + $0x138] sm:$0xf]  ;;  %v82_v52 = vsel %vm70_vm1, %v79_v39, %v81_v46  ;;  %v83_v53 = vrot.slane %v3002_v47, 1  ;;  %v2414_v54 = vld [vmem:[%s4359_s1 + $0xc0] sm:$0xff]  ;;  %v2436_v0 = vld [vmem:[%s4359_s1 + $0x130] sm:$0xf]  ;;  %v494_v7 = vsel %vm489_vm4, %v491_v59, %v493_v63  ;;  %v341_v10 = vsel %vm334_vm3, %v338_v62, %v340_v4 }
   0xf   :  { %2385 = vmatmul.mubr.msk.f32.gmra.mxu0 %vm94_vm2, %v75_v28  ;;  %2393 = vmatmul.mubr.msk.f32.gmra.mxu1 %vm94_vm2, %v2906_v18  ;;  %v2435_v1 = vld [vmem:[%s4359_s1 + $0x128] sm:$0xff]  ;;  %v2434_v2 = vld [vmem:[%s4359_s1 + $0x120] sm:$0xff]  ;;  %v837_v5 = vld [vmem:[%s4361_s3 + $0x78] sm:$0xff]  ;;  %v342_v11 = vrot.slane %v2946_v31, 2  ;;  %v496_v14 = vsel %vm489_vm4, %v493_v63, %v495_v8  ;;  %v343_v15 = vrot.slane %v2951_v32, 2  ;;  %v497_v16 = vrot.slane %v2946_v31, 3 }
  0x10   :  { %190 = vmatprep.mubr.f32.mxu0 %v2772_v3  ;;  %309 = vmatprep.mubr.f32.mxu1 %v2772_v3  ;;  %v84_v56 = vsel %vm70_vm1, %v81_v46, %v83_v53  ;;  %v2433_v9 = vld [vmem:[%s4359_s1 + $0x118] sm:$0xff]  ;;  %v2432_v12 = vld [vmem:[%s4359_s1 + $0x110] sm:$0xff]  ;;  %v498_v19 = vrot.slane %v2951_v32, 3  ;;  %v2431_v20 = vld [vmem:[%s4359_s1 + $0x108] sm:$0xff]  ;;  %v345_v25 = vrot.slane %v2977_v40, 2  ;;  %v500_v27 = vrot.slane %v2977_v40, 3 }
  0x11   :  { %2423 = vmatpush1.msk.msra.mxu1 %vm107_vm0, %v2420_v34  ;;  %404 = vmatprep.subr.mxu0 %v2401_v35  ;;  %v836_v13 = vld [vmem:[%s4361_s3 + $0x70] sm:$0xff]  ;;  %v2430_v21 = vld [vmem:[%s4359_s1 + $0x100] sm:$0xff]  ;;  %v344_v23 = vsel %vm334_vm3, %v342_v11, %v343_v15  ;;  %v347_v30 = vrot.slane %v3002_v47, 2  ;;  %v502_v33 = vrot.slane %v3002_v47, 3  ;;  %v647_v39 = vrot.slane %v2916_v22, 4  ;;  %v975_v55 = vld [vmem:[%s4362_s4 + $0x48] sm:$0xff] }
  0x12   :  { %557 = vmatprep.subr.mxu1 %v2419_v36  ;;  %405 = vmatpush1.msra.mxu0 %v2400_v41  ;;  %v499_v24 = vsel %vm489_vm4, %v497_v16, %v498_v19  ;;  %v346_v28 = vsel %vm334_vm3, %v343_v15, %v345_v25  ;;  %v501_v29 = vsel %vm489_vm4, %v498_v19, %v500_v27  ;;  %v644_v36 = vrot.slane %v2901_v17, 4  ;;  %v981_v41 = vld [vmem:[%s4362_s4 + $0x78] sm:$0xff]  ;;  %v980_v17 = vld [vmem:[%s4362_s4 + $0x70] sm:$0xff]  ;;  %v974_v57 = vld [vmem:[%s4362_s4 + $0x40] sm:$0xff] }
  0x13   :  { %2386 = vmatmul.mubr.msk.f32.gmra.mxu0 %vm94_vm2, %v77_v37  ;;  %2394 = vmatmul.mubr.msk.f32.gmra.mxu1 %vm94_vm2, %v2916_v22  ;;  %v348_v34 = vsel %vm334_vm3, %v345_v25, %v347_v30  ;;  %v503_v35 = vsel %vm489_vm4, %v500_v27, %v502_v33  ;;  %v645_v37 = vrot.slane %v2906_v18, 4  ;;  %v976_v53 = vld [vmem:[%s4362_s4 + $0x50] sm:$0xff]  ;;  %v829_v58 = vld [vmem:[%s4361_s3 + $0x38] sm:$0xff]  ;;  %v827_v62 = vld [vmem:[%s4361_s3 + $0x28] sm:$0xff] }
  0x14   :  { %196 = vmatprep.mubr.f32.mxu0 %v2772_v3  ;;  %315 = vmatprep.mubr.f32.mxu1 %v2772_v3  ;;  %v973_v59 = vld [vmem:[%s4362_s4 + $0x38] sm:$0xff]  ;;  %v971_v63 = vld [vmem:[%s4362_s4 + $0x28] sm:$0xff]  ;;  %v848_v19 = vld [vmem:[%s4361_s3 + $0xd0] sm:$0xff] }
  0x15   :  { %558 = vmatpush1.msra.mxu1 %v2418_v42  ;;  %406 = vmatprep.subr.mxu0 %v2399_v43  ;;  %v646_v38 = vsel %vm107_vm0, %v644_v36, %v645_v37  ;;  %v648_v18 = vsel %vm107_vm0, %v645_v37, %v647_v39  ;;  %v649_v42 = vrot.slane %v2926_v26, 4  ;;  %v651_v43 = vrot.slane %v2946_v31, 4  ;;  %v969_v4 = vld [vmem:[%s4362_s4 + $0x18] sm:$0xff]  ;;  %v967_v8 = vld [vmem:[%s4362_s4 + $0x8] sm:$0xff]  ;;  %v990_v25 = vld [vmem:[%s4362_s4 + $0xc0] sm:$0xff] }
  0x16   :  { %559 = vmatprep.subr.mxu1 %v2417_v44  ;;  %407 = vmatpush1.msra.mxu0 %v2398_v48  ;;  %v652_v44 = vrot.slane %v2951_v32, 4  ;;  %v656_v48 = vrot.slane %v3002_v47, 4  ;;  %v834_v47 = vld [vmem:[%s4361_s3 + $0x60] sm:$0xff]  ;;  %v851_v11 = vld [vmem:[%s4361_s3 + $0xe8] sm:$0xff]  ;;  %v849_v15 = vld [vmem:[%s4361_s3 + $0xd8] sm:$0xff] }
  0x17   :  { %2387 = vmatmul.mubr.msk.f32.gmra.mxu0 %vm94_vm2, %v80_v45  ;;  %2395 = vmatmul.mubr.msk.f32.gmra.mxu1 %vm94_vm2, %v2946_v31  ;;  %v650_v22 = vsel %vm107_vm0, %v647_v39, %v649_v42  ;;  %v654_v45 = vrot.slane %v2977_v40, 4  ;;  %v835_v31 = vld [vmem:[%s4361_s3 + $0x68] sm:$0xff]  ;;  %v993_v16 = vld [vmem:[%s4362_s4 + $0xd8] sm:$0xff]  ;;  %v988_v30 = vld [vmem:[%s4362_s4 + $0xb0] sm:$0xff] }
  0x18   :  { %202 = vmatprep.mubr.f32.mxu0 %v2772_v3  ;;  %321 = vmatprep.mubr.f32.mxu1 %v2772_v3  ;;  %v653_v26 = vsel %vm107_vm0, %v651_v43, %v652_v44  ;;  %v845_v27 = vld [vmem:[%s4361_s3 + $0xb8] sm:$0xff]  ;;  %v843_v33 = vld [vmem:[%s4361_s3 + $0xa8] sm:$0xff]  ;;  %v986_v36 = vld [vmem:[%s4362_s4 + $0xa0] sm:$0xff] }
  0x19   :  { %560 = vmatpush1.msra.mxu1 %v2416_v49  ;;  %2438 = vmatprep.subr.msk.mxu0 %vm107_vm0, %v2437_v51  ;;  %v655_v46 = vsel %vm107_vm0, %v652_v44, %v654_v45  ;;  %v978_v49 = vld [vmem:[%s4362_s4 + $0x60] sm:$0xff]  ;;  %v977_v51 = vld [vmem:[%s4362_s4 + $0x58] sm:$0xff]  ;;  %v840_v39 = vld [vmem:[%s4361_s3 + $0x90] sm:$0xff] }
  0x1a   :  { %561 = vmatprep.subr.mxu1 %v2415_v50  ;;  %v833_v50 = vld [vmem:[%s4361_s3 + $0x58] sm:$0xff]  ;;  %v838_v42 = vld [vmem:[%s4361_s3 + $0x80] sm:$0xff]  ;;  %v1188_v43 = vld [vmem:[%s4363_s5 + $0xe8] sm:$0xff] }
  0x1b   :  { %2388 = vmatmul.mubr.msk.f32.gmra.mxu0 %vm94_vm2, %v82_v52  ;;  %2396 = vmatmul.mubr.msk.f32.gmra.mxu1 %vm94_vm2, %v2951_v32  ;;  %v979_v32 = vld [vmem:[%s4362_s4 + $0x68] sm:$0xff]  ;;  %v832_v52 = vld [vmem:[%s4361_s3 + $0x50] sm:$0xff]  ;;  %v841_v37 = vld [vmem:[%s4361_s3 + $0x98] sm:$0xff] }
  0x1c   :  { %208 = vmatprep.mubr.f32.mxu0 %v2772_v3  ;;  %327 = vmatprep.mubr.f32.mxu1 %v2772_v3  ;;  %v2487_v44 = vld [vmem:[%s4363_s5 + $0x1d8] sm:$0xff] }
  0x1d   :  { %562 = vmatpush1.msra.mxu1 %v2414_v54  ;;  %v831_v54 = vld [vmem:[%s4361_s3 + $0x48] sm:$0xff] }
  0x1e   :  { %871 = vmatprep.subr.mxu1 %v2772_v3 }
  0x1f   :  { %2389 = vmatmul.mubr.msk.f32.gmra.mxu0 %vm94_vm2, %v84_v56  ;;  %2397 = vmatmul.mubr.msk.f32.gmra.mxu1 %vm94_vm2, %v2977_v40  ;;  %v657_v40 = vsel %vm107_vm0, %v654_v45, %v656_v48  ;;  %v830_v56 = vld [vmem:[%s4361_s3 + $0x40] sm:$0xff] }
  0x20   :  { %440 = vmatprep.mubr.f32.mxu0 %v2772_v3  ;;  %595 = vmatprep.mubr.f32.mxu1 %v2772_v3 }
  0x23   :  { %2408 = vmatmul.mubr.msk.f32.vlgmr.msra.gmra.mxu0 %vm94_vm2, %v337_v60  ;;  %2424 = vmatmul.mubr.msk.f32.vlgmr.msra.gmra.mxu1 %vm94_vm2, %v492_v61  ;;  %v828_v60 = vld [vmem:[%s4361_s3 + $0x30] sm:$0xff] }
  0x24   :  { %2439 = vmatpush1.msk.msra.mxu0 %vm107_vm0, %v2436_v0  ;;  %446 = vmatprep.mubr.f32.mxu0 %v2772_v3  ;;  %v972_v61 = vld [vmem:[%s4362_s4 + $0x30] sm:$0xff]  ;;  %v826_v0 = vld [vmem:[%s4361_s3 + $0x20] sm:$0xff] }
  0x25   :  { %601 = vmatprep.mubr.f32.mxu1 %v2772_v3  ;;  %711 = vmatprep.subr.mxu0 %v2435_v1  ;;  %v970_v1 = vld [vmem:[%s4362_s4 + $0x20] sm:$0xff] }
  0x26   :  { %712 = vmatpush1.msra.mxu0 %v2434_v2  ;;  %872 = vmatpush1.msra.mxu1 %v837_v5  ;;  %v825_v2 = vld [vmem:[%s4361_s3 + $0x18] sm:$0xff]  ;;  %v824_v5 = vld [vmem:[%s4361_s3 + $0x10] sm:$0xff] }
  0x27   :  { %2409 = vmatmul.mubr.msk.f32.gmra.mxu0 %vm94_vm2, %v339_v6  ;;  %2425 = vmatmul.mubr.msk.f32.gmra.mxu1 %vm94_vm2, %v494_v7  ;;  %v968_v6 = vld [vmem:[%s4362_s4 + $0x10] sm:$0xff]  ;;  %v823_v7 = vld [vmem:[%s4361_s3 + $0x8] sm:$0xff] }
  0x28   :  { %452 = vmatprep.mubr.f32.mxu0 %v2772_v3  ;;  %607 = vmatprep.mubr.f32.mxu1 %v2772_v3 }
  0x29   :  { %713 = vmatprep.subr.mxu0 %v2433_v9  ;;  %873 = vmatprep.subr.mxu1 %v2772_v3  ;;  %v822_v9 = vld [vmem:[%s4361_s3] sm:$0xff] }
  0x2a   :  { %714 = vmatpush1.msra.mxu0 %v2432_v12  ;;  %874 = vmatpush1.msra.mxu1 %v836_v13  ;;  %v995_v12 = vld [vmem:[%s4362_s4 + $0xe8] sm:$0xff]  ;;  %v850_v13 = vld [vmem:[%s4361_s3 + $0xe0] sm:$0xff] }
  0x2b   :  { %2410 = vmatmul.mubr.msk.f32.gmra.mxu0 %vm94_vm2, %v341_v10  ;;  %2426 = vmatmul.mubr.msk.f32.gmra.mxu1 %vm94_vm2, %v496_v14  ;;  %v966_v10 = vld [vmem:[%s4362_s4] sm:$0xff] }
  0x2c   :  { %458 = vmatprep.mubr.f32.mxu0 %v2772_v3  ;;  %613 = vmatprep.mubr.f32.mxu1 %v2772_v3  ;;  %v994_v14 = vld [vmem:[%s4362_s4 + $0xe0] sm:$0xff] }
  0x2d   :  { %715 = vmatprep.subr.mxu0 %v2431_v20  ;;  %875 = vmatprep.subr.mxu1 %v2772_v3  ;;  %v992_v20 = vld [vmem:[%s4362_s4 + $0xd0] sm:$0xff] }
  0x2e   :  { %716 = vmatpush1.msra.mxu0 %v2430_v21  ;;  %876 = vmatpush1.msra.mxu1 %v835_v31  ;;  %v847_v21 = vld [vmem:[%s4361_s3 + $0xc8] sm:$0xff] }
  0x2f   :  { %2411 = vmatmul.mubr.msk.f32.gmra.mxu0 %vm94_vm2, %v344_v23  ;;  %2427 = vmatmul.mubr.msk.f32.gmra.mxu1 %vm94_vm2, %v499_v24  ;;  %v991_v23 = vld [vmem:[%s4362_s4 + $0xc8] sm:$0xff]  ;;  %v846_v24 = vld [vmem:[%s4361_s3 + $0xc0] sm:$0xff] }
  0x30   :  { %464 = vmatprep.mubr.f32.mxu0 %v2772_v3  ;;  %619 = vmatprep.mubr.f32.mxu1 %v2772_v3 }
  0x31   :  { %996 = vmatprep.subr.mxu0 %v2772_v3  ;;  %877 = vmatprep.subr.mxu1 %v2772_v3 }
  0x32   :  { %878 = vmatpush1.msra.mxu1 %v834_v47 }
  0x33   :  { %2412 = vmatmul.mubr.msk.f32.gmra.mxu0 %vm94_vm2, %v346_v28  ;;  %2428 = vmatmul.mubr.msk.f32.gmra.mxu1 %vm94_vm2, %v501_v29  ;;  %v989_v28 = vld [vmem:[%s4362_s4 + $0xb8] sm:$0xff]  ;;  %v844_v29 = vld [vmem:[%s4361_s3 + $0xb0] sm:$0xff] }
  0x34   :  { %470 = vmatprep.mubr.f32.mxu0 %v2772_v3  ;;  %625 = vmatprep.mubr.f32.mxu1 %v2772_v3 }
  0x35   :  { %879 = vmatprep.subr.mxu1 %v2772_v3 }
  0x36   :  { %880 = vmatpush1.msra.mxu1 %v833_v50 }
  0x37   :  { %2413 = vmatmul.mubr.msk.f32.gmra.mxu0 %vm94_vm2, %v348_v34  ;;  %2429 = vmatmul.mubr.msk.f32.gmra.mxu1 %vm94_vm2, %v503_v35  ;;  %v987_v34 = vld [vmem:[%s4362_s4 + $0xa8] sm:$0xff]  ;;  %v842_v35 = vld [vmem:[%s4361_s3 + $0xa0] sm:$0xff] }
  0x38   :  { %749 = vmatprep.mubr.f32.mxu0 %v2772_v3  ;;  %881 = vmatprep.subr.mxu1 %v2772_v3 }
  0x39   :  { %882 = vmatpush1.msra.mxu1 %v832_v52 }
  0x3a   :  { %883 = vmatprep.subr.mxu1 %v2772_v3 }
  0x3b   :  { %2440 = vmatmul.mubr.msk.f32.vlgmr.msra.gmra.mxu0 %vm94_vm2, %v646_v38  ;;  %884 = vmatpush1.msra.mxu1 %v831_v54  ;;  %v985_v38 = vld [vmem:[%s4362_s4 + $0x98] sm:$0xff] }
  0x3c   :  { %755 = vmatprep.mubr.f32.mxu0 %v2772_v3  ;;  %997 = vmatpush1.msra.mxu0 %v981_v41  ;;  %v984_v41 = vld [vmem:[%s4362_s4 + $0x90] sm:$0xff] }
  0x3d   :  { %998 = vmatprep.subr.mxu0 %v2772_v3  ;;  %885 = vmatprep.subr.mxu1 %v2772_v3 }
  0x3e   :  { %999 = vmatpush1.msra.mxu0 %v980_v17  ;;  %886 = vmatpush1.msra.mxu1 %v830_v56  ;;  %v839_v17 = vld [vmem:[%s4361_s3 + $0x88] sm:$0xff] }
  0x3f   :  { %2441 = vmatmul.mubr.msk.f32.gmra.mxu0 %vm94_vm2, %v648_v18  ;;  %1000 = vmatprep.subr.mxu0 %v2772_v3  ;;  %v983_v18 = vld [vmem:[%s4362_s4 + $0x88] sm:$0xff] }
  0x40   :  { %761 = vmatprep.mubr.f32.mxu0 %v2772_v3  ;;  %1001 = vmatpush1.msra.mxu0 %v979_v32 }
  0x41   :  { %1002 = vmatprep.subr.mxu0 %v2772_v3  ;;  %887 = vmatprep.subr.mxu1 %v2772_v3 }
  0x42   :  { %1003 = vmatpush1.msra.mxu0 %v978_v49  ;;  %888 = vmatpush1.msra.mxu1 %v829_v58 }
  0x43   :  { %2442 = vmatmul.mubr.msk.f32.gmra.mxu0 %vm94_vm2, %v650_v22  ;;  %1004 = vmatprep.subr.mxu0 %v2772_v3  ;;  %v982_v22 = vld [vmem:[%s4362_s4 + $0x80] sm:$0xff] }
  0x44   :  { %767 = vmatprep.mubr.f32.mxu0 %v2772_v3  ;;  %1005 = vmatpush1.msra.mxu0 %v977_v51 }
  0x45   :  { %1006 = vmatprep.subr.mxu0 %v2772_v3  ;;  %889 = vmatprep.subr.mxu1 %v2772_v3 }
  0x46   :  { %1007 = vmatpush1.msra.mxu0 %v976_v53  ;;  %890 = vmatpush1.msra.mxu1 %v828_v60 }
  0x47   :  { %2443 = vmatmul.mubr.msk.f32.gmra.mxu0 %vm94_vm2, %v653_v26  ;;  %1008 = vmatprep.subr.mxu0 %v2772_v3 }
  0x48   :  { %773 = vmatprep.mubr.f32.mxu0 %v2772_v3  ;;  %1009 = vmatpush1.msra.mxu0 %v975_v55 }
  0x49   :  { %1010 = vmatprep.subr.mxu0 %v2772_v3  ;;  %891 = vmatprep.subr.mxu1 %v2772_v3 }
  0x4a   :  { %1011 = vmatpush1.msra.mxu0 %v974_v57  ;;  %892 = vmatpush1.msra.mxu1 %v827_v62 }
  0x4b   :  { %2444 = vmatmul.mubr.msk.f32.gmra.mxu0 %vm94_vm2, %v655_v46  ;;  %1012 = vmatprep.subr.mxu0 %v2772_v3 }
  0x4c   :  { %779 = vmatprep.mubr.f32.mxu0 %v2772_v3  ;;  %1013 = vmatpush1.msra.mxu0 %v973_v59 }
  0x4d   :  { %1014 = vmatprep.subr.mxu0 %v2772_v3  ;;  %893 = vmatprep.subr.mxu1 %v2772_v3 }
  0x4e   :  { %1015 = vmatpush1.msra.mxu0 %v972_v61  ;;  %894 = vmatpush1.msra.mxu1 %v826_v0 }
  0x4f   :  { %2445 = vmatmul.mubr.msk.f32.gmra.mxu0 %vm94_vm2, %v657_v40  ;;  %1016 = vmatprep.subr.mxu0 %v2772_v3 }
  0x50   :  { %1017 = vmatpush1.msra.mxu0 %v971_v63  ;;  %895 = vmatprep.subr.mxu1 %v2772_v3 }
  0x51   :  { %1018 = vmatprep.subr.mxu0 %v2772_v3  ;;  %896 = vmatpush1.msra.mxu1 %v825_v2 }
  0x52   :  { %1019 = vmatpush1.msra.mxu0 %v970_v1  ;;  %897 = vmatprep.subr.mxu1 %v2772_v3 }
  0x53   :  { %1020 = vmatprep.subr.mxu0 %v2772_v3  ;;  %898 = vmatpush1.msra.mxu1 %v824_v5 }
  0x54   :  { %1021 = vmatpush1.msra.mxu0 %v969_v4  ;;  %899 = vmatprep.subr.mxu1 %v2772_v3 }
  0x55   :  { %1022 = vmatprep.subr.mxu0 %v2772_v3  ;;  %900 = vmatpush1.msra.mxu1 %v823_v7 }
  0x56   :  { %1023 = vmatpush1.msra.mxu0 %v968_v6  ;;  %901 = vmatprep.subr.mxu1 %v2772_v3 }
  0x57   :  { %1024 = vmatprep.subr.mxu0 %v2772_v3  ;;  %902 = vmatpush1.msra.mxu1 %v822_v9 }
  0x58   :  { %1025 = vmatpush1.msra.mxu0 %v967_v8  ;;  %907 = vmatprep.subr.mxu1 %v2772_v3 }
  0x59   :  { %1026 = vmatprep.subr.mxu0 %v2772_v3  ;;  %908 = vmatpush2.msra.mxu1 %v851_v11 }
  0x5a   :  { %1027 = vmatpush1.msra.mxu0 %v966_v10  ;;  %909 = vmatprep.subr.mxu1 %v2772_v3 }
  0x5b   :  { %1032 = vmatprep.subr.mxu0 %v2772_v3  ;;  %910 = vmatpush2.msra.mxu1 %v850_v13 }
  0x5c   :  { %1033 = vmatpush2.msra.mxu0 %v995_v12  ;;  %911 = vmatprep.subr.mxu1 %v2772_v3 }
  0x5d   :  { %1034 = vmatprep.subr.mxu0 %v2772_v3  ;;  %912 = vmatpush2.msra.mxu1 %v849_v15  ;;  %v800_v15 = vlaneseq }
  0x5e   :  { %1035 = vmatpush2.msra.mxu0 %v994_v14  ;;  %913 = vmatprep.subr.mxu1 %v2772_v3 }
  0x5f   :  { %1036 = vmatprep.subr.mxu0 %v2772_v3  ;;  %914 = vmatpush2.msra.mxu1 %v848_v19 }
  0x60   :  { %1037 = vmatpush2.msra.mxu0 %v993_v16  ;;  %915 = vmatprep.subr.mxu1 %v2772_v3 }
  0x61   :  { %1038 = vmatprep.subr.mxu0 %v2772_v3  ;;  %916 = vmatpush2.msra.mxu1 %v847_v21 }
  0x62   :  { %1039 = vmatpush2.msra.mxu0 %v992_v20  ;;  %917 = vmatprep.subr.mxu1 %v2772_v3 }
  0x63   :  { %1040 = vmatprep.subr.mxu0 %v2772_v3  ;;  %918 = vmatpush2.msra.mxu1 %v846_v24 }
  0x64   :  { %1041 = vmatpush2.msra.mxu0 %v991_v23  ;;  %919 = vmatprep.subr.mxu1 %v2772_v3  ;;  %v3408_v23 = vshrl.u32 %v800_v15, 7 }
  0x65   :  { %1042 = vmatprep.subr.mxu0 %v2772_v3  ;;  %920 = vmatpush2.msra.mxu1 %v845_v27 }
  0x66   :  { %1043 = vmatpush2.msra.mxu0 %v990_v25  ;;  %921 = vmatprep.subr.mxu1 %v2772_v3 }
  0x67   :  { %1044 = vmatprep.subr.mxu0 %v2772_v3  ;;  %922 = vmatpush2.msra.mxu1 %v844_v29  ;;  %v806_v29 = vsub.s32 1, %v3408_v23 }
  0x68   :  { %1045 = vmatpush2.msra.mxu0 %v989_v28  ;;  %923 = vmatprep.subr.mxu1 %v2772_v3 }
  0x69   :  { %1046 = vmatprep.subr.mxu0 %v2772_v3  ;;  %924 = vmatpush2.msra.mxu1 %v843_v33 }
  0x6a   :  { %1047 = vmatpush2.msra.mxu0 %v988_v30  ;;  %925 = vmatprep.subr.mxu1 %v2772_v3 }
  0x6b   :  { %1048 = vmatprep.subr.mxu0 %v2772_v3  ;;  %926 = vmatpush2.msra.mxu1 %v842_v35  ;;  %v802_v35 = vsub.s32 0, %v3408_v23  ;;  %v2603_v23 = vld [vmem:[%s4368_s9 + $0x98] sm:$0xff] }
  0x6c   :  { %1049 = vmatpush2.msra.mxu0 %v987_v34  ;;  %927 = vmatprep.subr.mxu1 %v2772_v3 }
  0x6d   :  { %1050 = vmatprep.subr.mxu0 %v2772_v3  ;;  %928 = vmatpush2.msra.mxu1 %v841_v37  ;;  %v798_v37 = vld [vmem:[%s4364_s2] sm:$0x3] }
  0x6e   :  { %1051 = vmatpush2.msra.mxu0 %v986_v36  ;;  %929 = vmatprep.subr.mxu1 %v2772_v3 }
  0x6f   :  { %1052 = vmatprep.subr.mxu0 %v2772_v3  ;;  %930 = vmatpush2.msra.mxu1 %v840_v39 }
  0x70   :  { %1053 = vmatpush2.msra.mxu0 %v985_v38  ;;  %931 = vmatprep.subr.mxu1 %v2772_v3 }
  0x71   :  { %1054 = vmatprep.subr.mxu0 %v2772_v3  ;;  %932 = vmatpush2.msra.mxu1 %v839_v17 }
  0x72   :  { %1055 = vmatpush2.msra.mxu0 %v984_v41  ;;  %933 = vmatprep.subr.mxu1 %v2772_v3 }
  0x73   :  { %1056 = vmatprep.subr.mxu0 %v2772_v3  ;;  %934 = vmatpush2.msra.mxu1 %v838_v42  ;;  %v3421_v42 = vrot.slane %v798_v37, %v806_v29 }
  0x74   :  { %1057 = vmatpush2.msra.mxu0 %v983_v18  ;;  %1237 = vmatprep.subr.mxu1 %v2487_v44 }
  0x75   :  { %1058 = vmatprep.subr.mxu0 %v2772_v3 }
  0x76   :  { %1059 = vmatpush2.msra.mxu0 %v982_v22 }
  0x77   :  { %1318 = vmatprep.subr.mxu0 %v1188_v43 }
  0xcb   :  { %v180_v26 = vpop.f32.mrf.mxu0  ;;  %v299_v45 = vpop.f32.mrf.mxu1 }
  0xcc   :  { %v300_v19 = vadd.f32 %v299_v45, %v180_v26  ;;  %v3425_v26 = vrot.slane %v798_v37, %v802_v35 }
  0xcd   :  { %v182_v46 = vpop.f32.mrf.mxu0  ;;  %v301_v48 = vpop.f32.mrf.mxu1 }
  0xce   :  { %v302_v24 = vadd.f32 %v301_v48, %v182_v46 }
  0xcf   :  { %v186_v31 = vpop.f32.mrf.mxu0  ;;  %v305_v32 = vpop.f32.mrf.mxu1 }
  0xd0   :  { %v306_v30 = vadd.f32 %v305_v32, %v186_v31 }
  0xd1   :  { %v188_v40 = vpop.f32.mrf.mxu0  ;;  %v307_v47 = vpop.f32.mrf.mxu1 }
  0xd2   :  { %v308_v36 = vadd.f32 %v307_v47, %v188_v40 }
  0xd3   :  { %v192_v49 = vpop.f32.mrf.mxu0  ;;  %v311_v50 = vpop.f32.mrf.mxu1 }
  0xd4   :  { %v312_v22 = vadd.f32 %v311_v50, %v192_v49 }
  0xd5   :  { %v194_v51 = vpop.f32.mrf.mxu0  ;;  %v313_v52 = vpop.f32.mrf.mxu1 }
  0xd6   :  { %v314_v46 = vadd.f32 %v313_v52, %v194_v51  ;;  %v1187_v51 = vld [vmem:[%s4363_s5 + $0xe0] sm:$0xff]  ;;  %v2486_v52 = vld [vmem:[%s4363_s5 + $0x1d0] sm:$0xff] }
  0xd7   :  { %v3382_v53 = vpop.f32.mrf.mxu0  ;;  %v317_v54 = vpop.f32.mrf.mxu1 }
  0xd9   :  { %v3384_v55 = vpop.f32.mrf.mxu0  ;;  %v3386_v56 = vpop.f32.mrf.mxu1 }
  0xdb   :  { %v3388_v57 = vpop.f32.mrf.mxu0  ;;  %v3390_v58 = vpop.f32.mrf.mxu1 }
  0xdd   :  { %v3392_v59 = vpop.f32.mrf.mxu0  ;;  %v3394_v60 = vpop.f32.mrf.mxu1 }
  0xdf   :  { %v3396_v61 = vpop.f32.mrf.mxu0  ;;  %v3398_v62 = vpop.f32.mrf.mxu1 }
  0xe1   :  { %v3400_v63 = vpop.f32.mrf.mxu0  ;;  %v3402_v0 = vpop.f32.mrf.mxu1 }
  0xe3   :  { %v442_v1 = vpop.f32.mrf.mxu0  ;;  %v597_v2 = vpop.f32.mrf.mxu1 }
  0xe4   :  { %v477_v25 = vadd.f32 %v442_v1, %v300_v19  ;;  %v324_v19 = vadd.f32 %v3390_v58, %v3388_v57  ;;  %v1184_v57 = vld [vmem:[%s4363_s5 + $0xc8] sm:$0xff] }
  0xe5   :  { %v444_v4 = vpop.f32.mrf.mxu0  ;;  %v599_v5 = vpop.f32.mrf.mxu1 }
  0xe6   :  { %v478_v28 = vadd.f32 %v444_v4, %v302_v24  ;;  %v632_v38 = vadd.f32 %v597_v2, %v477_v25  ;;  %v318_v4 = vadd.f32 %v317_v54, %v3382_v53  ;;  %v1186_v53 = vld [vmem:[%s4363_s5 + $0xd8] sm:$0xff]  ;;  %v2485_v54 = vld [vmem:[%s4363_s5 + $0x1c8] sm:$0xff] }
  0xe7   :  { %v448_v6 = vpop.f32.mrf.mxu0  ;;  %v603_v8 = vpop.f32.mrf.mxu1 }
  0xe8   :  { %v479_v39 = vadd.f32 %v448_v6, %v306_v30  ;;  %v633_v17 = vadd.f32 %v599_v5, %v478_v28 }
  0xe9   :  { %v450_v7 = vpop.f32.mrf.mxu0  ;;  %v605_v10 = vpop.f32.mrf.mxu1 }
  0xea   :  { %v480_v18 = vadd.f32 %v450_v7, %v308_v36  ;;  %v634_v31 = vadd.f32 %v603_v8, %v479_v39  ;;  %v320_v7 = vadd.f32 %v3386_v56, %v3384_v55 }
  0xeb   :  { %v454_v9 = vpop.f32.mrf.mxu0  ;;  %v609_v13 = vpop.f32.mrf.mxu1 }
  0xec   :  { %v481_v32 = vadd.f32 %v454_v9, %v312_v22  ;;  %v635_v47 = vadd.f32 %v605_v10, %v480_v18 }
  0xed   :  { %v456_v11 = vpop.f32.mrf.mxu0  ;;  %v611_v20 = vpop.f32.mrf.mxu1 }
  0xee   :  { %v482_v1 = vadd.f32 %v456_v11, %v314_v46  ;;  %v636_v9 = vadd.f32 %v609_v13, %v481_v32  ;;  %v326_v13 = vadd.f32 %v3394_v60, %v3392_v59  ;;  %v330_v60 = vadd.f32 %v3398_v62, %v3396_v61  ;;  %v1182_v61 = vld [vmem:[%s4363_s5 + $0xb8] sm:$0xff]  ;;  %v1181_v32 = vld [vmem:[%s4363_s5 + $0xb0] sm:$0xff] }
  0xef   :  { %v460_v12 = vpop.f32.mrf.mxu0  ;;  %v615_v33 = vpop.f32.mrf.mxu1 }
  0xf0   :  { %v483_v10 = vadd.f32 %v460_v12, %v318_v4  ;;  %v637_v15 = vadd.f32 %v611_v20, %v482_v1  ;;  %v1185_v12 = vld [vmem:[%s4363_s5 + $0xd0] sm:$0xff] }
  0xf1   :  { %v462_v14 = vpop.f32.mrf.mxu0  ;;  %v617_v43 = vpop.f32.mrf.mxu1 }
  0xf2   :  { %v484_v55 = vadd.f32 %v462_v14, %v320_v7  ;;  %v638_v58 = vadd.f32 %v615_v33, %v483_v10  ;;  %v332_v33 = vadd.f32 %v3402_v0, %v3400_v63  ;;  %v2484_v7 = vld [vmem:[%s4363_s5 + $0x1c0] sm:$0xff] }
  0xf3   :  { %v3404_v16 = vpop.f32.mrf.mxu0  ;;  %v621_v49 = vpop.f32.mrf.mxu1  ;;  %v1175_v10 = vld [vmem:[%s4363_s5 + $0x80] sm:$0xff] }
  0xf4   :  { %v485_v20 = vadd.f32 %v3404_v16, %v324_v19  ;;  %v639_v37 = vadd.f32 %v617_v43, %v484_v55  ;;  %v1183_v16 = vld [vmem:[%s4363_s5 + $0xc0] sm:$0xff]  ;;  %v2479_v55 = vld [vmem:[%s4363_s5 + $0x198] sm:$0xff]  ;;  %v2478_v19 = vld [vmem:[%s4363_s5 + $0x190] sm:$0xff] }
  0xf5   :  { %v3406_v21 = vpop.f32.mrf.mxu0  ;;  %v623_v24 = vpop.f32.mrf.mxu1 }
  0xf6   :  { %v640_v62 = vadd.f32 %v621_v49, %v485_v20  ;;  %v2473_v20 = vld [vmem:[%s4363_s5 + $0x168] sm:$0xff] }
  0xf7   :  { %v3410_v27 = vpop.f32.mrf.mxu0  ;;  %v627_v39 = vpop.f32.mrf.mxu1 }
  0xf8   :  { %v487_v22 = vadd.f32 %v3410_v27, %v330_v60  ;;  %v1165_v60 = vld [vmem:[%s4363_s5 + $0x30] sm:$0xff] }
  0xf9   :  { %v3413_v34 = vpop.f32.mrf.mxu0  ;;  %v629_v0 = vpop.f32.mrf.mxu1 }
  0xfb   :  { %v751_v41 = vpop.f32.mrf.mxu0 }
  0xfc   :  { %v786_v44 = vadd.f32 %v751_v41, %v632_v38  ;;  %v486_v38 = vadd.f32 %v3406_v21, %v326_v13  ;;  %v2475_v13 = vld [vmem:[%s4363_s5 + $0x178] sm:$0xff] }
  0xfd   :  { %v753_v45 = vpop.f32.mrf.mxu0 }
  0xfe   :  { %v787_v48 = vadd.f32 %v753_v45, %v633_v17  ;;  %v810_v50 = vadd.f32 %v3425_v26, %v786_v44  ;;  %v641_v44 = vadd.f32 %v623_v24, %v486_v38  ;;  %v488_v45 = vadd.f32 %v3413_v34, %v332_v33  ;;  %v1180_v34 = vld [vmem:[%s4363_s5 + $0xa8] sm:$0xff]  ;;  %v1166_v38 = vld [vmem:[%s4363_s5 + $0x38] sm:$0xff] }
  0xff   :  { %v757_v40 = vpop.f32.mrf.mxu0  ;;  %v1172_v24 = vld [vmem:[%s4363_s5 + $0x68] sm:$0xff]  ;;  %v1162_v33 = vld [vmem:[%s4363_s5 + $0x18] sm:$0xff] }
 0x100   :  { %v811_v2 = vadd.f32 %v3421_v42, %v787_v48  ;;  %v788_v5 = vadd.f32 %v757_v40, %v634_v31  ;;  %v642_v40 = vadd.f32 %v627_v39, %v487_v22  ;;  %v643_v1 = vadd.f32 %v629_v0, %v488_v45  ;;  %v2470_v39 = vld [vmem:[%s4363_s5 + $0x150] sm:$0xff]  ;;  %v1160_v22 = vld [vmem:[%s4363_s5 + $0x8] sm:$0xff]  ;;  %v2464_v45 = vld [vmem:[%s4363_s5 + $0x120] sm:$0xff] }
 0x101   :  { %v759_v6 = vpop.f32.mrf.mxu0  ;;  %v2463_v0 = vld [vmem:[%s4363_s5 + $0x118] sm:$0xff] }
 0x102   :  { %v789_v8 = vadd.f32 %v759_v6, %v635_v47  ;;  %2446 = vmatprep.mubr.msk.f32.mxu1 %vm852_vm5, %v811_v2  ;;  %2452 = vmatprep.mubr.msk.f32.mxu0 %vm852_vm5, %v811_v2  ;;  %v812_v25 = vadd.f32 %v3425_v26, %v788_v5  ;;  %v1179_v5 = vld [vmem:[%s4363_s5 + $0xa0] sm:$0xff] }
 0x103   :  { %v763_v11 = vpop.f32.mrf.mxu0  ;;  %936 = vmatmul.mubr.f32.vlgmr.msra.gmra.mxu1 %v810_v50  ;;  %1061 = vmatmul.mubr.f32.vlgmr.msra.gmra.mxu0 %v810_v50 }
 0x104   :  { %v813_v56 = vadd.f32 %v3421_v42, %v789_v8  ;;  %1319 = vmatpush1.msra.mxu0 %v1187_v51  ;;  %1238 = vmatpush1.msra.mxu1 %v2486_v52  ;;  %v790_v28 = vadd.f32 %v763_v11, %v636_v9  ;;  %v1177_v8 = vld [vmem:[%s4363_s5 + $0x90] sm:$0xff]  ;;  %v2481_v9 = vld [vmem:[%s4363_s5 + $0x1a8] sm:$0xff]  ;;  %v2480_v11 = vld [vmem:[%s4363_s5 + $0x1a0] sm:$0xff] }
 0x105   :  { %v765_v30 = vpop.f32.mrf.mxu0  ;;  %1320 = vmatprep.subr.mxu0 %v1186_v53  ;;  %1239 = vmatprep.subr.mxu1 %v2485_v54  ;;  %v2482_v53 = vld [vmem:[%s4363_s5 + $0x1b0] sm:$0xff]  ;;  %v1176_v54 = vld [vmem:[%s4363_s5 + $0x88] sm:$0xff] }
 0x106   :  { %v791_v14 = vadd.f32 %v765_v30, %v637_v15  ;;  %2447 = vmatprep.mubr.msk.f32.mxu1 %vm852_vm5, %v813_v56  ;;  %2453 = vmatprep.mubr.msk.f32.mxu0 %vm852_vm5, %v813_v56  ;;  %v814_v41 = vadd.f32 %v3425_v26, %v790_v28  ;;  %v1174_v15 = vld [vmem:[%s4363_s5 + $0x78] sm:$0xff]  ;;  %v1173_v56 = vld [vmem:[%s4363_s5 + $0x70] sm:$0xff]  ;;  %v1171_v28 = vld [vmem:[%s4363_s5 + $0x60] sm:$0xff] }
 0x107   :  { %v769_v36 = vpop.f32.mrf.mxu0  ;;  %941 = vmatmul.mubr.f32.gmra.mxu1 %v812_v25  ;;  %1066 = vmatmul.mubr.f32.gmra.mxu0 %v812_v25  ;;  %v2477_v25 = vld [vmem:[%s4363_s5 + $0x188] sm:$0xff]  ;;  %v2476_v30 = vld [vmem:[%s4363_s5 + $0x180] sm:$0xff] }
 0x108   :  { %v815_v59 = vadd.f32 %v3421_v42, %v791_v14  ;;  %1321 = vmatpush1.msra.mxu0 %v1185_v12  ;;  %v792_v17 = vadd.f32 %v769_v36, %v638_v58  ;;  %1240 = vmatpush1.msra.mxu1 %v2484_v7  ;;  %v1170_v12 = vld [vmem:[%s4363_s5 + $0x58] sm:$0xff]  ;;  %v1169_v14 = vld [vmem:[%s4363_s5 + $0x50] sm:$0xff]  ;;  %v1168_v58 = vld [vmem:[%s4363_s5 + $0x48] sm:$0xff] }
 0x109   :  { %v771_v18 = vpop.f32.mrf.mxu0  ;;  %1322 = vmatprep.subr.mxu0 %v1184_v57  ;;  %v2474_v57 = vld [vmem:[%s4363_s5 + $0x170] sm:$0xff]  ;;  %v1167_v36 = vld [vmem:[%s4363_s5 + $0x40] sm:$0xff] }
 0x10a   :  { %v793_v21 = vadd.f32 %v771_v18, %v639_v37  ;;  %2448 = vmatprep.mubr.msk.f32.mxu1 %vm852_vm5, %v815_v59  ;;  %2454 = vmatprep.mubr.msk.f32.mxu0 %vm852_vm5, %v815_v59  ;;  %v816_v46 = vadd.f32 %v3425_v26, %v792_v17  ;;  %v2472_v37 = vld [vmem:[%s4363_s5 + $0x160] sm:$0xff]  ;;  %v2471_v59 = vld [vmem:[%s4363_s5 + $0x158] sm:$0xff]  ;;  %v2469_v17 = vld [vmem:[%s4363_s5 + $0x148] sm:$0xff] }
 0x10b   :  { %v775_v43 = vpop.f32.mrf.mxu0  ;;  %946 = vmatmul.mubr.f32.gmra.mxu1 %v814_v41  ;;  %1071 = vmatmul.mubr.f32.gmra.mxu0 %v814_v41  ;;  %v1164_v41 = vld [vmem:[%s4363_s5 + $0x28] sm:$0xff]  ;;  %v1163_v18 = vld [vmem:[%s4363_s5 + $0x20] sm:$0xff] }
 0x10c   :  { %v817_v63 = vadd.f32 %v3421_v42, %v793_v21  ;;  %1323 = vmatpush1.msra.mxu0 %v1183_v16  ;;  %v794_v48 = vadd.f32 %v775_v43, %v640_v62  ;;  %v2468_v16 = vld [vmem:[%s4363_s5 + $0x140] sm:$0xff]  ;;  %v2467_v21 = vld [vmem:[%s4363_s5 + $0x138] sm:$0xff]  ;;  %v2466_v62 = vld [vmem:[%s4363_s5 + $0x130] sm:$0xff] }
 0x10d   :  { %v777_v31 = vpop.f32.mrf.mxu0  ;;  %1324 = vmatprep.subr.mxu0 %v1182_v61  ;;  %v1161_v61 = vld [vmem:[%s4363_s5 + $0x10] sm:$0xff]  ;;  %v2465_v43 = vld [vmem:[%s4363_s5 + $0x128] sm:$0xff] }
 0x10e   :  { %v795_v27 = vadd.f32 %v777_v31, %v641_v44  ;;  %2449 = vmatprep.mubr.msk.f32.mxu1 %vm852_vm5, %v817_v63  ;;  %2455 = vmatprep.mubr.msk.f32.mxu0 %vm852_vm5, %v817_v63  ;;  %v818_v4 = vadd.f32 %v3425_v26, %v794_v48  ;;  %v1159_v44 = vld [vmem:[%s4363_s5] sm:$0xff]  ;;  %v2553_v63 = vld [vmem:[%s4363_s5 + $0x3b8] sm:$0xff]  ;;  %v2461_v48 = vld [vmem:[%s4363_s5 + $0x108] sm:$0xff] }
 0x10f   :  { %v781_v47 = vpop.f32.mrf.mxu0  ;;  %951 = vmatmul.mubr.f32.gmra.mxu1 %v816_v46  ;;  %1076 = vmatmul.mubr.f32.gmra.mxu0 %v816_v46  ;;  %v2462_v46 = vld [vmem:[%s4363_s5 + $0x110] sm:$0xff]  ;;  %v2460_v31 = vld [vmem:[%s4363_s5 + $0x100] sm:$0xff] }
 0x110   :  { %v819_v2 = vadd.f32 %v3421_v42, %v795_v27  ;;  %1325 = vmatpush1.msra.mxu0 %v1181_v32  ;;  %v796_v49 = vadd.f32 %v781_v47, %v642_v40  ;;  %v2459_v32 = vld [vmem:[%s4363_s5 + $0xf8] sm:$0xff]  ;;  %v2458_v27 = vld [vmem:[%s4363_s5 + $0xf0] sm:$0xff] }
 0x111   :  { %v783_v50 = vpop.f32.mrf.mxu0  ;;  %1326 = vmatprep.subr.mxu0 %v1180_v34  ;;  %v2521_v34 = vld [vmem:[%s4363_s5 + $0x2c8] sm:$0xff] }
 0x112   :  { %v797_v6 = vadd.f32 %v783_v50, %v643_v1  ;;  %2450 = vmatprep.mubr.msk.f32.mxu1 %vm852_vm5, %v819_v2  ;;  %2456 = vmatprep.mubr.msk.f32.mxu0 %vm852_vm5, %v819_v2  ;;  %v820_v52 = vadd.f32 %v3425_v26, %v796_v49  ;;  %v2483_v26 = vld [vmem:[%s4363_s5 + $0x1b8] sm:$0xff] }
 0x113   :  { %956 = vmatmul.mubr.f32.gmra.mxu1 %v818_v4  ;;  %1081 = vmatmul.mubr.f32.gmra.mxu0 %v818_v4 }
 0x114   :  { %v821_v51 = vadd.f32 %v3421_v42, %v797_v6  ;;  %1327 = vmatpush1.msra.mxu0 %v1179_v5  ;;  %v1178_v42 = vld [vmem:[%s4363_s5 + $0x98] sm:$0xff]  ;;  %1241 = vmatprep.subr.mxu1 %v2483_v26 }
 0x115   :  { %1328 = vmatprep.subr.mxu0 %v1178_v42  ;;  %1242 = vmatpush1.msra.mxu1 %v2482_v53 }
 0x116   :  { %2451 = vmatprep.mubr.msk.f32.mxu1 %vm852_vm5, %v821_v51  ;;  %2457 = vmatprep.mubr.msk.f32.mxu0 %vm852_vm5, %v821_v51 }
 0x117   :  { %961 = vmatmul.mubr.f32.gmra.mxu1 %v820_v52  ;;  %1086 = vmatmul.mubr.f32.gmra.mxu0 %v820_v52 }
 0x118   :  { %1380 = vmatprep.mubr.f32.mxu0 %v2772_v3  ;;  %1299 = vmatprep.mubr.f32.mxu1 %v2772_v3 }
 0x119   :  { %1329 = vmatpush1.msra.mxu0 %v1177_v8  ;;  %1243 = vmatprep.subr.mxu1 %v2481_v9 }
 0x11a   :  { %1330 = vmatprep.subr.mxu0 %v1176_v54  ;;  %1244 = vmatpush1.msra.mxu1 %v2480_v11 }
 0x11b   :  { %1331 = vmatpush1.msra.mxu0 %v1175_v10  ;;  %1245 = vmatprep.subr.mxu1 %v2479_v55 }
 0x11c   :  { %1332 = vmatprep.subr.mxu0 %v1174_v15  ;;  %1246 = vmatpush1.msra.mxu1 %v2478_v19 }
 0x11d   :  { %1333 = vmatpush1.msra.mxu0 %v1173_v56  ;;  %1247 = vmatprep.subr.mxu1 %v2477_v25 }
 0x11e   :  { %1334 = vmatprep.subr.mxu0 %v1172_v24  ;;  %1248 = vmatpush1.msra.mxu1 %v2476_v30 }
 0x11f   :  { %1335 = vmatpush1.msra.mxu0 %v1171_v28  ;;  %1249 = vmatprep.subr.mxu1 %v2475_v13 }
 0x120   :  { %1336 = vmatprep.subr.mxu0 %v1170_v12  ;;  %1250 = vmatpush1.msra.mxu1 %v2474_v57 }
 0x121   :  { %1337 = vmatpush1.msra.mxu0 %v1169_v14  ;;  %1251 = vmatprep.subr.mxu1 %v2473_v20 }
 0x122   :  { %1338 = vmatprep.subr.mxu0 %v1168_v58  ;;  %1252 = vmatpush1.msra.mxu1 %v2472_v37 }
 0x123   :  { %1339 = vmatpush1.msra.mxu0 %v1167_v36  ;;  %1253 = vmatprep.subr.mxu1 %v2471_v59 }
 0x124   :  { %1340 = vmatprep.subr.mxu0 %v1166_v38  ;;  %1254 = vmatpush1.msra.mxu1 %v2470_v39 }
 0x125   :  { %1341 = vmatpush1.msra.mxu0 %v1165_v60  ;;  %1255 = vmatprep.subr.mxu1 %v2469_v17  ;;  %v2552_v60 = vld [vmem:[%s4363_s5 + $0x3b0] sm:$0xff] }
 0x126   :  { %1342 = vmatprep.subr.mxu0 %v1164_v41  ;;  %1256 = vmatpush1.msra.mxu1 %v2468_v16 }
 0x127   :  { %1343 = vmatpush1.msra.mxu0 %v1163_v18  ;;  %1257 = vmatprep.subr.mxu1 %v2467_v21  ;;  %v2551_v18 = vld [vmem:[%s4363_s5 + $0x3a8] sm:$0xff]  ;;  %v2550_v21 = vld [vmem:[%s4363_s5 + $0x3a0] sm:$0xff] }
 0x128   :  { %1344 = vmatprep.subr.mxu0 %v1162_v33  ;;  %1258 = vmatpush1.msra.mxu1 %v2466_v62 }
 0x129   :  { %1345 = vmatpush1.msra.mxu0 %v1161_v61  ;;  %1259 = vmatprep.subr.mxu1 %v2465_v43 }
 0x12a   :  { %1346 = vmatprep.subr.mxu0 %v1160_v22  ;;  %1260 = vmatpush1.msra.mxu1 %v2464_v45  ;;  %v2549_v22 = vld [vmem:[%s4363_s5 + $0x398] sm:$0xff]  ;;  %v2548_v45 = vld [vmem:[%s4363_s5 + $0x390] sm:$0xff] }
 0x12b   :  { %1347 = vmatpush1.msra.mxu0 %v1159_v44  ;;  %1261 = vmatprep.subr.mxu1 %v2463_v0 }
 0x12c   :  { %1558 = vmatprep.subr.mxu0 %v2553_v63  ;;  %1262 = vmatpush1.msra.mxu1 %v2462_v46  ;;  %v2547_v63 = vld [vmem:[%s4363_s5 + $0x388] sm:$0xff] }
 0x12d   :  { %1263 = vmatprep.subr.mxu1 %v2461_v48  ;;  %v2546_v48 = vld [vmem:[%s4363_s5 + $0x380] sm:$0xff] }
 0x12e   :  { %1264 = vmatpush1.msra.mxu1 %v2460_v31 }
 0x12f   :  { %1265 = vmatprep.subr.mxu1 %v2459_v32 }
 0x130   :  { %1266 = vmatpush1.msra.mxu1 %v2458_v27  ;;  %v2520_v27 = vld [vmem:[%s4363_s5 + $0x2c0] sm:$0xff] }
 0x131   :  { %1436 = vmatprep.subr.mxu1 %v2521_v34  ;;  %v2545_v34 = vld [vmem:[%s4363_s5 + $0x378] sm:$0xff] }
 0x1c3   :  { %v937_v40 = vpop.f32.mrf.mxu1  ;;  %v1062_v47 = vpop.f32.mrf.mxu0 }
 0x1c4   :  { %v1091_v1 = vmax.f32 %v937_v40, %v1062_v47 }
 0x1c5   :  { %v939_v2 = vpop.f32.mrf.mxu1  ;;  %v1064_v4 = vpop.f32.mrf.mxu0 }
 0x1c6   :  { %v1099_v49 = vrot.slane %v1091_v1, 1  ;;  %v2544_v2 = vld [vmem:[%s4363_s5 + $0x370] sm:$0xff] }
 0x1c7   :  { %v942_v50 = vpop.f32.mrf.mxu1  ;;  %v1067_v5 = vpop.f32.mrf.mxu0  ;;  %v2518_v4 = vld [vmem:[%s4363_s5 + $0x2b0] sm:$0xff] }
 0x1c8   :  { %v1103_v6 = vmax.f32 %v1091_v1, %v1099_v49  ;;  %v1092_v51 = vmax.f32 %v942_v50, %v1067_v5  ;;  %v2519_v1 = vld [vmem:[%s4363_s5 + $0x2b8] sm:$0xff]  ;;  %v2543_v49 = vld [vmem:[%s4363_s5 + $0x368] sm:$0xff]  ;;  %v2542_v5 = vld [vmem:[%s4363_s5 + $0x360] sm:$0xff] }
 0x1c9   :  { %v944_v52 = vpop.f32.mrf.mxu1  ;;  %v1069_v7 = vpop.f32.mrf.mxu0  ;;  %v2517_v50 = vld [vmem:[%s4363_s5 + $0x2a8] sm:$0xff] }
 0x1ca   :  { %v1105_v42 = vmax.f32 %v1103_v6, 0.0  ;;  %v1121_v26 = vrot.slane %v1092_v51, 1  ;;  %v2516_v6 = vld [vmem:[%s4363_s5 + $0x2a0] sm:$0xff]  ;;  %v2515_v52 = vld [vmem:[%s4363_s5 + $0x298] sm:$0xff] }
 0x1cb   :  { %v947_v8 = vpop.f32.mrf.mxu1  ;;  %v1072_v53 = vpop.f32.mrf.mxu0 }
 0x1cc   :  { %1108 = vst.msk [vmem:[#allocation2] sm:$0x1] %vm1107_vm6, %v1105_v42  ;;  %v1125_v54 = vmax.f32 %v1092_v51, %v1121_v26  ;;  %v1093_v9 = vmax.f32 %v947_v8, %v1072_v53  ;;  %v2541_v51 = vld [vmem:[%s4363_s5 + $0x358] sm:$0xff]  ;;  %v2514_v26 = vld [vmem:[%s4363_s5 + $0x290] sm:$0xff]  ;;  %v2539_v8 = vld [vmem:[%s4363_s5 + $0x348] sm:$0xff] }
 0x1cd   :  { %1111 = vst.msk [vmem:[#allocation2 - $0x1] sm:$0x4] %vm1110_vm7, %v1105_v42  ;;  %v949_v10 = vpop.f32.mrf.mxu1  ;;  %v1074_v11 = vpop.f32.mrf.mxu0  ;;  %v2513_v53 = vld [vmem:[%s4363_s5 + $0x288] sm:$0xff] }
 0x1ce   :  { %1114 = vst.msk [vmem:[#allocation2 - $0x2] sm:$0x10] %vm1113_vm8, %v1105_v42  ;;  %v1127_v15 = vmax.f32 %v1125_v54, 0.0  ;;  %v1139_v55 = vrot.slane %v1093_v9, 1  ;;  %v2538_v54 = vld [vmem:[%s4363_s5 + $0x340] sm:$0xff]  ;;  %v2537_v10 = vld [vmem:[%s4363_s5 + $0x338] sm:$0xff] }
 0x1cf   :  { %1117 = vst.msk [vmem:[#allocation2 - $0x3] sm:$0x40] %vm1116_vm9, %v1105_v42  ;;  %v952_v56 = vpop.f32.mrf.mxu1  ;;  %v1077_v19 = vpop.f32.mrf.mxu0  ;;  %v2540_v42 = vld [vmem:[%s4363_s5 + $0x350] sm:$0xff]  ;;  %v2511_v11 = vld [vmem:[%s4363_s5 + $0x278] sm:$0xff] }
 0x1d0   :  { %1129 = vst.msk [vmem:[#allocation2 + $0x4] sm:$0x1] %vm1107_vm6, %v1127_v15  ;;  %v1143_v24 = vmax.f32 %v1093_v9, %v1139_v55  ;;  %v1094_v25 = vmax.f32 %v952_v56, %v1077_v19  ;;  %v2512_v9 = vld [vmem:[%s4363_s5 + $0x280] sm:$0xff]  ;;  %v2510_v55 = vld [vmem:[%s4363_s5 + $0x270] sm:$0xff]  ;;  %v2535_v19 = vld [vmem:[%s4363_s5 + $0x328] sm:$0xff] }
 0x1d1   :  { %1131 = vst.msk [vmem:[#allocation2 + $0x3] sm:$0x4] %vm1110_vm7, %v1127_v15  ;;  %v954_v28 = vpop.f32.mrf.mxu1  ;;  %v1079_v30 = vpop.f32.mrf.mxu0 }
 0x1d2   :  { %1133 = vst.msk [vmem:[#allocation2 + $0x2] sm:$0x10] %vm1113_vm8, %v1127_v15  ;;  %v1145_v12 = vmax.f32 %v1143_v24, 0.0  ;;  %v1100_v13 = vrot.slane %v1094_v25, 1  ;;  %v2509_v28 = vld [vmem:[%s4363_s5 + $0x268] sm:$0xff]  ;;  %v2534_v30 = vld [vmem:[%s4363_s5 + $0x320] sm:$0xff] }
 0x1d3   :  { %1135 = vst.msk [vmem:[#allocation2 + $0x1] sm:$0x40] %vm1116_vm9, %v1127_v15  ;;  %v957_v14 = vpop.f32.mrf.mxu1  ;;  %v1082_v57 = vpop.f32.mrf.mxu0  ;;  %v2536_v15 = vld [vmem:[%s4363_s5 + $0x330] sm:$0xff] }
 0x1d4   :  { %1147 = vst.msk [vmem:[#allocation2 + $0x8] sm:$0x1] %vm1107_vm6, %v1145_v12  ;;  %v1104_v58 = vmax.f32 %v1094_v25, %v1100_v13  ;;  %v1095_v20 = vmax.f32 %v957_v14, %v1082_v57  ;;  %v2533_v13 = vld [vmem:[%s4363_s5 + $0x318] sm:$0xff]  ;;  %v2508_v14 = vld [vmem:[%s4363_s5 + $0x260] sm:$0xff]  ;;  %v2532_v57 = vld [vmem:[%s4363_s5 + $0x310] sm:$0xff] }
 0x1d5   :  { %1149 = vst.msk [vmem:[#allocation2 + $0x7] sm:$0x4] %vm1110_vm7, %v1145_v12  ;;  %v959_v36 = vpop.f32.mrf.mxu1  ;;  %v1084_v37 = vpop.f32.mrf.mxu0 }
 0x1d6   :  { %1151 = vst.msk [vmem:[#allocation2 + $0x6] sm:$0x10] %vm1113_vm8, %v1145_v12  ;;  %v1106_v38 = vmax.f32 %v1104_v58, 0.0  ;;  %v1122_v59 = vrot.slane %v1095_v20, 1  ;;  %v2507_v58 = vld [vmem:[%s4363_s5 + $0x258] sm:$0xff]  ;;  %v2506_v36 = vld [vmem:[%s4363_s5 + $0x250] sm:$0xff] }
 0x1d7   :  { %1153 = vst.msk [vmem:[#allocation2 + $0x5] sm:$0x40] %vm1116_vm9, %v1145_v12  ;;  %v962_v39 = vpop.f32.mrf.mxu1  ;;  %v1087_v41 = vpop.f32.mrf.mxu0  ;;  %v2530_v37 = vld [vmem:[%s4363_s5 + $0x300] sm:$0xff] }
 0x1d8   :  { %1109 = vst.msk [vmem:[#allocation2 + $0x10] sm:$0x1] %vm1107_vm6, %v1106_v38  ;;  %v1126_v16 = vmax.f32 %v1095_v20, %v1122_v59  ;;  %v1096_v33 = vmax.f32 %v962_v39, %v1087_v41  ;;  %v2531_v20 = vld [vmem:[%s4363_s5 + $0x308] sm:$0xff]  ;;  %v2529_v59 = vld [vmem:[%s4363_s5 + $0x2f8] sm:$0xff]  ;;  %v2528_v39 = vld [vmem:[%s4363_s5 + $0x2f0] sm:$0xff] }
 0x1d9   :  { %1112 = vst.msk [vmem:[#allocation2 + $0xf] sm:$0x4] %vm1110_vm7, %v1106_v38  ;;  %v964_v61 = vpop.f32.mrf.mxu1  ;;  %v1089_v62 = vpop.f32.mrf.mxu0  ;;  %v2503_v41 = vld [vmem:[%s4363_s5 + $0x238] sm:$0xff] }
 0x1da   :  { %v3663_v17 = vld [vmem:[#allocation2] sm:$0xff]  ;;  %1115 = vst.msk [vmem:[#allocation2 + $0xe] sm:$0x10] %vm1113_vm8, %v1106_v38  ;;  %v1128_v43 = vmax.f32 %v1126_v16, 0.0  ;;  %v1140_v44 = vrot.slane %v1096_v33, 1  ;;  %v2502_v16 = vld [vmem:[%s4363_s5 + $0x230] sm:$0xff] }
 0x1db   :  { %1118 = vst.msk [vmem:[#allocation2 + $0xd] sm:$0x40] %vm1116_vm9, %v1106_v38  ;;  %2490 = vmatmul.mubr.msk.f32.vlgmr.msra.gmra.mxu0 %vm1230_vm10, %v3663_v17  ;;  %v1193_v31 = vrot.slane %v3663_v17, 1  ;;  %v2505_v38 = vld [vmem:[%s4363_s5 + $0x248] sm:$0xff]  ;;  %v2525_v61 = vld [vmem:[%s4363_s5 + $0x2d8] sm:$0xff]  ;;  %v2500_v62 = vld [vmem:[%s4363_s5 + $0x220] sm:$0xff] }
 0x1dc   :  { %1559 = vmatpush1.msra.mxu0 %v2552_v60  ;;  %1386 = vmatprep.mubr.f32.mxu0 %v2772_v3  ;;  %1130 = vst.msk [vmem:[#allocation2 + $0x14] sm:$0x1] %vm1107_vm6, %v1128_v43  ;;  %v1144_v46 = vmax.f32 %v1096_v33, %v1140_v44  ;;  %v2504_v60 = vld [vmem:[%s4363_s5 + $0x240] sm:$0xff]  ;;  %v2499_v44 = vld [vmem:[%s4363_s5 + $0x218] sm:$0xff] }
 0x1dd   :  { %1560 = vmatprep.subr.mxu0 %v2551_v18  ;;  %1132 = vst.msk [vmem:[#allocation2 + $0x13] sm:$0x4] %vm1110_vm7, %v1128_v43  ;;  %v2527_v18 = vld [vmem:[%s4363_s5 + $0x2e8] sm:$0xff]  ;;  %v2526_v33 = vld [vmem:[%s4363_s5 + $0x2e0] sm:$0xff] }
 0x1de   :  { %1561 = vmatpush1.msra.mxu0 %v2550_v21  ;;  %v3687_v0 = vld [vmem:[#allocation2 + $0x8] sm:$0xf]  ;;  %1134 = vst.msk [vmem:[#allocation2 + $0x12] sm:$0x10] %vm1113_vm8, %v1128_v43  ;;  %v1146_v40 = vmax.f32 %v1144_v46, 0.0 }
 0x1df   :  { %1136 = vst.msk [vmem:[#allocation2 + $0x11] sm:$0x40] %vm1116_vm9, %v1128_v43  ;;  %1562 = vmatprep.subr.mxu0 %v2549_v22  ;;  %v1194_v32 = vrot.slane %v3687_v0, 1  ;;  %v2501_v21 = vld [vmem:[%s4363_s5 + $0x228] sm:$0xff]  ;;  %v2524_v22 = vld [vmem:[%s4363_s5 + $0x2d0] sm:$0xff]  ;;  %v1516_v43 = vrot.slane %v3687_v0, 3 }
 0x1e0   :  { %1563 = vmatpush1.msra.mxu0 %v2548_v45  ;;  %1148 = vst.msk [vmem:[#allocation2 + $0x18] sm:$0x1] %vm1107_vm6, %v1146_v40  ;;  %v2498_v45 = vld [vmem:[%s4363_s5 + $0x210] sm:$0xff]  ;;  %v2497_v46 = vld [vmem:[%s4363_s5 + $0x208] sm:$0xff] }
 0x1e1   :  { %1564 = vmatprep.subr.mxu0 %v2547_v63  ;;  %v1195_v47 = vsel %vm70_vm1, %v1193_v31, %v1194_v32  ;;  %1150 = vst.msk [vmem:[#allocation2 + $0x17] sm:$0x4] %vm1110_vm7, %v1146_v40  ;;  %v1515_v63 = vrot.slane %v3663_v17, 3  ;;  %v2496_v31 = vld [vmem:[%s4363_s5 + $0x200] sm:$0xff] }
 0x1e2   :  { %1565 = vmatpush1.msra.mxu0 %v2546_v48  ;;  %2488 = vmatmul.mubr.msk.f32.vlgmr.msra.gmra.mxu1 %vm1230_vm10, %v1195_v47  ;;  %1152 = vst.msk [vmem:[#allocation2 + $0x16] sm:$0x10] %vm1113_vm8, %v1146_v40  ;;  %v2493_v47 = vld [vmem:[%s4363_s5 + $0x1e8] sm:$0xff] }
 0x1e3   :  { %1154 = vst.msk [vmem:[#allocation2 + $0x15] sm:$0x40] %vm1116_vm9, %v1146_v40  ;;  %1437 = vmatpush1.msra.mxu1 %v2520_v27  ;;  %1566 = vmatprep.subr.mxu0 %v2545_v34  ;;  %v1517_v48 = vsel %vm489_vm4, %v1515_v63, %v1516_v43  ;;  %v2495_v27 = vld [vmem:[%s4363_s5 + $0x1f8] sm:$0xff]  ;;  %v2494_v34 = vld [vmem:[%s4363_s5 + $0x1f0] sm:$0xff]  ;;  %v1788_v43 = vld [vmem:[%s4365_s7 + $0x68] sm:$0xff] }
 0x1e4   :  { %1438 = vmatprep.subr.mxu1 %v2519_v1  ;;  %1567 = vmatpush1.msra.mxu0 %v2544_v2  ;;  %v1394_v1 = vrot.slane %v3687_v0, 2  ;;  %v1889_v63 = vld [vmem:[%s4366_s8 + $0x60] sm:$0xff] }
 0x1e5   :  { %1439 = vmatpush1.msra.mxu1 %v2518_v4  ;;  %1568 = vmatprep.subr.mxu0 %v2543_v49  ;;  %v2492_v4 = vld [vmem:[%s4363_s5 + $0x1e0] sm:$0xff]  ;;  %v1393_v49 = vrot.slane %v3663_v17, 2 }
 0x1e6   :  { %1440 = vmatprep.subr.mxu1 %v2517_v50  ;;  %1569 = vmatpush1.msra.mxu0 %v2542_v5  ;;  %v3737_v7 = vld [vmem:[#allocation2 + $0x10] sm:$0xff]  ;;  %v2585_v50 = vld [vmem:[%s4363_s5 + $0x4a8] sm:$0xff]  ;;  %v2584_v5 = vld [vmem:[%s4363_s5 + $0x4a0] sm:$0xff] }
 0x1e7   :  { %1441 = vmatpush1.msra.mxu1 %v2516_v6  ;;  %1570 = vmatprep.subr.mxu0 %v2541_v51  ;;  %v1196_v24 = vrot.slane %v3737_v7, 1  ;;  %v1518_v40 = vrot.slane %v3737_v7, 3  ;;  %v1395_v6 = vsel %vm334_vm3, %v1393_v49, %v1394_v1  ;;  %v2583_v51 = vld [vmem:[%s4363_s5 + $0x498] sm:$0xff]  ;;  %v1883_v49 = vld [vmem:[%s4366_s8 + $0x30] sm:$0xff] }
 0x1e8   :  { %2491 = vmatmul.mubr.msk.f32.gmra.mxu0 %vm1230_vm10, %v3737_v7  ;;  %1442 = vmatprep.subr.mxu1 %v2515_v52  ;;  %v1782_v1 = vld [vmem:[%s4365_s7 + $0x38] sm:$0xff] }
 0x1e9   :  { %1571 = vmatpush1.msra.mxu0 %v2540_v42  ;;  %1443 = vmatpush1.msra.mxu1 %v2514_v26  ;;  %v2582_v42 = vld [vmem:[%s4363_s5 + $0x490] sm:$0xff]  ;;  %v1396_v26 = vrot.slane %v3737_v7, 2 }
 0x1ea   :  { %1572 = vmatprep.subr.mxu0 %v2539_v8  ;;  %1444 = vmatprep.subr.mxu1 %v2513_v53  ;;  %v3771_v56 = vld [vmem:[#allocation2 + $0x18] sm:$0xf]  ;;  %v2581_v8 = vld [vmem:[%s4363_s5 + $0x488] sm:$0xff]  ;;  %v2580_v53 = vld [vmem:[%s4363_s5 + $0x480] sm:$0xff] }
 0x1eb   :  { %1573 = vmatpush1.msra.mxu0 %v2538_v54  ;;  %1445 = vmatpush1.msra.mxu1 %v2512_v9  ;;  %v1197_v25 = vrot.slane %v3771_v56, 1  ;;  %v1519_v32 = vrot.slane %v3771_v56, 3  ;;  %v1397_v52 = vrot.slane %v3771_v56, 2  ;;  %v2579_v9 = vld [vmem:[%s4363_s5 + $0x478] sm:$0xff] }
 0x1ec   :  { %1574 = vmatprep.subr.mxu0 %v2537_v10  ;;  %1446 = vmatprep.subr.mxu1 %v2511_v11  ;;  %v2578_v10 = vld [vmem:[%s4363_s5 + $0x470] sm:$0xff]  ;;  %v2577_v11 = vld [vmem:[%s4363_s5 + $0x468] sm:$0xff] }
 0x1ed   :  { %1575 = vmatpush1.msra.mxu0 %v2536_v15  ;;  %1447 = vmatpush1.msra.mxu1 %v2510_v55  ;;  %v1198_v12 = vsel %vm70_vm1, %v1196_v24, %v1197_v25  ;;  %v1520_v2 = vsel %vm489_vm4, %v1518_v40, %v1519_v32  ;;  %v1398_v54 = vsel %vm334_vm3, %v1396_v26, %v1397_v52  ;;  %v2576_v15 = vld [vmem:[%s4363_s5 + $0x460] sm:$0xff]  ;;  %v2575_v55 = vld [vmem:[%s4363_s5 + $0x458] sm:$0xff]  ;;  %v2573_v24 = vld [vmem:[%s4363_s5 + $0x448] sm:$0xff] }
 0x1ee   :  { %1576 = vmatprep.subr.mxu0 %v2535_v19  ;;  %1305 = vmatprep.mubr.f32.mxu1 %v2772_v3  ;;  %v2574_v19 = vld [vmem:[%s4363_s5 + $0x450] sm:$0xff]  ;;  %v2572_v25 = vld [vmem:[%s4363_s5 + $0x440] sm:$0xff]  ;;  %v1778_v52 = vld [vmem:[%s4365_s7 + $0x18] sm:$0xff] }
 0x1ef   :  { %1448 = vmatprep.subr.mxu1 %v2509_v28  ;;  %1577 = vmatpush1.msra.mxu0 %v2534_v30  ;;  %v2571_v28 = vld [vmem:[%s4363_s5 + $0x438] sm:$0xff]  ;;  %v2570_v30 = vld [vmem:[%s4363_s5 + $0x430] sm:$0xff]  ;;  %v1783_v40 = vld [vmem:[%s4365_s7 + $0x40] sm:$0xff] }
 0x1f0   :  { %2489 = vmatmul.mubr.msk.f32.gmra.mxu1 %vm1230_vm10, %v1198_v12  ;;  %1578 = vmatprep.subr.mxu0 %v2533_v13  ;;  %v2569_v12 = vld [vmem:[%s4363_s5 + $0x428] sm:$0xff]  ;;  %v2568_v13 = vld [vmem:[%s4363_s5 + $0x420] sm:$0xff]  ;;  %v1887_v32 = vld [vmem:[%s4366_s8 + $0x50] sm:$0xff] }
 0x1f1   :  { %1449 = vmatpush1.msra.mxu1 %v2508_v14  ;;  %1579 = vmatpush1.msra.mxu0 %v2532_v57  ;;  %v2567_v14 = vld [vmem:[%s4363_s5 + $0x418] sm:$0xff]  ;;  %v2566_v57 = vld [vmem:[%s4363_s5 + $0x410] sm:$0xff] }
 0x1f2   :  { %1450 = vmatprep.subr.mxu1 %v2507_v58  ;;  %1580 = vmatprep.subr.mxu0 %v2531_v20  ;;  %v2565_v58 = vld [vmem:[%s4363_s5 + $0x408] sm:$0xff]  ;;  %v2564_v20 = vld [vmem:[%s4363_s5 + $0x400] sm:$0xff]  ;;  %v1777_v26 = vld [vmem:[%s4365_s7 + $0x10] sm:$0xff] }
 0x1f3   :  { %1451 = vmatpush1.msra.mxu1 %v2506_v36  ;;  %1581 = vmatpush1.msra.mxu0 %v2530_v37  ;;  %v2563_v36 = vld [vmem:[%s4363_s5 + $0x3f8] sm:$0xff]  ;;  %v2562_v37 = vld [vmem:[%s4363_s5 + $0x3f0] sm:$0xff] }
 0x1f4   :  { %1452 = vmatprep.subr.mxu1 %v2505_v38  ;;  %1582 = vmatprep.subr.mxu0 %v2529_v59  ;;  %v2561_v38 = vld [vmem:[%s4363_s5 + $0x3e8] sm:$0xff]  ;;  %v2560_v59 = vld [vmem:[%s4363_s5 + $0x3e0] sm:$0xff] }
 0x1f5   :  { %1453 = vmatpush1.msra.mxu1 %v2504_v60  ;;  %1583 = vmatpush1.msra.mxu0 %v2528_v39  ;;  %v2559_v60 = vld [vmem:[%s4363_s5 + $0x3d8] sm:$0xff]  ;;  %v2558_v39 = vld [vmem:[%s4363_s5 + $0x3d0] sm:$0xff] }
 0x1f6   :  { %1454 = vmatprep.subr.mxu1 %v2503_v41  ;;  %1584 = vmatprep.subr.mxu0 %v2527_v18  ;;  %v2557_v41 = vld [vmem:[%s4363_s5 + $0x3c8] sm:$0xff]  ;;  %v1638_v18 = vrot.slane %v3687_v0, 4  ;;  %v1640_v0 = vrot.slane %v3737_v7, 4  ;;  %v1789_v7 = vld [vmem:[%s4365_s7 + $0x70] sm:$0xff] }
 0x1f7   :  { %1455 = vmatpush1.msra.mxu1 %v2502_v16  ;;  %1585 = vmatpush1.msra.mxu0 %v2526_v33  ;;  %v2556_v16 = vld [vmem:[%s4363_s5 + $0x3c0] sm:$0xff]  ;;  %v1637_v33 = vrot.slane %v3663_v17, 4  ;;  %v1790_v17 = vld [vmem:[%s4365_s7 + $0x78] sm:$0xff] }
 0x1f8   :  { %1456 = vmatprep.subr.mxu1 %v2501_v21  ;;  %1586 = vmatprep.subr.mxu0 %v2525_v61  ;;  %v1641_v61 = vrot.slane %v3771_v56, 4  ;;  %v1892_v56 = vld [vmem:[%s4366_s8 + $0x78] sm:$0xff] }
 0x1f9   :  { %1457 = vmatpush1.msra.mxu1 %v2500_v62  ;;  %1587 = vmatpush1.msra.mxu0 %v2524_v22  ;;  %v1639_v21 = vsel %vm107_vm0, %v1637_v33, %v1638_v18  ;;  %v1891_v22 = vld [vmem:[%s4366_s8 + $0x70] sm:$0xff] }
 0x1fa   :  { %1458 = vmatprep.subr.mxu1 %v2499_v44  ;;  %1620 = vmatprep.mubr.f32.mxu0 %v2772_v3  ;;  %v1642_v62 = vsel %vm107_vm0, %v1640_v0, %v1641_v61  ;;  %v1890_v44 = vld [vmem:[%s4366_s8 + $0x68] sm:$0xff]  ;;  %vm2368_vm0 = vcmask 1024  }
 0x1fb   :  { %1459 = vmatpush1.msra.mxu1 %v2498_v45  ;;  %2554 = vmatmul.mubr.msk.f32.vlgmr.msra.gmra.mxu0 %vm1230_vm10, %v1517_v48  ;;  %v1787_v45 = vld [vmem:[%s4365_s7 + $0x60] sm:$0xff]  ;;  %v1888_v48 = vld [vmem:[%s4366_s8 + $0x58] sm:$0xff] }
 0x1fc   :  { %1460 = vmatprep.subr.mxu1 %v2497_v46  ;;  %1626 = vmatprep.mubr.f32.mxu0 %v2772_v3  ;;  %v1786_v46 = vld [vmem:[%s4365_s7 + $0x58] sm:$0xff] }
 0x1fd   :  { %1461 = vmatpush1.msra.mxu1 %v2496_v31  ;;  %1498 = vmatprep.mubr.f32.mxu1 %v2772_v3  ;;  %v1785_v31 = vld [vmem:[%s4365_s7 + $0x50] sm:$0xff] }
 0x1fe   :  { %1462 = vmatprep.subr.mxu1 %v2495_v27  ;;  %1802 = vmatprep.subr.mxu0 %v2772_v3  ;;  %v1784_v27 = vld [vmem:[%s4365_s7 + $0x48] sm:$0xff] }
 0x1ff   :  { %1463 = vmatpush1.msra.mxu1 %v2494_v34  ;;  %2555 = vmatmul.mubr.msk.f32.gmra.mxu0 %vm1230_vm10, %v1520_v2  ;;  %v1886_v34 = vld [vmem:[%s4366_s8 + $0x48] sm:$0xff]  ;;  %v1884_v2 = vld [vmem:[%s4366_s8 + $0x38] sm:$0xff] }
 0x200   :  { %1464 = vmatprep.subr.mxu1 %v2493_v47  ;;  %1803 = vmatpush1.msra.mxu0 %v1790_v17  ;;  %v1885_v47 = vld [vmem:[%s4366_s8 + $0x40] sm:$0xff] }
 0x201   :  { %1465 = vmatpush1.msra.mxu1 %v2492_v4  ;;  %1804 = vmatprep.subr.mxu0 %v2772_v3  ;;  %v1781_v4 = vld [vmem:[%s4365_s7 + $0x30] sm:$0xff]  ;;  %v1759_v17 = vld [vmem:[%s4367_s6] sm:$0x3] }
 0x202   :  { %2522 = vmatmul.mubr.msk.f32.vlgmr.msra.gmra.mxu1 %vm1230_vm10, %v1395_v6  ;;  %1680 = vmatprep.subr.mxu1 %v2585_v50  ;;  %v1780_v50 = vld [vmem:[%s4365_s7 + $0x28] sm:$0xff]  ;;  %v1779_v6 = vld [vmem:[%s4365_s7 + $0x20] sm:$0xff] }
 0x203   :  { %1681 = vmatpush1.msra.mxu1 %v2584_v5  ;;  %1504 = vmatprep.mubr.f32.mxu1 %v2772_v3  ;;  %v1882_v5 = vld [vmem:[%s4366_s8 + $0x28] sm:$0xff] }
 0x204   :  { %1682 = vmatprep.subr.mxu1 %v2583_v51  ;;  %1805 = vmatpush1.msra.mxu0 %v1789_v7  ;;  %v1881_v51 = vld [vmem:[%s4366_s8 + $0x20] sm:$0xff] }
 0x205   :  { %1683 = vmatpush1.msra.mxu1 %v2582_v42  ;;  %1806 = vmatprep.subr.mxu0 %v2772_v3  ;;  %v1880_v42 = vld [vmem:[%s4366_s8 + $0x18] sm:$0xff] }
 0x206   :  { %2523 = vmatmul.mubr.msk.f32.gmra.mxu1 %vm1230_vm10, %v1398_v54  ;;  %1684 = vmatprep.subr.mxu1 %v2581_v8  ;;  %v1879_v8 = vld [vmem:[%s4366_s8 + $0x10] sm:$0xff]  ;;  %v1878_v54 = vld [vmem:[%s4366_s8 + $0x8] sm:$0xff] }
 0x207   :  { %1685 = vmatpush1.msra.mxu1 %v2580_v53  ;;  %1742 = vmatprep.mubr.f32.mxu1 %v2772_v3  ;;  %v1776_v53 = vld [vmem:[%s4365_s7 + $0x8] sm:$0xff] }
 0x208   :  { %1686 = vmatprep.subr.mxu1 %v2579_v9  ;;  %1807 = vmatpush1.msra.mxu0 %v1788_v43  ;;  %v1775_v9 = vld [vmem:[%s4365_s7] sm:$0xff] }
 0x209   :  { %1687 = vmatpush1.msra.mxu1 %v2578_v10  ;;  %1808 = vmatprep.subr.mxu0 %v2772_v3  ;;  %v1877_v10 = vld [vmem:[%s4366_s8] sm:$0xff] }
 0x20a   :  { %1688 = vmatprep.subr.mxu1 %v2577_v11  ;;  %1809 = vmatpush1.msra.mxu0 %v1787_v45  ;;  %v1794_v11 = vld [vmem:[%s4365_s7 + $0x98] sm:$0xff] }
 0x20b   :  { %1689 = vmatpush1.msra.mxu1 %v2576_v15  ;;  %1810 = vmatprep.subr.mxu0 %v2772_v3  ;;  %v1896_v15 = vld [vmem:[%s4366_s8 + $0x98] sm:$0xff] }
 0x20c   :  { %1690 = vmatprep.subr.mxu1 %v2575_v55  ;;  %1811 = vmatpush1.msra.mxu0 %v1786_v46  ;;  %v1793_v55 = vld [vmem:[%s4365_s7 + $0x90] sm:$0xff] }
 0x20d   :  { %1691 = vmatpush1.msra.mxu1 %v2574_v19  ;;  %1812 = vmatprep.subr.mxu0 %v2772_v3  ;;  %v1895_v19 = vld [vmem:[%s4366_s8 + $0x90] sm:$0xff] }
 0x20e   :  { %1692 = vmatprep.subr.mxu1 %v2573_v24  ;;  %1813 = vmatpush1.msra.mxu0 %v1785_v31  ;;  %v1792_v24 = vld [vmem:[%s4365_s7 + $0x88] sm:$0xff] }
 0x20f   :  { %1693 = vmatpush1.msra.mxu1 %v2572_v25  ;;  %1814 = vmatprep.subr.mxu0 %v2772_v3  ;;  %v1894_v25 = vld [vmem:[%s4366_s8 + $0x88] sm:$0xff] }
 0x210   :  { %1694 = vmatprep.subr.mxu1 %v2571_v28  ;;  %1815 = vmatpush1.msra.mxu0 %v1784_v27  ;;  %v1791_v28 = vld [vmem:[%s4365_s7 + $0x80] sm:$0xff] }
 0x211   :  { %1695 = vmatpush1.msra.mxu1 %v2570_v30  ;;  %1816 = vmatprep.subr.mxu0 %v2772_v3  ;;  %v1893_v30 = vld [vmem:[%s4366_s8 + $0x80] sm:$0xff] }
 0x212   :  { %1696 = vmatprep.subr.mxu1 %v2569_v12  ;;  %1817 = vmatpush1.msra.mxu0 %v1783_v40 }
 0x213   :  { %1697 = vmatpush1.msra.mxu1 %v2568_v13  ;;  %1818 = vmatprep.subr.mxu0 %v2772_v3 }
 0x214   :  { %1698 = vmatprep.subr.mxu1 %v2567_v14  ;;  %1819 = vmatpush1.msra.mxu0 %v1782_v1 }
 0x215   :  { %1699 = vmatpush1.msra.mxu1 %v2566_v57  ;;  %1820 = vmatprep.subr.mxu0 %v2772_v3 }
 0x216   :  { %1700 = vmatprep.subr.mxu1 %v2565_v58  ;;  %1821 = vmatpush1.msra.mxu0 %v1781_v4 }
 0x217   :  { %1701 = vmatpush1.msra.mxu1 %v2564_v20  ;;  %1822 = vmatprep.subr.mxu0 %v2772_v3 }
 0x218   :  { %1702 = vmatprep.subr.mxu1 %v2563_v36  ;;  %1823 = vmatpush1.msra.mxu0 %v1780_v50  ;;  %v1994_v50 = vld [vmem:[%s4368_s9 + $0x48] sm:$0xff] }
 0x219   :  { %1703 = vmatpush1.msra.mxu1 %v2562_v37  ;;  %1824 = vmatprep.subr.mxu0 %v2772_v3 }
 0x21a   :  { %1704 = vmatprep.subr.mxu1 %v2561_v38  ;;  %1825 = vmatpush1.msra.mxu0 %v1779_v6  ;;  %v1993_v6 = vld [vmem:[%s4368_s9 + $0x40] sm:$0xff] }
 0x21b   :  { %1705 = vmatpush1.msra.mxu1 %v2560_v59  ;;  %1826 = vmatprep.subr.mxu0 %v2772_v3 }
 0x21c   :  { %1706 = vmatprep.subr.mxu1 %v2559_v60  ;;  %1827 = vmatpush1.msra.mxu0 %v1778_v52  ;;  %v1992_v52 = vld [vmem:[%s4368_s9 + $0x38] sm:$0xff] }
 0x21d   :  { %1707 = vmatpush1.msra.mxu1 %v2558_v39  ;;  %1828 = vmatprep.subr.mxu0 %v2772_v3 }
 0x21e   :  { %1708 = vmatprep.subr.mxu1 %v2557_v41  ;;  %1829 = vmatpush1.msra.mxu0 %v1777_v26  ;;  %v1991_v26 = vld [vmem:[%s4368_s9 + $0x30] sm:$0xff] }
 0x21f   :  { %1709 = vmatpush1.msra.mxu1 %v2556_v16  ;;  %1830 = vmatprep.subr.mxu0 %v2772_v3 }
 0x220   :  { %2586 = vmatmul.mubr.msk.f32.vlgmr.msra.gmra.mxu1 %vm1230_vm10, %v1639_v21  ;;  %1897 = vmatprep.subr.mxu1 %v2772_v3 }
 0x221   :  { %1748 = vmatprep.mubr.f32.mxu1 %v2772_v3  ;;  %1898 = vmatpush1.msra.mxu1 %v1892_v56 }
 0x222   :  { %1899 = vmatprep.subr.mxu1 %v2772_v3  ;;  %1831 = vmatpush1.msra.mxu0 %v1776_v53  ;;  %v1990_v53 = vld [vmem:[%s4368_s9 + $0x28] sm:$0xff] }
 0x223   :  { %1900 = vmatpush1.msra.mxu1 %v1891_v22  ;;  %1832 = vmatprep.subr.mxu0 %v2772_v3 }
 0x224   :  { %2587 = vmatmul.mubr.msk.f32.gmra.mxu1 %vm1230_vm10, %v1642_v62  ;;  %1901 = vmatprep.subr.mxu1 %v2772_v3 }
 0x225   :  { %1902 = vmatpush1.msra.mxu1 %v1890_v44  ;;  %1833 = vmatpush1.msra.mxu0 %v1775_v9  ;;  %v1989_v9 = vld [vmem:[%s4368_s9 + $0x20] sm:$0xff] }
 0x226   :  { %1903 = vmatprep.subr.mxu1 %v2772_v3  ;;  %1858 = vmatprep.subr.mxu0 %v2772_v3 }
 0x227   :  { %1904 = vmatpush1.msra.mxu1 %v1889_v63  ;;  %1859 = vmatpush2.msra.mxu0 %v1794_v11  ;;  %v1768_v63 = vrot.slane %v1759_v17, %v806_v29  ;;  %v1988_v11 = vld [vmem:[%s4368_s9 + $0x18] sm:$0xff] }
 0x228   :  { %1905 = vmatprep.subr.mxu1 %v2772_v3  ;;  %1860 = vmatprep.subr.mxu0 %v2772_v3 }
 0x229   :  { %1906 = vmatpush1.msra.mxu1 %v1888_v48  ;;  %1861 = vmatpush2.msra.mxu0 %v1793_v55  ;;  %v1764_v48 = vrot.slane %v1759_v17, %v802_v35  ;;  %v1987_v55 = vld [vmem:[%s4368_s9 + $0x10] sm:$0xff]  ;;  %v2625_v17 = vld [vmem:[%s4368_s9 + $0x138] sm:$0xff] }
 0x22a   :  { %1907 = vmatprep.subr.mxu1 %v2772_v3  ;;  %1862 = vmatprep.subr.mxu0 %v2772_v3 }
 0x22b   :  { %1908 = vmatpush1.msra.mxu1 %v1887_v32  ;;  %1863 = vmatpush2.msra.mxu0 %v1792_v24  ;;  %v1986_v24 = vld [vmem:[%s4368_s9 + $0x8] sm:$0xff] }
 0x22c   :  { %1909 = vmatprep.subr.mxu1 %v2772_v3  ;;  %1864 = vmatprep.subr.mxu0 %v2772_v3 }
 0x22d   :  { %1910 = vmatpush1.msra.mxu1 %v1886_v34  ;;  %1865 = vmatpush2.msra.mxu0 %v1791_v28  ;;  %v1985_v28 = vld [vmem:[%s4368_s9] sm:$0xff] }
 0x22e   :  { %1911 = vmatprep.subr.mxu1 %v2772_v3  ;;  %2674 = vmatprep.subr.mxu0 %v2772_v3 }
 0x22f   :  { %1912 = vmatpush1.msra.mxu1 %v1885_v47 }
 0x230   :  { %1913 = vmatprep.subr.mxu1 %v2772_v3 }
 0x231   :  { %1914 = vmatpush1.msra.mxu1 %v1884_v2 }
 0x232   :  { %1915 = vmatprep.subr.mxu1 %v2772_v3 }
 0x233   :  { %1916 = vmatpush1.msra.mxu1 %v1883_v49 }
 0x234   :  { %1917 = vmatprep.subr.mxu1 %v2772_v3 }
 0x235   :  { %1918 = vmatpush1.msra.mxu1 %v1882_v5 }
 0x236   :  { %1919 = vmatprep.subr.mxu1 %v2772_v3 }
 0x237   :  { %1920 = vmatpush1.msra.mxu1 %v1881_v51  ;;  %v2602_v51 = vld [vmem:[%s4368_s9 + $0x90] sm:$0xff] }
 0x238   :  { %1921 = vmatprep.subr.mxu1 %v2772_v3 }
 0x239   :  { %1922 = vmatpush1.msra.mxu1 %v1880_v42  ;;  %v2601_v42 = vld [vmem:[%s4368_s9 + $0x88] sm:$0xff] }
 0x23a   :  { %1923 = vmatprep.subr.mxu1 %v2772_v3 }
 0x23b   :  { %1924 = vmatpush1.msra.mxu1 %v1879_v8  ;;  %v2600_v8 = vld [vmem:[%s4368_s9 + $0x80] sm:$0xff] }
 0x23c   :  { %1925 = vmatprep.subr.mxu1 %v2772_v3 }
 0x23d   :  { %1926 = vmatpush1.msra.mxu1 %v1878_v54  ;;  %v2599_v54 = vld [vmem:[%s4368_s9 + $0x78] sm:$0xff] }
 0x23e   :  { %1927 = vmatprep.subr.mxu1 %v2772_v3 }
 0x23f   :  { %1928 = vmatpush1.msra.mxu1 %v1877_v10  ;;  %v2598_v10 = vld [vmem:[%s4368_s9 + $0x70] sm:$0xff] }
 0x240   :  { %1953 = vmatprep.subr.mxu1 %v2772_v3 }
 0x241   :  { %1954 = vmatpush2.msra.mxu1 %v1896_v15  ;;  %v2597_v15 = vld [vmem:[%s4368_s9 + $0x68] sm:$0xff] }
 0x242   :  { %1955 = vmatprep.subr.mxu1 %v2772_v3 }
 0x243   :  { %1956 = vmatpush2.msra.mxu1 %v1895_v19  ;;  %v2596_v19 = vld [vmem:[%s4368_s9 + $0x60] sm:$0xff] }
 0x244   :  { %1957 = vmatprep.subr.mxu1 %v2772_v3 }
 0x245   :  { %1958 = vmatpush2.msra.mxu1 %v1894_v25  ;;  %v2595_v25 = vld [vmem:[%s4368_s9 + $0x58] sm:$0xff] }
 0x246   :  { %1959 = vmatprep.subr.mxu1 %v2772_v3 }
 0x247   :  { %1960 = vmatpush2.msra.mxu1 %v1893_v30  ;;  %v2594_v30 = vld [vmem:[%s4368_s9 + $0x50] sm:$0xff] }
 0x248   :  { %2697 = vmatprep.subr.mxu1 %v2772_v3 }
 0x29b   :  { %v1382_v14 = vpop.f32.mrf.mxu0 }
 0x29d   :  { %v1384_v58 = vpop.f32.mrf.mxu0 }
 0x2a2   :  { %v1301_v12 = vpop.f32.mrf.mxu1 }
 0x2a3   :  { %v1383_v39 = vadd.f32 %v1382_v14, %v1301_v12 }
 0x2a4   :  { %v1303_v13 = vpop.f32.mrf.mxu1 }
 0x2a5   :  { %v1385_v18 = vadd.f32 %v1384_v58, %v1303_v13 }
 0x2a8   :  { %v1388_v36 = vpop.f32.mrf.mxu0 }
 0x2aa   :  { %v1390_v38 = vpop.f32.mrf.mxu0 }
 0x2b0   :  { %v1307_v57 = vpop.f32.mrf.mxu1 }
 0x2b1   :  { %v1389_v61 = vadd.f32 %v1388_v36, %v1307_v57 }
 0x2b2   :  { %v1309_v20 = vpop.f32.mrf.mxu1 }
 0x2b3   :  { %v1391_v62 = vadd.f32 %v1390_v38, %v1309_v20 }
 0x2bb   :  { %v1622_v60 = vpop.f32.mrf.mxu0 }
 0x2bd   :  { %v1624_v16 = vpop.f32.mrf.mxu0 }
 0x2bf   :  { %v1628_v56 = vpop.f32.mrf.mxu0 }
 0x2c1   :  { %v1630_v27 = vpop.f32.mrf.mxu0 }
 0x2c2   :  { %v1500_v37 = vpop.f32.mrf.mxu1 }
 0x2c3   :  { %v1511_v33 = vadd.f32 %v1500_v37, %v1383_v39 }
 0x2c4   :  { %v1502_v59 = vpop.f32.mrf.mxu1 }
 0x2c5   :  { %v1512_v21 = vadd.f32 %v1502_v59, %v1385_v18  ;;  %v1633_v22 = vadd.f32 %v1622_v60, %v1511_v33 }
 0x2c6   :  { %v1506_v41 = vpop.f32.mrf.mxu1 }
 0x2c7   :  { %v1513_v7 = vadd.f32 %v1506_v41, %v1389_v61  ;;  %v1634_v45 = vadd.f32 %v1624_v16, %v1512_v21 }
 0x2c8   :  { %v1508_v0 = vpop.f32.mrf.mxu1 }
 0x2c9   :  { %v1514_v44 = vadd.f32 %v1508_v0, %v1391_v62  ;;  %v1635_v34 = vadd.f32 %v1628_v56, %v1513_v7  ;;  %v2614_v62 = vld [vmem:[%s4368_s9 + $0xe8] sm:$0xff] }
 0x2cb   :  { %v1636_v1 = vadd.f32 %v1630_v27, %v1514_v44  ;;  %v2612_v44 = vld [vmem:[%s4368_s9 + $0xd8] sm:$0xff]  ;;  %v2620_v27 = vld [vmem:[%s4368_s9 + $0x110] sm:$0xff] }
 0x2e0   :  { %v1744_v43 = vpop.f32.mrf.mxu1 }
 0x2e1   :  { %v1755_v46 = vadd.f32 %v1744_v43, %v1633_v22  ;;  %v2613_v22 = vld [vmem:[%s4368_s9 + $0xe0] sm:$0xff]  ;;  %v2624_v43 = vld [vmem:[%s4368_s9 + $0x130] sm:$0xff] }
 0x2e2   :  { %v1746_v31 = vpop.f32.mrf.mxu1 }
 0x2e3   :  { %v1756_v32 = vadd.f32 %v1746_v31, %v1634_v45  ;;  %v1771_v2 = vadd.f32 %v1764_v48, %v1755_v46  ;;  %v2623_v45 = vld [vmem:[%s4368_s9 + $0x128] sm:$0xff]  ;;  %v2622_v46 = vld [vmem:[%s4368_s9 + $0x120] sm:$0xff]  ;;  %v2621_v31 = vld [vmem:[%s4368_s9 + $0x118] sm:$0xff] }
 0x2e4   :  { %v1750_v40 = vpop.f32.mrf.mxu1 }
 0x2e5   :  { %v1772_v47 = vadd.f32 %v1768_v63, %v1756_v32  ;;  %v1757_v4 = vadd.f32 %v1750_v40, %v1635_v34  ;;  %v2609_v32 = vld [vmem:[%s4368_s9 + $0xc0] sm:$0xff]  ;;  %v2608_v34 = vld [vmem:[%s4368_s9 + $0xb8] sm:$0xff]  ;;  %v2619_v40 = vld [vmem:[%s4368_s9 + $0x108] sm:$0xff] }
 0x2e6   :  { %v1752_v49 = vpop.f32.mrf.mxu1 }
 0x2e7   :  { %v1758_v29 = vadd.f32 %v1752_v49, %v1636_v1  ;;  %2588 = vmatprep.mubr.msk.f32.mxu0 %vm1795_vm11, %v1772_v47  ;;  %2590 = vmatprep.mubr.msk.f32.mxu1 %vm1795_vm11, %v1772_v47  ;;  %v1773_v5 = vadd.f32 %v1764_v48, %v1757_v4  ;;  %v2610_v48 = vld [vmem:[%s4368_s9 + $0xc8] sm:$0xff]  ;;  %v2607_v47 = vld [vmem:[%s4368_s9 + $0xb0] sm:$0xff]  ;;  %v2618_v1 = vld [vmem:[%s4368_s9 + $0x100] sm:$0xff] }
 0x2e8   :  { %1867 = vmatmul.mubr.f32.vlgmr.msra.gmra.mxu0 %v1771_v2  ;;  %1962 = vmatmul.mubr.f32.vlgmr.msra.gmra.mxu1 %v1771_v2  ;;  %v2606_v2 = vld [vmem:[%s4368_s9 + $0xa8] sm:$0xff]  ;;  %v2617_v4 = vld [vmem:[%s4368_s9 + $0xf8] sm:$0xff]  ;;  %v2605_v49 = vld [vmem:[%s4368_s9 + $0xa0] sm:$0xff] }
 0x2e9   :  { %v1774_v35 = vadd.f32 %v1768_v63, %v1758_v29  ;;  %2675 = vmatpush3.msra.mxu0 %v1994_v50  ;;  %2698 = vmatpush3.msra.mxu1 %v2603_v23  ;;  %v2611_v63 = vld [vmem:[%s4368_s9 + $0xd0] sm:$0xff] }
 0x2ea   :  { %2676 = vmatprep.subr.mxu0 %v2772_v3  ;;  %2699 = vmatprep.subr.mxu1 %v2772_v3  ;;  %v2616_v29 = vld [vmem:[%s4368_s9 + $0xf0] sm:$0xff] }
 0x2eb   :  { %2589 = vmatprep.mubr.msk.f32.mxu0 %vm1795_vm11, %v1774_v35  ;;  %2591 = vmatprep.mubr.msk.f32.mxu1 %vm1795_vm11, %v1774_v35 }
 0x2ec   :  { %1872 = vmatmul.mubr.f32.gmra.mxu0 %v1773_v5  ;;  %1967 = vmatmul.mubr.f32.gmra.mxu1 %v1773_v5 }
 0x2ed   :  { %2677 = vmatpush3.msra.mxu0 %v1993_v6  ;;  %2700 = vmatpush3.msra.mxu1 %v2602_v51 }
 0x2ee   :  { %2678 = vmatprep.subr.mxu0 %v2772_v3  ;;  %2701 = vmatprep.subr.mxu1 %v2772_v3 }
 0x2ef   :  { %2679 = vmatpush3.msra.mxu0 %v1992_v52  ;;  %2702 = vmatpush3.msra.mxu1 %v2601_v42  ;;  %v18_v52 = vstv %s4369_s12 }
 0x2f0   :  { %2680 = vmatprep.subr.mxu0 %v2772_v3  ;;  %2703 = vmatprep.subr.mxu1 %v2772_v3  ;;  %19 = vst [vmem:[#allocation3] sm:$0x1] %v18_v52 }
 0x2f1   :  { %2681 = vmatpush3.msra.mxu0 %v1991_v26  ;;  %2704 = vmatpush3.msra.mxu1 %v2600_v8 }
 0x2f2   :  { %2682 = vmatprep.subr.mxu0 %v2772_v3  ;;  %2705 = vmatprep.subr.mxu1 %v2772_v3 }
 0x2f3   :  { %2683 = vmatpush3.msra.mxu0 %v1990_v53  ;;  %2706 = vmatpush3.msra.mxu1 %v2599_v54 }
 0x2f4   :  { %2684 = vmatprep.subr.mxu0 %v2772_v3  ;;  %2707 = vmatprep.subr.mxu1 %v2772_v3 }
 0x2f5   :  { %2685 = vmatpush3.msra.mxu0 %v1989_v9  ;;  %2708 = vmatpush3.msra.mxu1 %v2598_v10 }
 0x2f6   :  { %2686 = vmatprep.subr.mxu0 %v2772_v3  ;;  %2709 = vmatprep.subr.mxu1 %v2772_v3 }
 0x2f7   :  { %2687 = vmatpush3.msra.mxu0 %v1988_v11  ;;  %2710 = vmatpush3.msra.mxu1 %v2597_v15 }
 0x2f8   :  { %2688 = vmatprep.subr.mxu0 %v2772_v3  ;;  %2711 = vmatprep.subr.mxu1 %v2772_v3 }
 0x2f9   :  { %2689 = vmatpush3.msra.mxu0 %v1987_v55  ;;  %2712 = vmatpush3.msra.mxu1 %v2596_v19 }
 0x2fa   :  { %2690 = vmatprep.subr.mxu0 %v2772_v3  ;;  %2713 = vmatprep.subr.mxu1 %v2772_v3 }
 0x2fb   :  { %2691 = vmatpush3.msra.mxu0 %v1986_v24  ;;  %2714 = vmatpush3.msra.mxu1 %v2595_v25  ;;  %v2627_v25 = vld [vmem:[%s4371_s11] ss:$0 sm:$0xff] }
 0x2fc   :  { %2692 = vmatprep.subr.mxu0 %v2772_v3  ;;  %2715 = vmatprep.subr.mxu1 %v2772_v3 }
 0x2fd   :  { %2693 = vmatpush3.msra.mxu0 %v1985_v28  ;;  %2716 = vmatpush3.msra.mxu1 %v2594_v30 }
 0x2fe   :  { %2694 = vmatprep.mubr.msk.f32.mxu0 %vm2773_vm12, %v2772_v3  ;;  %2717 = vmatprep.mubr.msk.f32.mxu1 %vm2773_vm12, %v2772_v3 }
 0x2ff   :  { %2720 = vmatprep.subr.mxu0 %v2772_v3  ;;  %2743 = vmatprep.subr.mxu1 %v2772_v3 }
 0x3a8   :  { %v1868_v12 = vpop.f32.mrf.mxu0  ;;  %v1963_v13 = vpop.f32.mrf.mxu1 }
 0x3a9   :  { %v1972_v14 = vmax.f32 %v1868_v12, %v1963_v13  ;;  %v2628_v13 = vld [vmem:[#allocation3] ss:$0 sm:$0xff] }
 0x3aa   :  { %v1870_v57 = vpop.f32.mrf.mxu0  ;;  %v1965_v58 = vpop.f32.mrf.mxu1 }
 0x3ab   :  { %v1977_v20 = vrot.slane %v1972_v14, 1 }
 0x3ac   :  { %v1873_v36 = vpop.f32.mrf.mxu0  ;;  %v1968_v37 = vpop.f32.mrf.mxu1 }
 0x3ad   :  { %v1981_v38 = vmax.f32 %v1972_v14, %v1977_v20  ;;  %v1973_v59 = vmax.f32 %v1873_v36, %v1968_v37 }
 0x3ae   :  { %v1875_v60 = vpop.f32.mrf.mxu0  ;;  %v1970_v39 = vpop.f32.mrf.mxu1 }
 0x3af   :  { %v1978_v41 = vrot.slane %v1973_v59, 1  ;;  %v4245_v18 = vmax.f32 %v1981_v38, 0.0 }
 0x3b1   :  { %v1982_v16 = vmax.f32 %v1973_v59, %v1978_v41  ;;  %v2091_v21 = vrot.slane %v4245_v18, 2  ;;  %v2178_v35 = vrot.slane %v4245_v18, 4  ;;  %v2265_v5 = vrot.slane %v4245_v18, 6 }
 0x3b3   :  { %v4247_v33 = vmax.f32 %v1982_v16, 0.0 }
 0x3b5   :  { %v1997_v61 = vrot.slane %v4247_v33, 7  ;;  %v2092_v0 = vrot.slane %v4247_v33, 1  ;;  %v2179_v50 = vrot.slane %v4247_v33, 3  ;;  %v2266_v23 = vrot.slane %v4247_v33, 5 }
 0x3b7   :  { %v1999_v56 = vsel %vm1998_vm13, %v1997_v61, %v4245_v18  ;;  %v2093_v7 = vsel %vm1998_vm13, %v2092_v0, %v2091_v21  ;;  %v2180_v6 = vsel %vm1998_vm13, %v2179_v50, %v2178_v35  ;;  %v2267_v51 = vsel %vm1998_vm13, %v2266_v23, %v2265_v5 }
 0x3b8   :  { %2695 = vmatmul.mubr.msk.f32.vlgmr.msra.gmra.mxu0 %vm2000_vm14, %v1999_v56  ;;  %2718 = vmatmul.mubr.msk.f32.vlgmr.msra.gmra.mxu1 %vm2000_vm14, %v2093_v7 }
 0x3b9   :  { %2721 = vmatpush3.msra.mxu0 %v2614_v62  ;;  %2744 = vmatpush3.msra.mxu1 %v2625_v17 }
 0x3ba   :  { %2722 = vmatprep.subr.mxu0 %v2772_v3  ;;  %2745 = vmatprep.subr.mxu1 %v2772_v3 }
 0x3bb   :  { %2723 = vmatpush3.msra.mxu0 %v2613_v22  ;;  %2746 = vmatpush3.msra.mxu1 %v2624_v43 }
 0x3bc   :  { %2724 = vmatprep.subr.mxu0 %v2772_v3  ;;  %2747 = vmatprep.subr.mxu1 %v2772_v3 }
 0x3bd   :  { %2725 = vmatpush3.msra.mxu0 %v2612_v44  ;;  %2748 = vmatpush3.msra.mxu1 %v2623_v45 }
 0x3be   :  { %2726 = vmatprep.subr.mxu0 %v2772_v3  ;;  %2749 = vmatprep.subr.mxu1 %v2772_v3 }
 0x3bf   :  { %2727 = vmatpush3.msra.mxu0 %v2611_v63  ;;  %2750 = vmatpush3.msra.mxu1 %v2622_v46 }
 0x3c0   :  { %2728 = vmatprep.subr.mxu0 %v2772_v3  ;;  %2751 = vmatprep.subr.mxu1 %v2772_v3 }
 0x3c1   :  { %2729 = vmatpush3.msra.mxu0 %v2610_v48  ;;  %2752 = vmatpush3.msra.mxu1 %v2621_v31 }
 0x3c2   :  { %2730 = vmatprep.subr.mxu0 %v2772_v3  ;;  %2753 = vmatprep.subr.mxu1 %v2772_v3 }
 0x3c3   :  { %2731 = vmatpush3.msra.mxu0 %v2609_v32  ;;  %2754 = vmatpush3.msra.mxu1 %v2620_v27 }
 0x3c4   :  { %2732 = vmatprep.subr.mxu0 %v2772_v3  ;;  %2755 = vmatprep.subr.mxu1 %v2772_v3 }
 0x3c5   :  { %2733 = vmatpush3.msra.mxu0 %v2608_v34  ;;  %2756 = vmatpush3.msra.mxu1 %v2619_v40 }
 0x3c6   :  { %2734 = vmatprep.subr.mxu0 %v2772_v3  ;;  %2757 = vmatprep.subr.mxu1 %v2772_v3 }
 0x3c7   :  { %2735 = vmatpush3.msra.mxu0 %v2607_v47  ;;  %2758 = vmatpush3.msra.mxu1 %v2618_v1 }
 0x3c8   :  { %2736 = vmatprep.subr.mxu0 %v2772_v3  ;;  %2759 = vmatprep.subr.mxu1 %v2772_v3 }
 0x3c9   :  { %2737 = vmatpush3.msra.mxu0 %v2606_v2  ;;  %2760 = vmatpush3.msra.mxu1 %v2617_v4 }
 0x3ca   :  { %2738 = vmatprep.subr.mxu0 %v2772_v3  ;;  %2761 = vmatprep.subr.mxu1 %v2772_v3 }
 0x3cb   :  { %2739 = vmatpush3.msra.mxu0 %v2605_v49  ;;  %2740 = vmatprep.mubr.msk.f32.mxu0 %vm2773_vm12, %v2772_v3 }
 0x3cc   :  { %2762 = vmatpush3.msra.mxu1 %v2616_v29  ;;  %2763 = vmatprep.mubr.msk.f32.mxu1 %vm2773_vm12, %v2772_v3  ;;  %v2593_v3 = vld [vmem:[%s4370_s10] ss:$0 sm:$0xff] }
 0x3cd   :  { %2741 = vmatmul.mubr.msk.f32.vlgmr.msra.gmra.mxu0 %vm2000_vm14, %v2180_v6  ;;  %2764 = vmatmul.mubr.msk.f32.vlgmr.msra.gmra.mxu1 %vm2000_vm14, %v2267_v51 }
 0x478   :  { %v2069_v42 = vpop.f32.mrf.mxu0  ;;  %v2162_v26 = vpop.f32.mrf.mxu1 }
 0x479   :  { %v2079_v54 = vadd.f32 %v2593_v3, %v2069_v42 }
 0x47a   :  { %v2696_v8 = vpop.f32.mrf.mxu0  ;;  %v2719_v53 = vpop.f32.mrf.mxu1 }
 0x47b   :  { %v2166_v9 = vadd.f32 %v2162_v26, %v2079_v54 }
 0x48d   :  { %v2249_v10 = vpop.f32.mrf.mxu0  ;;  %v2336_v11 = vpop.f32.mrf.mxu1 }
 0x48e   :  { %v2253_v15 = vadd.f32 %v2249_v10, %v2166_v9 }
 0x48f   :  { %v2742_v55 = vpop.f32.mrf.mxu0  ;;  %v2765_v19 = vpop.f32.mrf.mxu1 }
 0x490   :  { %v2340_v24 = vadd.f32 %v2336_v11, %v2253_v15 }
 0x492   :  { %v2341_v28 = vmax.f32 %v2340_v24, 0.0 }
 0x494   :  { %v2349_v30 = vmul.f32 %v2627_v25, %v2341_v28 }
 0x496   :  { %v2351_v12 = vsel %vm2350_vm15, %v2349_v30, 0.0 }
 0x497   :  { %2352 = vadd.xlane.f32.xlu0 %v2351_v12 }
 0x520   :  { %v2353_v14 = vpop.xlane.xlu0 %2352 }
 0x521   :  { %v2361_v57 = vadd.f32 %v2628_v13, %v2353_v14 }
 0x523   :  { %v2629_v58 = vmul.f32 -1.442695, %v2361_v57 }
 0x525   :  { %2768 = vpow2.f32 %v2629_v58 }
 0x532   :  { %v2769_v20 = vpop.eup %2768 }
 0x533   :  { %v2365_v36 = vadd.f32 1.0, %v2769_v20 }
 0x535   :  { %2770 = vrcp.f32 %v2365_v36 }
 0x542   :  { %v2771_v37 = vpop.eup %2770 }
 0x543   :  { %2369 = vst.msk [vmem:[%s4372_s13] sm:$0x3] %vm2368_vm0, %v2771_v37 }

</bundles_post_ra>
